<compile_context>
chip_gen: v6e
topology: v6e:2x2x1
jax: 0.10.0
libtpu: 0.0.40
codegen_flags: <defaults>
</compile_context>

<pallas_src>
import functools

import numpy as np

import jax
import jax.numpy as jnp
from jax.experimental import pallas as pl
from jax.experimental.pallas import tpu as pltpu

# ----------------------------- hyper params ---------------------------------
ENC_HIDDEN = 16      # hp.enc_hidden_size
DEC_HIDDEN = 32      # hp.dec_hidden_size
NZ = 8               # hp.Nz
M = 16               # hp.M
NMAX = 8             # Nmax
BATCH = 2
IMG = 32             # 32x32 single-channel image -> encoder out (B, 2, 2, 8)
T = NMAX + 1         # decoder sequence length
HEAD_W = 6 * M + 3   # 99 decoder head columns
HEAD_PAD = 128       # lane-dense padded head width
ROWS = T * BATCH     # 18 decoder output rows
ROWS_PAD = ((ROWS + 7) // 8) * 8   # 24 (unmasked sublane stores)
SLAB_LANES = 128

# EncoderCNN: Conv2d(1,4,s2), Conv2d(4,4,s1), Conv2d(4,8,s2),
#             Conv2d(8,8,s1), Conv2d(8,8,s2), Conv2d(8,8,s1); each +BN2d+ReLU
ENC_CFG = [(1, 4, 2), (4, 4, 1), (4, 8, 2), (8, 8, 1), (8, 8, 2), (8, 8, 1)]


def _conv_dims(img_hw, cfgs):
  dims = []
  h = w = img_hw
  for cin, cout, s in cfgs:
    ho = (h - 2) // s + 1
    wo = (w - 2) // s + 1
    dims.append(dict(cin=cin, cout=cout, s=s, hin=h, win=w, ho=ho, wo=wo))
    h, w = ho, wo
  return dims


CONV_DIMS = _conv_dims(IMG, ENC_CFG)
# encoder_out.view(B, -1, enc_hidden): with W_f*C_f == enc_hidden each "patch"
# is exactly one NHWC row, so the patch mean is a per-batch row mean.
assert CONV_DIMS[-1]["wo"] * CONV_DIMS[-1]["cout"] == ENC_HIDDEN
HF = CONV_DIMS[-1]["ho"]        # final feature-map height (= 2)


# --------------------------- parameter slab layout ---------------------------
def _align8(n):
  return ((n + 7) // 8) * 8


def _build_param_layout(conv_dims):
  layout = {}
  off = 0

  def add(name, rows, cols):
    nonlocal off
    assert cols <= SLAB_LANES
    layout[name] = (off, rows, cols)
    off += _align8(rows)          # keep every operand 8-row (sublane) aligned

  for li, d in enumerate(conv_dims):
    bho, bhin = BATCH * d["ho"], BATCH * d["hin"]
    kin, kout = d["win"] * d["cin"], d["wo"] * d["cout"]
    add(f"r0_{li}", bho, bhin)    # tap-0 row selector (block-diag over batch)
    add(f"r1_{li}", bho, bhin)    # tap-1 row selector
    add(f"a0_{li}", kin, kout)    # conv weight column map, tap di=0
    add(f"a1_{li}", kin, kout)    # conv weight column map, tap di=1
    add(f"pm_{li}", kout, kout)   # BN per-channel mean broadcast map
    add(f"gamma_{li}", 1, kout)
    add(f"beta_{li}", 1, kout)
  add("mmean", BATCH, BATCH * HF)          # patch-mean map (block-diag)
  add("wz", ENC_HIDDEN, NZ)
  add("bz", 1, NZ)
  add("whc", NZ, 2 * DEC_HIDDEN)
  add("bhc", 1, 2 * DEC_HIDDEN)
  add("wih_s", 5, 4 * DEC_HIDDEN)          # stroke slice of W_ih
  add("wih_z", NZ, 4 * DEC_HIDDEN)         # z slice of W_ih
  add("whh", DEC_HIDDEN, 4 * DEC_HIDDEN)
  add("blstm", 1, 4 * DEC_HIDDEN)          # b_ih + b_hh
  add("tz", ROWS_PAD, BATCH)               # tiles z_gates to all (t, b) rows
  add("wfp", DEC_HIDDEN, HEAD_PAD)         # column-permuted + zero padded
  add("bfp", 1, HEAD_PAD)
  return layout, _align8(off)


PARAM_LAYOUT, SLAB_ROWS = _build_param_layout(CONV_DIMS)


# --------------------------- the single fused kernel -------------------------
def make_fused_kernel(conv_dims, layout, batch, t_steps, dec_hidden, m_mix):
  """Builds the fused forward kernel; all shape/offset info is static."""
  f32 = jnp.float32

  def kernel(img_ref, binit_ref, slab_ref, out_ref, pre_sc, outs_sc):

    def getp(name):
      o, r, c = layout[name]
      return slab_ref[o:o + r, 0:c]          # static, 8-row-aligned slice

    def dot(a, b):
      return jnp.dot(a, b, preferred_element_type=f32)

    # --------------- EncoderCNN: 6 x (conv2x2 + BN(train) + ReLU) ------------
    # Activation is a single batch-stacked (B*H, W*C) tile; per layer:
    #   2 selector matmuls (pick rows s*oi+di per batch) + 2 conv matmuls.
    # Conv2d bias is dropped: training-mode BN right after cancels any
    # per-channel constant shift exactly (validated by the biased reference).
    x = img_ref[...]
    for li, _d in enumerate(conv_dims):
      t0 = dot(getp(f"r0_{li}"), x)
      t1 = dot(getp(f"r1_{li}"), x)
      y = dot(t0, getp(f"a0_{li}")) + dot(t1, getp(f"a1_{li}"))
      # BatchNorm2d training-mode batch stats per channel, two-pass centered
      # variance (no E[x^2]-mean^2 cancellation).  PM contains 1/(B*Ho*Wo) and
      # broadcasts per-channel stats back to every (wo, cout) column.
      pm = getp(f"pm_{li}")
      mean = dot(y.sum(axis=0, keepdims=True), pm)
      yc = y - mean
      var = dot((yc * yc).sum(axis=0, keepdims=True), pm)
      scale = jax.lax.rsqrt(var + 1e-5) * getp(f"gamma_{li}")
      x = jnp.maximum(yc * scale + getp(f"beta_{li}"), 0.0)

    # ---------- mean over patches + init_z + fc_hc(tanh) -> z, (h0,c0) -------
    mean_enc = dot(getp("mmean"), x)                       # (B, ENC_HIDDEN)
    z = dot(mean_enc, getp("wz")) + getp("bz")             # (B, Nz)
    hc = jnp.tanh(dot(z, getp("whc")) + getp("bhc"))
    h = hc[:, :dec_hidden]
    c = hc[:, dec_hidden:2 * dec_hidden]

    # --------- hoisted LSTM input projections (off the serial h->h chain) ----
    # pre[t*B + b] = stroke[t, b] @ Wih_s + z[b] @ Wih_z + (b_ih + b_hh)
    z_gates = dot(z, getp("wih_z")) + getp("blstm")        # (B, 4H)
    pre_sc[...] = dot(binit_ref[...], getp("wih_s")) + dot(getp("tz"), z_gates)
    outs_sc[...] = jnp.zeros_like(outs_sc)                 # padding rows -> 0

    # --------------- decoder LSTM, fully unrolled over T steps ---------------
    # Only h @ W_hh remains per step; bf16 matmul operands, f32 accumulation.
    whh_bf = getp("whh").astype(jnp.bfloat16)
    hd = dec_hidden
    for step in range(t_steps):
      rows = slice(step * batch, (step + 1) * batch)
      gates = pre_sc[rows, :] + dot(h.astype(jnp.bfloat16), whh_bf)  # (B, 4H)
      # exact 1/(1+exp) kept (known-good lowering, keeps the numerics tight);
      # pl.reciprocal(..., approx=True) would move the divide to the EUP.
      i_g = 1.0 / (1.0 + jnp.exp(-gates[:, 0 * hd:1 * hd]))
      f_g = 1.0 / (1.0 + jnp.exp(-gates[:, 1 * hd:2 * hd]))
      g_g = jnp.tanh(gates[:, 2 * hd:3 * hd])
      o_g = 1.0 / (1.0 + jnp.exp(-gates[:, 3 * hd:4 * hd]))
      c = f_g * c + i_g * g_g
      h = o_g * jnp.tanh(c)
      outs_sc[rows, :] = h                                 # stream, no concat

    # --------- fc_params + GMM heads: ONE full-width lane-dense store --------
    y = dot(outs_sc[...], getp("wfp")) + getp("bfp")       # (24, 128)
    col = jax.lax.broadcasted_iota(jnp.int32, y.shape, 1)

    def group_softmax(lo, hi):
      msk = (col >= lo) & (col < hi)
      ym = jnp.where(msk, y, -1e30)
      e = jnp.where(msk, jnp.exp(ym - jnp.max(ym, axis=1, keepdims=True)), 0.0)
      return e / jnp.sum(e, axis=1, keepdims=True)         # zero outside group

    m_mu = (col >= m_mix) & (col < 3 * m_mix)
    m_sig = (col >= 3 * m_mix) & (col < 5 * m_mix)
    m_rho = (col >= 5 * m_mix) & (col < 6 * m_mix)
    out_ref[...] = (group_softmax(0, m_mix)                       # pi
                    + group_softmax(6 * m_mix, 6 * m_mix + 3)     # q
                    + jnp.where(m_mu, y, 0.0)                     # mu_x | mu_y
                    + jnp.where(m_sig, jnp.exp(y), 0.0)           # sx | sy
                    + jnp.where(m_rho, jnp.tanh(y), 0.0))         # rho (pad=0)

  return kernel


def _cost_estimate():
  flops = 0
  for d in CONV_DIMS:
    bho, bhin = BATCH * d["ho"], BATCH * d["hin"]
    kin, kout = d["win"] * d["cin"], d["wo"] * d["cout"]
    flops += 2 * 2 * bho * bhin * kin          # tap selectors
    flops += 2 * 2 * bho * kin * kout          # conv matmuls
    flops += 2 * 2 * kout * kout               # BN mean/var dots
    flops += 8 * bho * kout                    # BN / ReLU elementwise
  flops += 2 * BATCH * (BATCH * HF) * ENC_HIDDEN
  flops += 2 * BATCH * ENC_HIDDEN * NZ + 2 * BATCH * NZ * 2 * DEC_HIDDEN
  flops += 2 * ROWS_PAD * 5 * 4 * DEC_HIDDEN
  flops += 2 * ROWS_PAD * BATCH * 4 * DEC_HIDDEN
  flops += 2 * BATCH * NZ * 4 * DEC_HIDDEN
  flops += T * (2 * BATCH * DEC_HIDDEN * 4 * DEC_HIDDEN
                + 12 * BATCH * DEC_HIDDEN)
  flops += 2 * ROWS_PAD * DEC_HIDDEN * HEAD_PAD + 12 * ROWS_PAD * HEAD_PAD
  transcendentals = T * BATCH * 6 * DEC_HIDDEN + 4 * ROWS_PAD * HEAD_PAD
  bytes_accessed = 4 * (SLAB_ROWS * SLAB_LANES + BATCH * IMG * IMG
                        + ROWS_PAD * 5 + ROWS_PAD * HEAD_PAD)
  return pl.CostEstimate(flops=int(flops),
                         transcendentals=int(transcendentals),
                         bytes_accessed=int(bytes_accessed))


_FUSED_CALL = pl.pallas_call(
    make_fused_kernel(CONV_DIMS, PARAM_LAYOUT, BATCH, T, DEC_HIDDEN, M),
    out_shape=jax.ShapeDtypeStruct((ROWS_PAD, HEAD_PAD), jnp.float32),
    in_specs=[pl.BlockSpec(memory_space=pltpu.MemorySpace.VMEM)] * 3,
    out_specs=pl.BlockSpec(memory_space=pltpu.MemorySpace.VMEM),
    scratch_shapes=[
        pltpu.VMEM((ROWS_PAD, 4 * DEC_HIDDEN), jnp.float32),   # hoisted gates
        pltpu.VMEM((ROWS_PAD, DEC_HIDDEN), jnp.float32),       # LSTM outputs
    ],
    cost_estimate=_cost_estimate(),
)


# --------------------------- parameter init ----------------------------------
def init_params(key):
  keys = iter(jax.random.split(key, 64))
  p = {}
  enc = []
  for cin, cout, _ in ENC_CFG:
    w = 0.1 * jax.random.normal(next(keys), (cout, cin, 2, 2), jnp.float32)
    b = 0.1 * jax.random.normal(next(keys), (cout,), jnp.float32)   # conv bias
    gamma = 1.0 + 0.05 * jax.random.normal(next(keys), (cout,), jnp.float32)
    beta = 0.05 * jax.random.normal(next(keys), (cout,), jnp.float32)
    enc.append((w, b, gamma, beta))
  p["encoder"] = enc

  p["wz"] = 0.1 * jax.random.normal(next(keys), (ENC_HIDDEN, NZ), jnp.float32)
  p["bz"] = 0.1 * jax.random.normal(next(keys), (NZ,), jnp.float32)
  p["whc"] = 0.1 * jax.random.normal(next(keys), (NZ, 2 * DEC_HIDDEN),
                                     jnp.float32)
  p["bhc"] = 0.1 * jax.random.normal(next(keys), (2 * DEC_HIDDEN,), jnp.float32)

  nin = NZ + 5
  p["wih"] = 0.1 * jax.random.normal(next(keys), (nin, 4 * DEC_HIDDEN),
                                     jnp.float32)
  p["whh"] = 0.1 * jax.random.normal(next(keys), (DEC_HIDDEN, 4 * DEC_HIDDEN),
                                     jnp.float32)
  b_ih = 0.1 * jax.random.normal(next(keys), (4 * DEC_HIDDEN,), jnp.float32)
  b_hh = 0.1 * jax.random.normal(next(keys), (4 * DEC_HIDDEN,), jnp.float32)
  p["blstm"] = b_ih + b_hh

  # fc_params in the PyTorch-native interleaved column order
  # [pi_0, mux_0, muy_0, sx_0, sy_0, rho_0, pi_1, ..., q0, q1, q2].
  p["wfp"] = 0.1 * jax.random.normal(next(keys), (DEC_HIDDEN, HEAD_W),
                                     jnp.float32)
  p["bfp"] = 0.1 * jax.random.normal(next(keys), (HEAD_W,), jnp.float32)
  return p


def pack_params(params):
  """Host-side packing of ALL weights into one (SLAB_ROWS, 128) f32 slab."""
  slab = np.zeros((SLAB_ROWS, SLAB_LANES), np.float32)

  def put(name, mat):
    o, r, c = PARAM_LAYOUT[name]
    mat = np.asarray(mat, np.float32)
    assert mat.shape == (r, c), (name, mat.shape, (r, c))
    slab[o:o + r, :c] = mat

  for li, ((w, _bias, gamma, beta), d) in enumerate(
      zip(params["encoder"], CONV_DIMS)):
    cin, cout, s = d["cin"], d["cout"], d["s"]
    hin, win, ho, wo = d["hin"], d["win"], d["ho"], d["wo"]
    w_np = np.asarray(w, np.float32)                       # (cout, cin, 2, 2)
    for di in range(2):
      a = np.zeros((win * cin, wo * cout), np.float32)
      for oj in range(wo):
        for dj in range(2):
          j = s * oj + dj
          a[j * cin:(j + 1) * cin, oj * cout:(oj + 1) * cout] += (
              w_np[:, :, di, dj].T)
      put(f"a{di}_{li}", a)
      # block-diagonal (over batch) 0/1 row selector: picks row s*oi + di
      r = np.zeros((BATCH * ho, BATCH * hin), np.float32)
      for b in range(BATCH):
        r[b * ho + np.arange(ho), b * hin + s * np.arange(ho) + di] = 1.0
      put(f"r{di}_{li}", r)
    pm = (np.kron(np.ones((wo, wo), np.float32),
                  np.eye(cout, dtype=np.float32)) / float(BATCH * ho * wo))
    put(f"pm_{li}", pm)
    put(f"gamma_{li}", np.tile(np.asarray(gamma, np.float32), wo)[None, :])
    put(f"beta_{li}", np.tile(np.asarray(beta, np.float32), wo)[None, :])

  put("mmean", np.kron(np.eye(BATCH, dtype=np.float32),
                       np.full((1, HF), 1.0 / HF, np.float32)))
  put("wz", params["wz"])
  put("bz", np.asarray(params["bz"], np.float32)[None, :])
  put("whc", params["whc"])
  put("bhc", np.asarray(params["bhc"], np.float32)[None, :])
  put("wih_s", np.asarray(params["wih"], np.float32)[:5])
  put("wih_z", np.asarray(params["wih"], np.float32)[5:])
  put("whh", params["whh"])
  put("blstm", np.asarray(params["blstm"], np.float32)[None, :])

  tz = np.zeros((ROWS_PAD, BATCH), np.float32)
  for t in range(T):
    for b in range(BATCH):
      tz[t * BATCH + b, b] = 1.0
  put("tz", tz)

  # Permute nn.Linear's interleaved [pi,mux,muy,sx,sy,rho]*M columns into
  # contiguous head blocks and pad the lane dim to 128 (lane-dense output).
  perm = np.concatenate([np.arange(M) * 6 + k for k in range(6)]
                        + [6 * M + np.arange(3)])
  wfp = np.zeros((DEC_HIDDEN, HEAD_PAD), np.float32)
  wfp[:, :HEAD_W] = np.asarray(params["wfp"], np.float32)[:, perm]
  bfp = np.zeros((1, HEAD_PAD), np.float32)
  bfp[0, :HEAD_W] = np.asarray(params["bfp"], np.float32)[perm]
  put("wfp", wfp)
  put("bfp", bfp)
  return jnp.asarray(slab)


# ------------------------------- forward pass ---------------------------------
@jax.jit
def stroke_model_forward(param_slab, batch_init, img_input):
  b = img_input.shape[0]
  # NCHW with Cin=1 -> batch-stacked (B*H, W) tile (pure reshape, no transpose)
  img2d = img_input.reshape(b * IMG, IMG)
  # stroke inputs, seq-first (T, B, 5) -> (T*B, 5), rows padded to 24
  binit2d = jnp.zeros((ROWS_PAD, 5), jnp.float32).at[:T * b, :].set(
      batch_init.reshape(T * b, 5))
  slab = _FUSED_CALL(img2d, binit2d, param_slab)[:T * b]     # (T*B, 128)

  # Literal module code: len_out = inputs.size(1) + 1 = batch_size + 1.
  len_out = b + 1

  def head(lo, hi, k):
    return slab[:, lo:hi].reshape(len_out, -1, k)

  pi = head(0, M, M)
  mu_x = head(M, 2 * M, M)
  mu_y = head(2 * M, 3 * M, M)
  sigma_x = head(3 * M, 4 * M, M)
  sigma_y = head(4 * M, 5 * M, M)
  rho_xy = head(5 * M, 6 * M, M)
  q = head(6 * M, 6 * M + 3, 3)
  return pi, mu_x, mu_y, sigma_x, sigma_y, rho_xy, q


# ----------------------- pure-JAX reference (check only) ----------------------
def reference_forward(params, batch_init, img_input):
  hi = jax.lax.Precision.HIGHEST
  dot = functools.partial(jnp.dot, precision=hi)
  x = img_input
  for (w, bconv, gamma, beta), d in zip(params["encoder"], CONV_DIMS):
    y = jax.lax.conv_general_dilated(
        x, w, window_strides=(d["s"], d["s"]), padding="VALID",
        dimension_numbers=("NCHW", "OIHW", "NCHW"), precision=hi)
    y = y + bconv.reshape(1, -1, 1, 1)           # conv bias IS applied here
    mean = jnp.mean(y, axis=(0, 2, 3), keepdims=True)
    var = jnp.mean((y - mean) ** 2, axis=(0, 2, 3), keepdims=True)
    y = (y - mean) * jax.lax.rsqrt(var + 1e-5)
    y = y * gamma.reshape(1, -1, 1, 1) + beta.reshape(1, -1, 1, 1)
    x = jnp.maximum(y, 0.0)
  b = x.shape[0]
  enc = jnp.transpose(x, (0, 2, 3, 1)).reshape(b, -1, ENC_HIDDEN)
  mean_enc = jnp.mean(enc, axis=1)
  z = dot(mean_enc, params["wz"]) + params["bz"]
  hc = jnp.tanh(dot(z, params["whc"]) + params["bhc"])
  h, c = hc[:, :DEC_HIDDEN], hc[:, DEC_HIDDEN:]
  inputs = jnp.concatenate(
      [batch_init, jnp.broadcast_to(z[None], (T, b, NZ))], axis=2)
  hs = []
  for t in range(T):
    gates = (dot(inputs[t], params["wih"]) + dot(h, params["whh"])
             + params["blstm"])
    i_g = jax.nn.sigmoid(gates[:, :DEC_HIDDEN])
    f_g = jax.nn.sigmoid(gates[:, DEC_HIDDEN:2 * DEC_HIDDEN])
    g_g = jnp.tanh(gates[:, 2 * DEC_HIDDEN:3 * DEC_HIDDEN])
    o_g = jax.nn.sigmoid(gates[:, 3 * DEC_HIDDEN:])
    c = f_g * c + i_g * g_g
    h = o_g * jnp.tanh(c)
    hs.append(h)
  outs = jnp.concatenate(hs, axis=0)
  y = dot(outs, params["wfp"]) + params["bfp"]   # interleaved nn.Linear cols
  len_out = b + 1
  rs = lambda a, k: a.reshape(len_out, -1, k)
  return (rs(jax.nn.softmax(y[:, 0:6 * M:6], axis=1), M),
          rs(y[:, 1:6 * M:6], M),
          rs(y[:, 2:6 * M:6], M),
          rs(jnp.exp(y[:, 3:6 * M:6]), M),
          rs(jnp.exp(y[:, 4:6 * M:6]), M),
          rs(jnp.tanh(y[:, 5:6 * M:6]), M),
          rs(jax.nn.softmax(y[:, 6 * M:6 * M + 3], axis=1), 3))


# ----------------------------------- main --------------------------------------
if __name__ == "__main__":
  key = jax.random.PRNGKey(0)
  kp, k1, k2 = jax.random.split(key, 3)
  params = init_params(kp)
  param_slab = pack_params(params)

  # batch_init: (Nmax+1, B, 5)  sketch-rnn stroke-5 decoder input (seq-first)
  batch_init = jax.random.normal(k1, (T, BATCH, 5), jnp.float32)
  # img_input: (B, 1, 32, 32) NCHW
  img_input = jax.random.normal(k2, (BATCH, 1, IMG, IMG), jnp.float32)

  # divisibility required by the module's literal view(len_out, -1, M)
  assert (T * BATCH) % (BATCH + 1) == 0

  outs = stroke_model_forward(param_slab, batch_init, img_input)
  outs = jax.block_until_ready(outs)

  expected_mid = (T * BATCH) // (BATCH + 1)
  assert outs[0].shape == (BATCH + 1, expected_mid, M)
  assert outs[-1].shape == (BATCH + 1, expected_mid, 3)

  # numerical cross-check against a pure-JAX (f32, biased-conv) reference;
  # tolerance accounts for the bf16 operands of the LSTM recurrence matmul.
  refs = reference_forward(params, batch_init, img_input)
  for got, want in zip(outs, refs):
    np.testing.assert_allclose(np.asarray(got), np.asarray(want),
                               rtol=5e-3, atol=5e-3)

  print("KERNEL_OK")
</pallas_src>

<mosaic_0001>
module attributes {stable_mosaic.version = 11 : i64} {
  func.func @kernel(%arg0: memref<64x32xf32, #tpu.memory_space<vmem>>, %arg1: memref<24x5xf32, #tpu.memory_space<vmem>>, %arg2: memref<1336x128xf32, #tpu.memory_space<vmem>>, %arg3: memref<24x128xf32, #tpu.memory_space<vmem>>, %arg4: memref<24x128xf32, #tpu.memory_space<vmem>>, %arg5: memref<24x32xf32, #tpu.memory_space<vmem>>) attributes {dimension_semantics = [], scalar_prefetch = 0 : i64, scratch_operands = 2 : i64, tpu.core_type = #tpu.core_type<tc>} {
    %c0 = arith.constant 0 : index
    %c0_0 = arith.constant 0 : index
    %0 = vector.load %arg0[%c0, %c0_0] : memref<64x32xf32, #tpu.memory_space<vmem>>, vector<64x32xf32>
    %c0_1 = arith.constant 0 : index
    %c0_2 = arith.constant 0 : index
    %1 = vector.load %arg2[%c0_1, %c0_2] : memref<1336x128xf32, #tpu.memory_space<vmem>>, vector<32x64xf32>
    %cst = arith.constant dense<0.000000e+00> : vector<32x32xf32>
    %2 = tpu.matmul %1, %0, %cst {dimension_numbers = #tpu.dot_dimension_numbers<[1], [0], [0], [1], [0, 0, 1, 1], [], []>} : vector<32x64xf32>, vector<64x32xf32>, vector<32x32xf32> -> vector<32x32xf32>
    %c32 = arith.constant 32 : index
    %c0_3 = arith.constant 0 : index
    %3 = vector.load %arg2[%c32, %c0_3] : memref<1336x128xf32, #tpu.memory_space<vmem>>, vector<32x64xf32>
    %cst_4 = arith.constant dense<0.000000e+00> : vector<32x32xf32>
    %4 = tpu.matmul %3, %0, %cst_4 {dimension_numbers = #tpu.dot_dimension_numbers<[1], [0], [0], [1], [0, 0, 1, 1], [], []>} : vector<32x64xf32>, vector<64x32xf32>, vector<32x32xf32> -> vector<32x32xf32>
    %c64 = arith.constant 64 : index
    %c0_5 = arith.constant 0 : index
    %5 = vector.load %arg2[%c64, %c0_5] : memref<1336x128xf32, #tpu.memory_space<vmem>>, vector<32x64xf32>
    %cst_6 = arith.constant dense<0.000000e+00> : vector<32x64xf32>
    %6 = tpu.matmul %2, %5, %cst_6 {dimension_numbers = #tpu.dot_dimension_numbers<[1], [0], [0], [1], [0, 0, 1, 1], [], []>} : vector<32x32xf32>, vector<32x64xf32>, vector<32x64xf32> -> vector<32x64xf32>
    %c96 = arith.constant 96 : index
    %c0_7 = arith.constant 0 : index
    %7 = vector.load %arg2[%c96, %c0_7] : memref<1336x128xf32, #tpu.memory_space<vmem>>, vector<32x64xf32>
    %cst_8 = arith.constant dense<0.000000e+00> : vector<32x64xf32>
    %8 = tpu.matmul %4, %7, %cst_8 {dimension_numbers = #tpu.dot_dimension_numbers<[1], [0], [0], [1], [0, 0, 1, 1], [], []>} : vector<32x32xf32>, vector<32x64xf32>, vector<32x64xf32> -> vector<32x64xf32>
    %9 = arith.addf %6, %8 : vector<32x64xf32>
    %c128 = arith.constant 128 : index
    %c0_9 = arith.constant 0 : index
    %10 = vector.load %arg2[%c128, %c0_9] : memref<1336x128xf32, #tpu.memory_space<vmem>>, vector<64x64xf32>
    %cst_10 = arith.constant dense<0.000000e+00> : vector<64xf32>
    %11 = vector.multi_reduction <add>, %9, %cst_10 [0] : vector<32x64xf32> to vector<64xf32>
    %12 = vector.shape_cast %11 : vector<64xf32> to vector<1x64xf32>
    %cst_11 = arith.constant dense<0.000000e+00> : vector<1x64xf32>
    %13 = tpu.matmul %12, %10, %cst_11 {dimension_numbers = #tpu.dot_dimension_numbers<[1], [0], [0], [1], [0, 0, 1, 1], [], []>} : vector<1x64xf32>, vector<64x64xf32>, vector<1x64xf32> -> vector<1x64xf32>
    %14 = vector.broadcast %13 : vector<1x64xf32> to vector<32x64xf32>
    %15 = arith.subf %9, %14 : vector<32x64xf32>
    %16 = arith.mulf %15, %15 : vector<32x64xf32>
    %cst_12 = arith.constant dense<0.000000e+00> : vector<64xf32>
    %17 = vector.multi_reduction <add>, %16, %cst_12 [0] : vector<32x64xf32> to vector<64xf32>
    %18 = vector.shape_cast %17 : vector<64xf32> to vector<1x64xf32>
    %cst_13 = arith.constant dense<0.000000e+00> : vector<1x64xf32>
    %19 = tpu.matmul %18, %10, %cst_13 {dimension_numbers = #tpu.dot_dimension_numbers<[1], [0], [0], [1], [0, 0, 1, 1], [], []>} : vector<1x64xf32>, vector<64x64xf32>, vector<1x64xf32> -> vector<1x64xf32>
    %cst_14 = arith.constant 9.99999974E-6 : f32
    %20 = vector.broadcast %cst_14 : f32 to vector<1x64xf32>
    %21 = arith.addf %19, %20 : vector<1x64xf32>
    %22 = math.rsqrt %21 : vector<1x64xf32>
    %c192 = arith.constant 192 : index
    %c0_15 = arith.constant 0 : index
    %23 = vector.load %arg2[%c192, %c0_15] : memref<1336x128xf32, #tpu.memory_space<vmem>>, vector<1x64xf32>
    %24 = arith.mulf %22, %23 : vector<1x64xf32>
    %25 = vector.broadcast %24 : vector<1x64xf32> to vector<32x64xf32>
    %26 = arith.mulf %15, %25 : vector<32x64xf32>
    %c200 = arith.constant 200 : index
    %c0_16 = arith.constant 0 : index
    %27 = vector.load %arg2[%c200, %c0_16] : memref<1336x128xf32, #tpu.memory_space<vmem>>, vector<1x64xf32>
    %28 = vector.broadcast %27 : vector<1x64xf32> to vector<32x64xf32>
    %29 = arith.addf %26, %28 : vector<32x64xf32>
    %cst_17 = arith.constant 0.000000e+00 : f32
    %30 = vector.broadcast %cst_17 : f32 to vector<32x64xf32>
    %31 = arith.maximumf %29, %30 : vector<32x64xf32>
    %c208 = arith.constant 208 : index
    %c0_18 = arith.constant 0 : index
    %32 = vector.load %arg2[%c208, %c0_18] : memref<1336x128xf32, #tpu.memory_space<vmem>>, vector<30x32xf32>
    %cst_19 = arith.constant dense<0.000000e+00> : vector<30x64xf32>
    %33 = tpu.matmul %32, %31, %cst_19 {dimension_numbers = #tpu.dot_dimension_numbers<[1], [0], [0], [1], [0, 0, 1, 1], [], []>} : vector<30x32xf32>, vector<32x64xf32>, vector<30x64xf32> -> vector<30x64xf32>
    %c240 = arith.constant 240 : index
    %c0_20 = arith.constant 0 : index
    %34 = vector.load %arg2[%c240, %c0_20] : memref<1336x128xf32, #tpu.memory_space<vmem>>, vector<30x32xf32>
    %cst_21 = arith.constant dense<0.000000e+00> : vector<30x64xf32>
    %35 = tpu.matmul %34, %31, %cst_21 {dimension_numbers = #tpu.dot_dimension_numbers<[1], [0], [0], [1], [0, 0, 1, 1], [], []>} : vector<30x32xf32>, vector<32x64xf32>, vector<30x64xf32> -> vector<30x64xf32>
    %c272 = arith.constant 272 : index
    %c0_22 = arith.constant 0 : index
    %36 = vector.load %arg2[%c272, %c0_22] : memref<1336x128xf32, #tpu.memory_space<vmem>>, vector<64x60xf32>
    %cst_23 = arith.constant dense<0.000000e+00> : vector<30x60xf32>
    %37 = tpu.matmul %33, %36, %cst_23 {dimension_numbers = #tpu.dot_dimension_numbers<[1], [0], [0], [1], [0, 0, 1, 1], [], []>} : vector<30x64xf32>, vector<64x60xf32>, vector<30x60xf32> -> vector<30x60xf32>
    %c336 = arith.constant 336 : index
    %c0_24 = arith.constant 0 : index
    %38 = vector.load %arg2[%c336, %c0_24] : memref<1336x128xf32, #tpu.memory_space<vmem>>, vector<64x60xf32>
    %cst_25 = arith.constant dense<0.000000e+00> : vector<30x60xf32>
    %39 = tpu.matmul %35, %38, %cst_25 {dimension_numbers = #tpu.dot_dimension_numbers<[1], [0], [0], [1], [0, 0, 1, 1], [], []>} : vector<30x64xf32>, vector<64x60xf32>, vector<30x60xf32> -> vector<30x60xf32>
    %40 = arith.addf %37, %39 : vector<30x60xf32>
    %c400 = arith.constant 400 : index
    %c0_26 = arith.constant 0 : index
    %41 = vector.load %arg2[%c400, %c0_26] : memref<1336x128xf32, #tpu.memory_space<vmem>>, vector<60x60xf32>
    %cst_27 = arith.constant dense<0.000000e+00> : vector<60xf32>
    %42 = vector.multi_reduction <add>, %40, %cst_27 [0] : vector<30x60xf32> to vector<60xf32>
    %43 = vector.shape_cast %42 : vector<60xf32> to vector<1x60xf32>
    %cst_28 = arith.constant dense<0.000000e+00> : vector<1x60xf32>
    %44 = tpu.matmul %43, %41, %cst_28 {dimension_numbers = #tpu.dot_dimension_numbers<[1], [0], [0], [1], [0, 0, 1, 1], [], []>} : vector<1x60xf32>, vector<60x60xf32>, vector<1x60xf32> -> vector<1x60xf32>
    %45 = vector.broadcast %44 : vector<1x60xf32> to vector<30x60xf32>
    %46 = arith.subf %40, %45 : vector<30x60xf32>
    %47 = arith.mulf %46, %46 : vector<30x60xf32>
    %cst_29 = arith.constant dense<0.000000e+00> : vector<60xf32>
    %48 = vector.multi_reduction <add>, %47, %cst_29 [0] : vector<30x60xf32> to vector<60xf32>
    %49 = vector.shape_cast %48 : vector<60xf32> to vector<1x60xf32>
    %cst_30 = arith.constant dense<0.000000e+00> : vector<1x60xf32>
    %50 = tpu.matmul %49, %41, %cst_30 {dimension_numbers = #tpu.dot_dimension_numbers<[1], [0], [0], [1], [0, 0, 1, 1], [], []>} : vector<1x60xf32>, vector<60x60xf32>, vector<1x60xf32> -> vector<1x60xf32>
    %cst_31 = arith.constant 9.99999974E-6 : f32
    %51 = vector.broadcast %cst_31 : f32 to vector<1x60xf32>
    %52 = arith.addf %50, %51 : vector<1x60xf32>
    %53 = math.rsqrt %52 : vector<1x60xf32>
    %c464 = arith.constant 464 : index
    %c0_32 = arith.constant 0 : index
    %54 = vector.load %arg2[%c464, %c0_32] : memref<1336x128xf32, #tpu.memory_space<vmem>>, vector<1x60xf32>
    %55 = arith.mulf %53, %54 : vector<1x60xf32>
    %56 = vector.broadcast %55 : vector<1x60xf32> to vector<30x60xf32>
    %57 = arith.mulf %46, %56 : vector<30x60xf32>
    %c472 = arith.constant 472 : index
    %c0_33 = arith.constant 0 : index
    %58 = vector.load %arg2[%c472, %c0_33] : memref<1336x128xf32, #tpu.memory_space<vmem>>, vector<1x60xf32>
    %59 = vector.broadcast %58 : vector<1x60xf32> to vector<30x60xf32>
    %60 = arith.addf %57, %59 : vector<30x60xf32>
    %cst_34 = arith.constant 0.000000e+00 : f32
    %61 = vector.broadcast %cst_34 : f32 to vector<30x60xf32>
    %62 = arith.maximumf %60, %61 : vector<30x60xf32>
    %c480 = arith.constant 480 : index
    %c0_35 = arith.constant 0 : index
    %63 = vector.load %arg2[%c480, %c0_35] : memref<1336x128xf32, #tpu.memory_space<vmem>>, vector<14x30xf32>
    %cst_36 = arith.constant dense<0.000000e+00> : vector<14x60xf32>
    %64 = tpu.matmul %63, %62, %cst_36 {dimension_numbers = #tpu.dot_dimension_numbers<[1], [0], [0], [1], [0, 0, 1, 1], [], []>} : vector<14x30xf32>, vector<30x60xf32>, vector<14x60xf32> -> vector<14x60xf32>
    %c496 = arith.constant 496 : index
    %c0_37 = arith.constant 0 : index
    %65 = vector.load %arg2[%c496, %c0_37] : memref<1336x128xf32, #tpu.memory_space<vmem>>, vector<14x30xf32>
    %cst_38 = arith.constant dense<0.000000e+00> : vector<14x60xf32>
    %66 = tpu.matmul %65, %62, %cst_38 {dimension_numbers = #tpu.dot_dimension_numbers<[1], [0], [0], [1], [0, 0, 1, 1], [], []>} : vector<14x30xf32>, vector<30x60xf32>, vector<14x60xf32> -> vector<14x60xf32>
    %c512 = arith.constant 512 : index
    %c0_39 = arith.constant 0 : index
    %67 = vector.load %arg2[%c512, %c0_39] : memref<1336x128xf32, #tpu.memory_space<vmem>>, vector<60x56xf32>
    %cst_40 = arith.constant dense<0.000000e+00> : vector<14x56xf32>
    %68 = tpu.matmul %64, %67, %cst_40 {dimension_numbers = #tpu.dot_dimension_numbers<[1], [0], [0], [1], [0, 0, 1, 1], [], []>} : vector<14x60xf32>, vector<60x56xf32>, vector<14x56xf32> -> vector<14x56xf32>
    %c576 = arith.constant 576 : index
    %c0_41 = arith.constant 0 : index
    %69 = vector.load %arg2[%c576, %c0_41] : memref<1336x128xf32, #tpu.memory_space<vmem>>, vector<60x56xf32>
    %cst_42 = arith.constant dense<0.000000e+00> : vector<14x56xf32>
    %70 = tpu.matmul %66, %69, %cst_42 {dimension_numbers = #tpu.dot_dimension_numbers<[1], [0], [0], [1], [0, 0, 1, 1], [], []>} : vector<14x60xf32>, vector<60x56xf32>, vector<14x56xf32> -> vector<14x56xf32>
    %71 = arith.addf %68, %70 : vector<14x56xf32>
    %c640 = arith.constant 640 : index
    %c0_43 = arith.constant 0 : index
    %72 = vector.load %arg2[%c640, %c0_43] : memref<1336x128xf32, #tpu.memory_space<vmem>>, vector<56x56xf32>
    %cst_44 = arith.constant dense<0.000000e+00> : vector<56xf32>
    %73 = vector.multi_reduction <add>, %71, %cst_44 [0] : vector<14x56xf32> to vector<56xf32>
    %74 = vector.shape_cast %73 : vector<56xf32> to vector<1x56xf32>
    %cst_45 = arith.constant dense<0.000000e+00> : vector<1x56xf32>
    %75 = tpu.matmul %74, %72, %cst_45 {dimension_numbers = #tpu.dot_dimension_numbers<[1], [0], [0], [1], [0, 0, 1, 1], [], []>} : vector<1x56xf32>, vector<56x56xf32>, vector<1x56xf32> -> vector<1x56xf32>
    %76 = vector.broadcast %75 : vector<1x56xf32> to vector<14x56xf32>
    %77 = arith.subf %71, %76 : vector<14x56xf32>
    %78 = arith.mulf %77, %77 : vector<14x56xf32>
    %cst_46 = arith.constant dense<0.000000e+00> : vector<56xf32>
    %79 = vector.multi_reduction <add>, %78, %cst_46 [0] : vector<14x56xf32> to vector<56xf32>
    %80 = vector.shape_cast %79 : vector<56xf32> to vector<1x56xf32>
    %cst_47 = arith.constant dense<0.000000e+00> : vector<1x56xf32>
    %81 = tpu.matmul %80, %72, %cst_47 {dimension_numbers = #tpu.dot_dimension_numbers<[1], [0], [0], [1], [0, 0, 1, 1], [], []>} : vector<1x56xf32>, vector<56x56xf32>, vector<1x56xf32> -> vector<1x56xf32>
    %cst_48 = arith.constant 9.99999974E-6 : f32
    %82 = vector.broadcast %cst_48 : f32 to vector<1x56xf32>
    %83 = arith.addf %81, %82 : vector<1x56xf32>
    %84 = math.rsqrt %83 : vector<1x56xf32>
    %c696 = arith.constant 696 : index
    %c0_49 = arith.constant 0 : index
    %85 = vector.load %arg2[%c696, %c0_49] : memref<1336x128xf32, #tpu.memory_space<vmem>>, vector<1x56xf32>
    %86 = arith.mulf %84, %85 : vector<1x56xf32>
    %87 = vector.broadcast %86 : vector<1x56xf32> to vector<14x56xf32>
    %88 = arith.mulf %77, %87 : vector<14x56xf32>
    %c704 = arith.constant 704 : index
    %c0_50 = arith.constant 0 : index
    %89 = vector.load %arg2[%c704, %c0_50] : memref<1336x128xf32, #tpu.memory_space<vmem>>, vector<1x56xf32>
    %90 = vector.broadcast %89 : vector<1x56xf32> to vector<14x56xf32>
    %91 = arith.addf %88, %90 : vector<14x56xf32>
    %cst_51 = arith.constant 0.000000e+00 : f32
    %92 = vector.broadcast %cst_51 : f32 to vector<14x56xf32>
    %93 = arith.maximumf %91, %92 : vector<14x56xf32>
    %c712 = arith.constant 712 : index
    %c0_52 = arith.constant 0 : index
    %94 = vector.load %arg2[%c712, %c0_52] : memref<1336x128xf32, #tpu.memory_space<vmem>>, vector<12x14xf32>
    %cst_53 = arith.constant dense<0.000000e+00> : vector<12x56xf32>
    %95 = tpu.matmul %94, %93, %cst_53 {dimension_numbers = #tpu.dot_dimension_numbers<[1], [0], [0], [1], [0, 0, 1, 1], [], []>} : vector<12x14xf32>, vector<14x56xf32>, vector<12x56xf32> -> vector<12x56xf32>
    %c728 = arith.constant 728 : index
    %c0_54 = arith.constant 0 : index
    %96 = vector.load %arg2[%c728, %c0_54] : memref<1336x128xf32, #tpu.memory_space<vmem>>, vector<12x14xf32>
    %cst_55 = arith.constant dense<0.000000e+00> : vector<12x56xf32>
    %97 = tpu.matmul %96, %93, %cst_55 {dimension_numbers = #tpu.dot_dimension_numbers<[1], [0], [0], [1], [0, 0, 1, 1], [], []>} : vector<12x14xf32>, vector<14x56xf32>, vector<12x56xf32> -> vector<12x56xf32>
    %c744 = arith.constant 744 : index
    %c0_56 = arith.constant 0 : index
    %98 = vector.load %arg2[%c744, %c0_56] : memref<1336x128xf32, #tpu.memory_space<vmem>>, vector<56x48xf32>
    %cst_57 = arith.constant dense<0.000000e+00> : vector<12x48xf32>
    %99 = tpu.matmul %95, %98, %cst_57 {dimension_numbers = #tpu.dot_dimension_numbers<[1], [0], [0], [1], [0, 0, 1, 1], [], []>} : vector<12x56xf32>, vector<56x48xf32>, vector<12x48xf32> -> vector<12x48xf32>
    %c800 = arith.constant 800 : index
    %c0_58 = arith.constant 0 : index
    %100 = vector.load %arg2[%c800, %c0_58] : memref<1336x128xf32, #tpu.memory_space<vmem>>, vector<56x48xf32>
    %cst_59 = arith.constant dense<0.000000e+00> : vector<12x48xf32>
    %101 = tpu.matmul %97, %100, %cst_59 {dimension_numbers = #tpu.dot_dimension_numbers<[1], [0], [0], [1], [0, 0, 1, 1], [], []>} : vector<12x56xf32>, vector<56x48xf32>, vector<12x48xf32> -> vector<12x48xf32>
    %102 = arith.addf %99, %101 : vector<12x48xf32>
    %c856 = arith.constant 856 : index
    %c0_60 = arith.constant 0 : index
    %103 = vector.load %arg2[%c856, %c0_60] : memref<1336x128xf32, #tpu.memory_space<vmem>>, vector<48x48xf32>
    %cst_61 = arith.constant dense<0.000000e+00> : vector<48xf32>
    %104 = vector.multi_reduction <add>, %102, %cst_61 [0] : vector<12x48xf32> to vector<48xf32>
    %105 = vector.shape_cast %104 : vector<48xf32> to vector<1x48xf32>
    %cst_62 = arith.constant dense<0.000000e+00> : vector<1x48xf32>
    %106 = tpu.matmul %105, %103, %cst_62 {dimension_numbers = #tpu.dot_dimension_numbers<[1], [0], [0], [1], [0, 0, 1, 1], [], []>} : vector<1x48xf32>, vector<48x48xf32>, vector<1x48xf32> -> vector<1x48xf32>
    %107 = vector.broadcast %106 : vector<1x48xf32> to vector<12x48xf32>
    %108 = arith.subf %102, %107 : vector<12x48xf32>
    %109 = arith.mulf %108, %108 : vector<12x48xf32>
    %cst_63 = arith.constant dense<0.000000e+00> : vector<48xf32>
    %110 = vector.multi_reduction <add>, %109, %cst_63 [0] : vector<12x48xf32> to vector<48xf32>
    %111 = vector.shape_cast %110 : vector<48xf32> to vector<1x48xf32>
    %cst_64 = arith.constant dense<0.000000e+00> : vector<1x48xf32>
    %112 = tpu.matmul %111, %103, %cst_64 {dimension_numbers = #tpu.dot_dimension_numbers<[1], [0], [0], [1], [0, 0, 1, 1], [], []>} : vector<1x48xf32>, vector<48x48xf32>, vector<1x48xf32> -> vector<1x48xf32>
    %cst_65 = arith.constant 9.99999974E-6 : f32
    %113 = vector.broadcast %cst_65 : f32 to vector<1x48xf32>
    %114 = arith.addf %112, %113 : vector<1x48xf32>
    %115 = math.rsqrt %114 : vector<1x48xf32>
    %c904 = arith.constant 904 : index
    %c0_66 = arith.constant 0 : index
    %116 = vector.load %arg2[%c904, %c0_66] : memref<1336x128xf32, #tpu.memory_space<vmem>>, vector<1x48xf32>
    %117 = arith.mulf %115, %116 : vector<1x48xf32>
    %118 = vector.broadcast %117 : vector<1x48xf32> to vector<12x48xf32>
    %119 = arith.mulf %108, %118 : vector<12x48xf32>
    %c912 = arith.constant 912 : index
    %c0_67 = arith.constant 0 : index
    %120 = vector.load %arg2[%c912, %c0_67] : memref<1336x128xf32, #tpu.memory_space<vmem>>, vector<1x48xf32>
    %121 = vector.broadcast %120 : vector<1x48xf32> to vector<12x48xf32>
    %122 = arith.addf %119, %121 : vector<12x48xf32>
    %cst_68 = arith.constant 0.000000e+00 : f32
    %123 = vector.broadcast %cst_68 : f32 to vector<12x48xf32>
    %124 = arith.maximumf %122, %123 : vector<12x48xf32>
    %c920 = arith.constant 920 : index
    %c0_69 = arith.constant 0 : index
    %125 = vector.load %arg2[%c920, %c0_69] : memref<1336x128xf32, #tpu.memory_space<vmem>>, vector<6x12xf32>
    %cst_70 = arith.constant dense<0.000000e+00> : vector<6x48xf32>
    %126 = tpu.matmul %125, %124, %cst_70 {dimension_numbers = #tpu.dot_dimension_numbers<[1], [0], [0], [1], [0, 0, 1, 1], [], []>} : vector<6x12xf32>, vector<12x48xf32>, vector<6x48xf32> -> vector<6x48xf32>
    %c928 = arith.constant 928 : index
    %c0_71 = arith.constant 0 : index
    %127 = vector.load %arg2[%c928, %c0_71] : memref<1336x128xf32, #tpu.memory_space<vmem>>, vector<6x12xf32>
    %cst_72 = arith.constant dense<0.000000e+00> : vector<6x48xf32>
    %128 = tpu.matmul %127, %124, %cst_72 {dimension_numbers = #tpu.dot_dimension_numbers<[1], [0], [0], [1], [0, 0, 1, 1], [], []>} : vector<6x12xf32>, vector<12x48xf32>, vector<6x48xf32> -> vector<6x48xf32>
    %c936 = arith.constant 936 : index
    %c0_73 = arith.constant 0 : index
    %129 = vector.load %arg2[%c936, %c0_73] : memref<1336x128xf32, #tpu.memory_space<vmem>>, vector<48x24xf32>
    %cst_74 = arith.constant dense<0.000000e+00> : vector<6x24xf32>
    %130 = tpu.matmul %126, %129, %cst_74 {dimension_numbers = #tpu.dot_dimension_numbers<[1], [0], [0], [1], [0, 0, 1, 1], [], []>} : vector<6x48xf32>, vector<48x24xf32>, vector<6x24xf32> -> vector<6x24xf32>
    %c984 = arith.constant 984 : index
    %c0_75 = arith.constant 0 : index
    %131 = vector.load %arg2[%c984, %c0_75] : memref<1336x128xf32, #tpu.memory_space<vmem>>, vector<48x24xf32>
    %cst_76 = arith.constant dense<0.000000e+00> : vector<6x24xf32>
    %132 = tpu.matmul %128, %131, %cst_76 {dimension_numbers = #tpu.dot_dimension_numbers<[1], [0], [0], [1], [0, 0, 1, 1], [], []>} : vector<6x48xf32>, vector<48x24xf32>, vector<6x24xf32> -> vector<6x24xf32>
    %133 = arith.addf %130, %132 : vector<6x24xf32>
    %c1032 = arith.constant 1032 : index
    %c0_77 = arith.constant 0 : index
    %134 = vector.load %arg2[%c1032, %c0_77] : memref<1336x128xf32, #tpu.memory_space<vmem>>, vector<24x24xf32>
    %cst_78 = arith.constant dense<0.000000e+00> : vector<24xf32>
    %135 = vector.multi_reduction <add>, %133, %cst_78 [0] : vector<6x24xf32> to vector<24xf32>
    %136 = vector.shape_cast %135 : vector<24xf32> to vector<1x24xf32>
    %cst_79 = arith.constant dense<0.000000e+00> : vector<1x24xf32>
    %137 = tpu.matmul %136, %134, %cst_79 {dimension_numbers = #tpu.dot_dimension_numbers<[1], [0], [0], [1], [0, 0, 1, 1], [], []>} : vector<1x24xf32>, vector<24x24xf32>, vector<1x24xf32> -> vector<1x24xf32>
    %138 = vector.broadcast %137 : vector<1x24xf32> to vector<6x24xf32>
    %139 = arith.subf %133, %138 : vector<6x24xf32>
    %140 = arith.mulf %139, %139 : vector<6x24xf32>
    %cst_80 = arith.constant dense<0.000000e+00> : vector<24xf32>
    %141 = vector.multi_reduction <add>, %140, %cst_80 [0] : vector<6x24xf32> to vector<24xf32>
    %142 = vector.shape_cast %141 : vector<24xf32> to vector<1x24xf32>
    %cst_81 = arith.constant dense<0.000000e+00> : vector<1x24xf32>
    %143 = tpu.matmul %142, %134, %cst_81 {dimension_numbers = #tpu.dot_dimension_numbers<[1], [0], [0], [1], [0, 0, 1, 1], [], []>} : vector<1x24xf32>, vector<24x24xf32>, vector<1x24xf32> -> vector<1x24xf32>
    %cst_82 = arith.constant 9.99999974E-6 : f32
    %144 = vector.broadcast %cst_82 : f32 to vector<1x24xf32>
    %145 = arith.addf %143, %144 : vector<1x24xf32>
    %146 = math.rsqrt %145 : vector<1x24xf32>
    %c1056 = arith.constant 1056 : index
    %c0_83 = arith.constant 0 : index
    %147 = vector.load %arg2[%c1056, %c0_83] : memref<1336x128xf32, #tpu.memory_space<vmem>>, vector<1x24xf32>
    %148 = arith.mulf %146, %147 : vector<1x24xf32>
    %149 = vector.broadcast %148 : vector<1x24xf32> to vector<6x24xf32>
    %150 = arith.mulf %139, %149 : vector<6x24xf32>
    %c1064 = arith.constant 1064 : index
    %c0_84 = arith.constant 0 : index
    %151 = vector.load %arg2[%c1064, %c0_84] : memref<1336x128xf32, #tpu.memory_space<vmem>>, vector<1x24xf32>
    %152 = vector.broadcast %151 : vector<1x24xf32> to vector<6x24xf32>
    %153 = arith.addf %150, %152 : vector<6x24xf32>
    %cst_85 = arith.constant 0.000000e+00 : f32
    %154 = vector.broadcast %cst_85 : f32 to vector<6x24xf32>
    %155 = arith.maximumf %153, %154 : vector<6x24xf32>
    %c1072 = arith.constant 1072 : index
    %c0_86 = arith.constant 0 : index
    %156 = vector.load %arg2[%c1072, %c0_86] : memref<1336x128xf32, #tpu.memory_space<vmem>>, vector<4x6xf32>
    %cst_87 = arith.constant dense<0.000000e+00> : vector<4x24xf32>
    %157 = tpu.matmul %156, %155, %cst_87 {dimension_numbers = #tpu.dot_dimension_numbers<[1], [0], [0], [1], [0, 0, 1, 1], [], []>} : vector<4x6xf32>, vector<6x24xf32>, vector<4x24xf32> -> vector<4x24xf32>
    %c1080 = arith.constant 1080 : index
    %c0_88 = arith.constant 0 : index
    %158 = vector.load %arg2[%c1080, %c0_88] : memref<1336x128xf32, #tpu.memory_space<vmem>>, vector<4x6xf32>
    %cst_89 = arith.constant dense<0.000000e+00> : vector<4x24xf32>
    %159 = tpu.matmul %158, %155, %cst_89 {dimension_numbers = #tpu.dot_dimension_numbers<[1], [0], [0], [1], [0, 0, 1, 1], [], []>} : vector<4x6xf32>, vector<6x24xf32>, vector<4x24xf32> -> vector<4x24xf32>
    %c1088 = arith.constant 1088 : index
    %c0_90 = arith.constant 0 : index
    %160 = vector.load %arg2[%c1088, %c0_90] : memref<1336x128xf32, #tpu.memory_space<vmem>>, vector<24x16xf32>
    %cst_91 = arith.constant dense<0.000000e+00> : vector<4x16xf32>
    %161 = tpu.matmul %157, %160, %cst_91 {dimension_numbers = #tpu.dot_dimension_numbers<[1], [0], [0], [1], [0, 0, 1, 1], [], []>} : vector<4x24xf32>, vector<24x16xf32>, vector<4x16xf32> -> vector<4x16xf32>
    %c1112 = arith.constant 1112 : index
    %c0_92 = arith.constant 0 : index
    %162 = vector.load %arg2[%c1112, %c0_92] : memref<1336x128xf32, #tpu.memory_space<vmem>>, vector<24x16xf32>
    %cst_93 = arith.constant dense<0.000000e+00> : vector<4x16xf32>
    %163 = tpu.matmul %159, %162, %cst_93 {dimension_numbers = #tpu.dot_dimension_numbers<[1], [0], [0], [1], [0, 0, 1, 1], [], []>} : vector<4x24xf32>, vector<24x16xf32>, vector<4x16xf32> -> vector<4x16xf32>
    %164 = arith.addf %161, %163 : vector<4x16xf32>
    %c1136 = arith.constant 1136 : index
    %c0_94 = arith.constant 0 : index
    %165 = vector.load %arg2[%c1136, %c0_94] : memref<1336x128xf32, #tpu.memory_space<vmem>>, vector<16x16xf32>
    %cst_95 = arith.constant dense<0.000000e+00> : vector<16xf32>
    %166 = vector.multi_reduction <add>, %164, %cst_95 [0] : vector<4x16xf32> to vector<16xf32>
    %167 = vector.shape_cast %166 : vector<16xf32> to vector<1x16xf32>
    %cst_96 = arith.constant dense<0.000000e+00> : vector<1x16xf32>
    %168 = tpu.matmul %167, %165, %cst_96 {dimension_numbers = #tpu.dot_dimension_numbers<[1], [0], [0], [1], [0, 0, 1, 1], [], []>} : vector<1x16xf32>, vector<16x16xf32>, vector<1x16xf32> -> vector<1x16xf32>
    %169 = vector.broadcast %168 : vector<1x16xf32> to vector<4x16xf32>
    %170 = arith.subf %164, %169 : vector<4x16xf32>
    %171 = arith.mulf %170, %170 : vector<4x16xf32>
    %cst_97 = arith.constant dense<0.000000e+00> : vector<16xf32>
    %172 = vector.multi_reduction <add>, %171, %cst_97 [0] : vector<4x16xf32> to vector<16xf32>
    %173 = vector.shape_cast %172 : vector<16xf32> to vector<1x16xf32>
    %cst_98 = arith.constant dense<0.000000e+00> : vector<1x16xf32>
    %174 = tpu.matmul %173, %165, %cst_98 {dimension_numbers = #tpu.dot_dimension_numbers<[1], [0], [0], [1], [0, 0, 1, 1], [], []>} : vector<1x16xf32>, vector<16x16xf32>, vector<1x16xf32> -> vector<1x16xf32>
    %cst_99 = arith.constant 9.99999974E-6 : f32
    %175 = vector.broadcast %cst_99 : f32 to vector<1x16xf32>
    %176 = arith.addf %174, %175 : vector<1x16xf32>
    %177 = math.rsqrt %176 : vector<1x16xf32>
    %c1152 = arith.constant 1152 : index
    %c0_100 = arith.constant 0 : index
    %178 = vector.load %arg2[%c1152, %c0_100] : memref<1336x128xf32, #tpu.memory_space<vmem>>, vector<1x16xf32>
    %179 = arith.mulf %177, %178 : vector<1x16xf32>
    %180 = vector.broadcast %179 : vector<1x16xf32> to vector<4x16xf32>
    %181 = arith.mulf %170, %180 : vector<4x16xf32>
    %c1160 = arith.constant 1160 : index
    %c0_101 = arith.constant 0 : index
    %182 = vector.load %arg2[%c1160, %c0_101] : memref<1336x128xf32, #tpu.memory_space<vmem>>, vector<1x16xf32>
    %183 = vector.broadcast %182 : vector<1x16xf32> to vector<4x16xf32>
    %184 = arith.addf %181, %183 : vector<4x16xf32>
    %cst_102 = arith.constant 0.000000e+00 : f32
    %185 = vector.broadcast %cst_102 : f32 to vector<4x16xf32>
    %186 = arith.maximumf %184, %185 : vector<4x16xf32>
    %c1168 = arith.constant 1168 : index
    %c0_103 = arith.constant 0 : index
    %187 = vector.load %arg2[%c1168, %c0_103] : memref<1336x128xf32, #tpu.memory_space<vmem>>, vector<2x4xf32>
    %cst_104 = arith.constant dense<0.000000e+00> : vector<2x16xf32>
    %188 = tpu.matmul %187, %186, %cst_104 {dimension_numbers = #tpu.dot_dimension_numbers<[1], [0], [0], [1], [0, 0, 1, 1], [], []>} : vector<2x4xf32>, vector<4x16xf32>, vector<2x16xf32> -> vector<2x16xf32>
    %c1176 = arith.constant 1176 : index
    %c0_105 = arith.constant 0 : index
    %189 = vector.load %arg2[%c1176, %c0_105] : memref<1336x128xf32, #tpu.memory_space<vmem>>, vector<16x8xf32>
    %cst_106 = arith.constant dense<0.000000e+00> : vector<2x8xf32>
    %190 = tpu.matmul %188, %189, %cst_106 {dimension_numbers = #tpu.dot_dimension_numbers<[1], [0], [0], [1], [0, 0, 1, 1], [], []>} : vector<2x16xf32>, vector<16x8xf32>, vector<2x8xf32> -> vector<2x8xf32>
    %c1192 = arith.constant 1192 : index
    %c0_107 = arith.constant 0 : index
    %191 = vector.load %arg2[%c1192, %c0_107] : memref<1336x128xf32, #tpu.memory_space<vmem>>, vector<1x8xf32>
    %192 = vector.broadcast %191 : vector<1x8xf32> to vector<2x8xf32>
    %193 = arith.addf %190, %192 : vector<2x8xf32>
    %c1200 = arith.constant 1200 : index
    %c0_108 = arith.constant 0 : index
    %194 = vector.load %arg2[%c1200, %c0_108] : memref<1336x128xf32, #tpu.memory_space<vmem>>, vector<8x64xf32>
    %cst_109 = arith.constant dense<0.000000e+00> : vector<2x64xf32>
    %195 = tpu.matmul %193, %194, %cst_109 {dimension_numbers = #tpu.dot_dimension_numbers<[1], [0], [0], [1], [0, 0, 1, 1], [], []>} : vector<2x8xf32>, vector<8x64xf32>, vector<2x64xf32> -> vector<2x64xf32>
    %c1208 = arith.constant 1208 : index
    %c0_110 = arith.constant 0 : index
    %196 = vector.load %arg2[%c1208, %c0_110] : memref<1336x128xf32, #tpu.memory_space<vmem>>, vector<1x64xf32>
    %197 = vector.broadcast %196 : vector<1x64xf32> to vector<2x64xf32>
    %198 = arith.addf %195, %197 : vector<2x64xf32>
    %199 = math.tanh %198 : vector<2x64xf32>
    %200 = vector.extract_strided_slice %199 {offsets = [0, 0], sizes = [2, 32], strides = [1, 1]} : vector<2x64xf32> to vector<2x32xf32>
    %201 = vector.extract_strided_slice %199 {offsets = [0, 32], sizes = [2, 32], strides = [1, 1]} : vector<2x64xf32> to vector<2x32xf32>
    %c1224 = arith.constant 1224 : index
    %c0_111 = arith.constant 0 : index
    %202 = vector.load %arg2[%c1224, %c0_111] : memref<1336x128xf32, #tpu.memory_space<vmem>>, vector<8x128xf32>
    %cst_112 = arith.constant dense<0.000000e+00> : vector<2x128xf32>
    %203 = tpu.matmul %193, %202, %cst_112 {dimension_numbers = #tpu.dot_dimension_numbers<[1], [0], [0], [1], [0, 0, 1, 1], [], []>} : vector<2x8xf32>, vector<8x128xf32>, vector<2x128xf32> -> vector<2x128xf32>
    %c1264 = arith.constant 1264 : index
    %c0_113 = arith.constant 0 : index
    %204 = vector.load %arg2[%c1264, %c0_113] : memref<1336x128xf32, #tpu.memory_space<vmem>>, vector<1x128xf32>
    %205 = vector.broadcast %204 : vector<1x128xf32> to vector<2x128xf32>
    %206 = arith.addf %203, %205 : vector<2x128xf32>
    %c0_114 = arith.constant 0 : index
    %c0_115 = arith.constant 0 : index
    %207 = vector.load %arg1[%c0_114, %c0_115] : memref<24x5xf32, #tpu.memory_space<vmem>>, vector<24x5xf32>
    %c1216 = arith.constant 1216 : index
    %c0_116 = arith.constant 0 : index
    %208 = vector.load %arg2[%c1216, %c0_116] : memref<1336x128xf32, #tpu.memory_space<vmem>>, vector<5x128xf32>
    %cst_117 = arith.constant dense<0.000000e+00> : vector<24x128xf32>
    %209 = tpu.matmul %207, %208, %cst_117 {dimension_numbers = #tpu.dot_dimension_numbers<[1], [0], [0], [1], [0, 0, 1, 1], [], []>} : vector<24x5xf32>, vector<5x128xf32>, vector<24x128xf32> -> vector<24x128xf32>
    %c1272 = arith.constant 1272 : index
    %c0_118 = arith.constant 0 : index
    %210 = vector.load %arg2[%c1272, %c0_118] : memref<1336x128xf32, #tpu.memory_space<vmem>>, vector<24x2xf32>
    %cst_119 = arith.constant dense<0.000000e+00> : vector<24x128xf32>
    %211 = tpu.matmul %210, %206, %cst_119 {dimension_numbers = #tpu.dot_dimension_numbers<[1], [0], [0], [1], [0, 0, 1, 1], [], []>} : vector<24x2xf32>, vector<2x128xf32>, vector<24x128xf32> -> vector<24x128xf32>
    %212 = arith.addf %209, %211 : vector<24x128xf32>
    %c0_120 = arith.constant 0 : index
    %c0_121 = arith.constant 0 : index
    %213 = vector.load %arg4[%c0_120, %c0_121] : memref<24x128xf32, #tpu.memory_space<vmem>>, vector<24x128xf32>
    tpu.vector_store %arg4[%c0_120, %c0_121], %212 {strides = array<i32>} : memref<24x128xf32, #tpu.memory_space<vmem>>, vector<24x128xf32>,
    %cst_122 = arith.constant 0.000000e+00 : f32
    %214 = vector.broadcast %cst_122 : f32 to vector<24x32xf32>
    %c0_123 = arith.constant 0 : index
    %c0_124 = arith.constant 0 : index
    %215 = vector.load %arg5[%c0_123, %c0_124] : memref<24x32xf32, #tpu.memory_space<vmem>>, vector<24x32xf32>
    tpu.vector_store %arg5[%c0_123, %c0_124], %214 {strides = array<i32>} : memref<24x32xf32, #tpu.memory_space<vmem>>, vector<24x32xf32>,
    %c1232 = arith.constant 1232 : index
    %c0_125 = arith.constant 0 : index
    %216 = vector.load %arg2[%c1232, %c0_125] : memref<1336x128xf32, #tpu.memory_space<vmem>>, vector<32x128xf32>
    %217 = arith.truncf %216 : vector<32x128xf32> to vector<32x128xbf16>
    %c0_126 = arith.constant 0 : index
    %c0_127 = arith.constant 0 : index
    %218 = vector.load %arg4[%c0_126, %c0_127] : memref<24x128xf32, #tpu.memory_space<vmem>>, vector<2x128xf32>
    %219 = arith.truncf %200 : vector<2x32xf32> to vector<2x32xbf16>
    %cst_128 = arith.constant dense<0.000000e+00> : vector<2x128xf32>
    %220 = tpu.matmul %219, %217, %cst_128 {dimension_numbers = #tpu.dot_dimension_numbers<[1], [0], [0], [1], [0, 0, 1, 1], [], []>} : vector<2x32xbf16>, vector<32x128xbf16>, vector<2x128xf32> -> vector<2x128xf32>
    %221 = arith.addf %218, %220 : vector<2x128xf32>
    %222 = vector.extract_strided_slice %221 {offsets = [0, 0], sizes = [2, 32], strides = [1, 1]} : vector<2x128xf32> to vector<2x32xf32>
    %cst_129 = arith.constant 0.000000e+00 : f32
    %223 = vector.broadcast %cst_129 : f32 to vector<2x32xf32>
    %224 = arith.subf %223, %222 : vector<2x32xf32>
    %225 = math.exp %224 : vector<2x32xf32>
    %cst_130 = arith.constant 1.000000e+00 : f32
    %226 = vector.broadcast %cst_130 : f32 to vector<2x32xf32>
    %227 = arith.addf %226, %225 : vector<2x32xf32>
    %cst_131 = arith.constant 1.000000e+00 : f32
    %228 = vector.broadcast %cst_131 : f32 to vector<2x32xf32>
    %229 = arith.divf %228, %227 : vector<2x32xf32>
    %230 = vector.extract_strided_slice %221 {offsets = [0, 32], sizes = [2, 32], strides = [1, 1]} : vector<2x128xf32> to vector<2x32xf32>
    %cst_132 = arith.constant 0.000000e+00 : f32
    %231 = vector.broadcast %cst_132 : f32 to vector<2x32xf32>
    %232 = arith.subf %231, %230 : vector<2x32xf32>
    %233 = math.exp %232 : vector<2x32xf32>
    %cst_133 = arith.constant 1.000000e+00 : f32
    %234 = vector.broadcast %cst_133 : f32 to vector<2x32xf32>
    %235 = arith.addf %234, %233 : vector<2x32xf32>
    %cst_134 = arith.constant 1.000000e+00 : f32
    %236 = vector.broadcast %cst_134 : f32 to vector<2x32xf32>
    %237 = arith.divf %236, %235 : vector<2x32xf32>
    %238 = vector.extract_strided_slice %221 {offsets = [0, 64], sizes = [2, 32], strides = [1, 1]} : vector<2x128xf32> to vector<2x32xf32>
    %239 = math.tanh %238 : vector<2x32xf32>
    %240 = vector.extract_strided_slice %221 {offsets = [0, 96], sizes = [2, 32], strides = [1, 1]} : vector<2x128xf32> to vector<2x32xf32>
    %cst_135 = arith.constant 0.000000e+00 : f32
    %241 = vector.broadcast %cst_135 : f32 to vector<2x32xf32>
    %242 = arith.subf %241, %240 : vector<2x32xf32>
    %243 = math.exp %242 : vector<2x32xf32>
    %cst_136 = arith.constant 1.000000e+00 : f32
    %244 = vector.broadcast %cst_136 : f32 to vector<2x32xf32>
    %245 = arith.addf %244, %243 : vector<2x32xf32>
    %cst_137 = arith.constant 1.000000e+00 : f32
    %246 = vector.broadcast %cst_137 : f32 to vector<2x32xf32>
    %247 = arith.divf %246, %245 : vector<2x32xf32>
    %248 = arith.mulf %237, %201 : vector<2x32xf32>
    %249 = arith.mulf %229, %239 : vector<2x32xf32>
    %250 = arith.addf %248, %249 : vector<2x32xf32>
    %251 = math.tanh %250 : vector<2x32xf32>
    %252 = arith.mulf %247, %251 : vector<2x32xf32>
    %c0_138 = arith.constant 0 : index
    %c0_139 = arith.constant 0 : index
    %253 = vector.load %arg5[%c0_138, %c0_139] : memref<24x32xf32, #tpu.memory_space<vmem>>, vector<2x32xf32>
    tpu.vector_store %arg5[%c0_138, %c0_139], %252 {strides = array<i32>} : memref<24x32xf32, #tpu.memory_space<vmem>>, vector<2x32xf32>,
    %c2 = arith.constant 2 : index
    %c0_140 = arith.constant 0 : index
    %254 = vector.load %arg4[%c2, %c0_140] : memref<24x128xf32, #tpu.memory_space<vmem>>, vector<2x128xf32>
    %255 = arith.truncf %252 : vector<2x32xf32> to vector<2x32xbf16>
    %cst_141 = arith.constant dense<0.000000e+00> : vector<2x128xf32>
    %256 = tpu.matmul %255, %217, %cst_141 {dimension_numbers = #tpu.dot_dimension_numbers<[1], [0], [0], [1], [0, 0, 1, 1], [], []>} : vector<2x32xbf16>, vector<32x128xbf16>, vector<2x128xf32> -> vector<2x128xf32>
    %257 = arith.addf %254, %256 : vector<2x128xf32>
    %258 = vector.extract_strided_slice %257 {offsets = [0, 0], sizes = [2, 32], strides = [1, 1]} : vector<2x128xf32> to vector<2x32xf32>
    %cst_142 = arith.constant 0.000000e+00 : f32
    %259 = vector.broadcast %cst_142 : f32 to vector<2x32xf32>
    %260 = arith.subf %259, %258 : vector<2x32xf32>
    %261 = math.exp %260 : vector<2x32xf32>
    %cst_143 = arith.constant 1.000000e+00 : f32
    %262 = vector.broadcast %cst_143 : f32 to vector<2x32xf32>
    %263 = arith.addf %262, %261 : vector<2x32xf32>
    %cst_144 = arith.constant 1.000000e+00 : f32
    %264 = vector.broadcast %cst_144 : f32 to vector<2x32xf32>
    %265 = arith.divf %264, %263 : vector<2x32xf32>
    %266 = vector.extract_strided_slice %257 {offsets = [0, 32], sizes = [2, 32], strides = [1, 1]} : vector<2x128xf32> to vector<2x32xf32>
    %cst_145 = arith.constant 0.000000e+00 : f32
    %267 = vector.broadcast %cst_145 : f32 to vector<2x32xf32>
    %268 = arith.subf %267, %266 : vector<2x32xf32>
    %269 = math.exp %268 : vector<2x32xf32>
    %cst_146 = arith.constant 1.000000e+00 : f32
    %270 = vector.broadcast %cst_146 : f32 to vector<2x32xf32>
    %271 = arith.addf %270, %269 : vector<2x32xf32>
    %cst_147 = arith.constant 1.000000e+00 : f32
    %272 = vector.broadcast %cst_147 : f32 to vector<2x32xf32>
    %273 = arith.divf %272, %271 : vector<2x32xf32>
    %274 = vector.extract_strided_slice %257 {offsets = [0, 64], sizes = [2, 32], strides = [1, 1]} : vector<2x128xf32> to vector<2x32xf32>
    %275 = math.tanh %274 : vector<2x32xf32>
    %276 = vector.extract_strided_slice %257 {offsets = [0, 96], sizes = [2, 32], strides = [1, 1]} : vector<2x128xf32> to vector<2x32xf32>
    %cst_148 = arith.constant 0.000000e+00 : f32
    %277 = vector.broadcast %cst_148 : f32 to vector<2x32xf32>
    %278 = arith.subf %277, %276 : vector<2x32xf32>
    %279 = math.exp %278 : vector<2x32xf32>
    %cst_149 = arith.constant 1.000000e+00 : f32
    %280 = vector.broadcast %cst_149 : f32 to vector<2x32xf32>
    %281 = arith.addf %280, %279 : vector<2x32xf32>
    %cst_150 = arith.constant 1.000000e+00 : f32
    %282 = vector.broadcast %cst_150 : f32 to vector<2x32xf32>
    %283 = arith.divf %282, %281 : vector<2x32xf32>
    %284 = arith.mulf %273, %250 : vector<2x32xf32>
    %285 = arith.mulf %265, %275 : vector<2x32xf32>
    %286 = arith.addf %284, %285 : vector<2x32xf32>
    %287 = math.tanh %286 : vector<2x32xf32>
    %288 = arith.mulf %283, %287 : vector<2x32xf32>
    %c2_151 = arith.constant 2 : index
    %c0_152 = arith.constant 0 : index
    %289 = vector.load %arg5[%c2_151, %c0_152] : memref<24x32xf32, #tpu.memory_space<vmem>>, vector<2x32xf32>
    tpu.vector_store %arg5[%c2_151, %c0_152], %288 {strides = array<i32>} : memref<24x32xf32, #tpu.memory_space<vmem>>, vector<2x32xf32>,
    %c4 = arith.constant 4 : index
    %c0_153 = arith.constant 0 : index
    %290 = vector.load %arg4[%c4, %c0_153] : memref<24x128xf32, #tpu.memory_space<vmem>>, vector<2x128xf32>
    %291 = arith.truncf %288 : vector<2x32xf32> to vector<2x32xbf16>
    %cst_154 = arith.constant dense<0.000000e+00> : vector<2x128xf32>
    %292 = tpu.matmul %291, %217, %cst_154 {dimension_numbers = #tpu.dot_dimension_numbers<[1], [0], [0], [1], [0, 0, 1, 1], [], []>} : vector<2x32xbf16>, vector<32x128xbf16>, vector<2x128xf32> -> vector<2x128xf32>
    %293 = arith.addf %290, %292 : vector<2x128xf32>
    %294 = vector.extract_strided_slice %293 {offsets = [0, 0], sizes = [2, 32], strides = [1, 1]} : vector<2x128xf32> to vector<2x32xf32>
    %cst_155 = arith.constant 0.000000e+00 : f32
    %295 = vector.broadcast %cst_155 : f32 to vector<2x32xf32>
    %296 = arith.subf %295, %294 : vector<2x32xf32>
    %297 = math.exp %296 : vector<2x32xf32>
    %cst_156 = arith.constant 1.000000e+00 : f32
    %298 = vector.broadcast %cst_156 : f32 to vector<2x32xf32>
    %299 = arith.addf %298, %297 : vector<2x32xf32>
    %cst_157 = arith.constant 1.000000e+00 : f32
    %300 = vector.broadcast %cst_157 : f32 to vector<2x32xf32>
    %301 = arith.divf %300, %299 : vector<2x32xf32>
    %302 = vector.extract_strided_slice %293 {offsets = [0, 32], sizes = [2, 32], strides = [1, 1]} : vector<2x128xf32> to vector<2x32xf32>
    %cst_158 = arith.constant 0.000000e+00 : f32
    %303 = vector.broadcast %cst_158 : f32 to vector<2x32xf32>
    %304 = arith.subf %303, %302 : vector<2x32xf32>
    %305 = math.exp %304 : vector<2x32xf32>
    %cst_159 = arith.constant 1.000000e+00 : f32
    %306 = vector.broadcast %cst_159 : f32 to vector<2x32xf32>
    %307 = arith.addf %306, %305 : vector<2x32xf32>
    %cst_160 = arith.constant 1.000000e+00 : f32
    %308 = vector.broadcast %cst_160 : f32 to vector<2x32xf32>
    %309 = arith.divf %308, %307 : vector<2x32xf32>
    %310 = vector.extract_strided_slice %293 {offsets = [0, 64], sizes = [2, 32], strides = [1, 1]} : vector<2x128xf32> to vector<2x32xf32>
    %311 = math.tanh %310 : vector<2x32xf32>
    %312 = vector.extract_strided_slice %293 {offsets = [0, 96], sizes = [2, 32], strides = [1, 1]} : vector<2x128xf32> to vector<2x32xf32>
    %cst_161 = arith.constant 0.000000e+00 : f32
    %313 = vector.broadcast %cst_161 : f32 to vector<2x32xf32>
    %314 = arith.subf %313, %312 : vector<2x32xf32>
    %315 = math.exp %314 : vector<2x32xf32>
    %cst_162 = arith.constant 1.000000e+00 : f32
    %316 = vector.broadcast %cst_162 : f32 to vector<2x32xf32>
    %317 = arith.addf %316, %315 : vector<2x32xf32>
    %cst_163 = arith.constant 1.000000e+00 : f32
    %318 = vector.broadcast %cst_163 : f32 to vector<2x32xf32>
    %319 = arith.divf %318, %317 : vector<2x32xf32>
    %320 = arith.mulf %309, %286 : vector<2x32xf32>
    %321 = arith.mulf %301, %311 : vector<2x32xf32>
    %322 = arith.addf %320, %321 : vector<2x32xf32>
    %323 = math.tanh %322 : vector<2x32xf32>
    %324 = arith.mulf %319, %323 : vector<2x32xf32>
    %c4_164 = arith.constant 4 : index
    %c0_165 = arith.constant 0 : index
    %325 = vector.load %arg5[%c4_164, %c0_165] : memref<24x32xf32, #tpu.memory_space<vmem>>, vector<2x32xf32>
    tpu.vector_store %arg5[%c4_164, %c0_165], %324 {strides = array<i32>} : memref<24x32xf32, #tpu.memory_space<vmem>>, vector<2x32xf32>,
    %c6 = arith.constant 6 : index
    %c0_166 = arith.constant 0 : index
    %326 = vector.load %arg4[%c6, %c0_166] : memref<24x128xf32, #tpu.memory_space<vmem>>, vector<2x128xf32>
    %327 = arith.truncf %324 : vector<2x32xf32> to vector<2x32xbf16>
    %cst_167 = arith.constant dense<0.000000e+00> : vector<2x128xf32>
    %328 = tpu.matmul %327, %217, %cst_167 {dimension_numbers = #tpu.dot_dimension_numbers<[1], [0], [0], [1], [0, 0, 1, 1], [], []>} : vector<2x32xbf16>, vector<32x128xbf16>, vector<2x128xf32> -> vector<2x128xf32>
    %329 = arith.addf %326, %328 : vector<2x128xf32>
    %330 = vector.extract_strided_slice %329 {offsets = [0, 0], sizes = [2, 32], strides = [1, 1]} : vector<2x128xf32> to vector<2x32xf32>
    %cst_168 = arith.constant 0.000000e+00 : f32
    %331 = vector.broadcast %cst_168 : f32 to vector<2x32xf32>
    %332 = arith.subf %331, %330 : vector<2x32xf32>
    %333 = math.exp %332 : vector<2x32xf32>
    %cst_169 = arith.constant 1.000000e+00 : f32
    %334 = vector.broadcast %cst_169 : f32 to vector<2x32xf32>
    %335 = arith.addf %334, %333 : vector<2x32xf32>
    %cst_170 = arith.constant 1.000000e+00 : f32
    %336 = vector.broadcast %cst_170 : f32 to vector<2x32xf32>
    %337 = arith.divf %336, %335 : vector<2x32xf32>
    %338 = vector.extract_strided_slice %329 {offsets = [0, 32], sizes = [2, 32], strides = [1, 1]} : vector<2x128xf32> to vector<2x32xf32>
    %cst_171 = arith.constant 0.000000e+00 : f32
    %339 = vector.broadcast %cst_171 : f32 to vector<2x32xf32>
    %340 = arith.subf %339, %338 : vector<2x32xf32>
    %341 = math.exp %340 : vector<2x32xf32>
    %cst_172 = arith.constant 1.000000e+00 : f32
    %342 = vector.broadcast %cst_172 : f32 to vector<2x32xf32>
    %343 = arith.addf %342, %341 : vector<2x32xf32>
    %cst_173 = arith.constant 1.000000e+00 : f32
    %344 = vector.broadcast %cst_173 : f32 to vector<2x32xf32>
    %345 = arith.divf %344, %343 : vector<2x32xf32>
    %346 = vector.extract_strided_slice %329 {offsets = [0, 64], sizes = [2, 32], strides = [1, 1]} : vector<2x128xf32> to vector<2x32xf32>
    %347 = math.tanh %346 : vector<2x32xf32>
    %348 = vector.extract_strided_slice %329 {offsets = [0, 96], sizes = [2, 32], strides = [1, 1]} : vector<2x128xf32> to vector<2x32xf32>
    %cst_174 = arith.constant 0.000000e+00 : f32
    %349 = vector.broadcast %cst_174 : f32 to vector<2x32xf32>
    %350 = arith.subf %349, %348 : vector<2x32xf32>
    %351 = math.exp %350 : vector<2x32xf32>
    %cst_175 = arith.constant 1.000000e+00 : f32
    %352 = vector.broadcast %cst_175 : f32 to vector<2x32xf32>
    %353 = arith.addf %352, %351 : vector<2x32xf32>
    %cst_176 = arith.constant 1.000000e+00 : f32
    %354 = vector.broadcast %cst_176 : f32 to vector<2x32xf32>
    %355 = arith.divf %354, %353 : vector<2x32xf32>
    %356 = arith.mulf %345, %322 : vector<2x32xf32>
    %357 = arith.mulf %337, %347 : vector<2x32xf32>
    %358 = arith.addf %356, %357 : vector<2x32xf32>
    %359 = math.tanh %358 : vector<2x32xf32>
    %360 = arith.mulf %355, %359 : vector<2x32xf32>
    %c6_177 = arith.constant 6 : index
    %c0_178 = arith.constant 0 : index
    %361 = vector.load %arg5[%c6_177, %c0_178] : memref<24x32xf32, #tpu.memory_space<vmem>>, vector<2x32xf32>
    tpu.vector_store %arg5[%c6_177, %c0_178], %360 {strides = array<i32>} : memref<24x32xf32, #tpu.memory_space<vmem>>, vector<2x32xf32>,
    %c8 = arith.constant 8 : index
    %c0_179 = arith.constant 0 : index
    %362 = vector.load %arg4[%c8, %c0_179] : memref<24x128xf32, #tpu.memory_space<vmem>>, vector<2x128xf32>
    %363 = arith.truncf %360 : vector<2x32xf32> to vector<2x32xbf16>
    %cst_180 = arith.constant dense<0.000000e+00> : vector<2x128xf32>
    %364 = tpu.matmul %363, %217, %cst_180 {dimension_numbers = #tpu.dot_dimension_numbers<[1], [0], [0], [1], [0, 0, 1, 1], [], []>} : vector<2x32xbf16>, vector<32x128xbf16>, vector<2x128xf32> -> vector<2x128xf32>
    %365 = arith.addf %362, %364 : vector<2x128xf32>
    %366 = vector.extract_strided_slice %365 {offsets = [0, 0], sizes = [2, 32], strides = [1, 1]} : vector<2x128xf32> to vector<2x32xf32>
    %cst_181 = arith.constant 0.000000e+00 : f32
    %367 = vector.broadcast %cst_181 : f32 to vector<2x32xf32>
    %368 = arith.subf %367, %366 : vector<2x32xf32>
    %369 = math.exp %368 : vector<2x32xf32>
    %cst_182 = arith.constant 1.000000e+00 : f32
    %370 = vector.broadcast %cst_182 : f32 to vector<2x32xf32>
    %371 = arith.addf %370, %369 : vector<2x32xf32>
    %cst_183 = arith.constant 1.000000e+00 : f32
    %372 = vector.broadcast %cst_183 : f32 to vector<2x32xf32>
    %373 = arith.divf %372, %371 : vector<2x32xf32>
    %374 = vector.extract_strided_slice %365 {offsets = [0, 32], sizes = [2, 32], strides = [1, 1]} : vector<2x128xf32> to vector<2x32xf32>
    %cst_184 = arith.constant 0.000000e+00 : f32
    %375 = vector.broadcast %cst_184 : f32 to vector<2x32xf32>
    %376 = arith.subf %375, %374 : vector<2x32xf32>
    %377 = math.exp %376 : vector<2x32xf32>
    %cst_185 = arith.constant 1.000000e+00 : f32
    %378 = vector.broadcast %cst_185 : f32 to vector<2x32xf32>
    %379 = arith.addf %378, %377 : vector<2x32xf32>
    %cst_186 = arith.constant 1.000000e+00 : f32
    %380 = vector.broadcast %cst_186 : f32 to vector<2x32xf32>
    %381 = arith.divf %380, %379 : vector<2x32xf32>
    %382 = vector.extract_strided_slice %365 {offsets = [0, 64], sizes = [2, 32], strides = [1, 1]} : vector<2x128xf32> to vector<2x32xf32>
    %383 = math.tanh %382 : vector<2x32xf32>
    %384 = vector.extract_strided_slice %365 {offsets = [0, 96], sizes = [2, 32], strides = [1, 1]} : vector<2x128xf32> to vector<2x32xf32>
    %cst_187 = arith.constant 0.000000e+00 : f32
    %385 = vector.broadcast %cst_187 : f32 to vector<2x32xf32>
    %386 = arith.subf %385, %384 : vector<2x32xf32>
    %387 = math.exp %386 : vector<2x32xf32>
    %cst_188 = arith.constant 1.000000e+00 : f32
    %388 = vector.broadcast %cst_188 : f32 to vector<2x32xf32>
    %389 = arith.addf %388, %387 : vector<2x32xf32>
    %cst_189 = arith.constant 1.000000e+00 : f32
    %390 = vector.broadcast %cst_189 : f32 to vector<2x32xf32>
    %391 = arith.divf %390, %389 : vector<2x32xf32>
    %392 = arith.mulf %381, %358 : vector<2x32xf32>
    %393 = arith.mulf %373, %383 : vector<2x32xf32>
    %394 = arith.addf %392, %393 : vector<2x32xf32>
    %395 = math.tanh %394 : vector<2x32xf32>
    %396 = arith.mulf %391, %395 : vector<2x32xf32>
    %c8_190 = arith.constant 8 : index
    %c0_191 = arith.constant 0 : index
    %397 = vector.load %arg5[%c8_190, %c0_191] : memref<24x32xf32, #tpu.memory_space<vmem>>, vector<2x32xf32>
    tpu.vector_store %arg5[%c8_190, %c0_191], %396 {strides = array<i32>} : memref<24x32xf32, #tpu.memory_space<vmem>>, vector<2x32xf32>,
    %c10 = arith.constant 10 : index
    %c0_192 = arith.constant 0 : index
    %398 = vector.load %arg4[%c10, %c0_192] : memref<24x128xf32, #tpu.memory_space<vmem>>, vector<2x128xf32>
    %399 = arith.truncf %396 : vector<2x32xf32> to vector<2x32xbf16>
    %cst_193 = arith.constant dense<0.000000e+00> : vector<2x128xf32>
    %400 = tpu.matmul %399, %217, %cst_193 {dimension_numbers = #tpu.dot_dimension_numbers<[1], [0], [0], [1], [0, 0, 1, 1], [], []>} : vector<2x32xbf16>, vector<32x128xbf16>, vector<2x128xf32> -> vector<2x128xf32>
    %401 = arith.addf %398, %400 : vector<2x128xf32>
    %402 = vector.extract_strided_slice %401 {offsets = [0, 0], sizes = [2, 32], strides = [1, 1]} : vector<2x128xf32> to vector<2x32xf32>
    %cst_194 = arith.constant 0.000000e+00 : f32
    %403 = vector.broadcast %cst_194 : f32 to vector<2x32xf32>
    %404 = arith.subf %403, %402 : vector<2x32xf32>
    %405 = math.exp %404 : vector<2x32xf32>
    %cst_195 = arith.constant 1.000000e+00 : f32
    %406 = vector.broadcast %cst_195 : f32 to vector<2x32xf32>
    %407 = arith.addf %406, %405 : vector<2x32xf32>
    %cst_196 = arith.constant 1.000000e+00 : f32
    %408 = vector.broadcast %cst_196 : f32 to vector<2x32xf32>
    %409 = arith.divf %408, %407 : vector<2x32xf32>
    %410 = vector.extract_strided_slice %401 {offsets = [0, 32], sizes = [2, 32], strides = [1, 1]} : vector<2x128xf32> to vector<2x32xf32>
    %cst_197 = arith.constant 0.000000e+00 : f32
    %411 = vector.broadcast %cst_197 : f32 to vector<2x32xf32>
    %412 = arith.subf %411, %410 : vector<2x32xf32>
    %413 = math.exp %412 : vector<2x32xf32>
    %cst_198 = arith.constant 1.000000e+00 : f32
    %414 = vector.broadcast %cst_198 : f32 to vector<2x32xf32>
    %415 = arith.addf %414, %413 : vector<2x32xf32>
    %cst_199 = arith.constant 1.000000e+00 : f32
    %416 = vector.broadcast %cst_199 : f32 to vector<2x32xf32>
    %417 = arith.divf %416, %415 : vector<2x32xf32>
    %418 = vector.extract_strided_slice %401 {offsets = [0, 64], sizes = [2, 32], strides = [1, 1]} : vector<2x128xf32> to vector<2x32xf32>
    %419 = math.tanh %418 : vector<2x32xf32>
    %420 = vector.extract_strided_slice %401 {offsets = [0, 96], sizes = [2, 32], strides = [1, 1]} : vector<2x128xf32> to vector<2x32xf32>
    %cst_200 = arith.constant 0.000000e+00 : f32
    %421 = vector.broadcast %cst_200 : f32 to vector<2x32xf32>
    %422 = arith.subf %421, %420 : vector<2x32xf32>
    %423 = math.exp %422 : vector<2x32xf32>
    %cst_201 = arith.constant 1.000000e+00 : f32
    %424 = vector.broadcast %cst_201 : f32 to vector<2x32xf32>
    %425 = arith.addf %424, %423 : vector<2x32xf32>
    %cst_202 = arith.constant 1.000000e+00 : f32
    %426 = vector.broadcast %cst_202 : f32 to vector<2x32xf32>
    %427 = arith.divf %426, %425 : vector<2x32xf32>
    %428 = arith.mulf %417, %394 : vector<2x32xf32>
    %429 = arith.mulf %409, %419 : vector<2x32xf32>
    %430 = arith.addf %428, %429 : vector<2x32xf32>
    %431 = math.tanh %430 : vector<2x32xf32>
    %432 = arith.mulf %427, %431 : vector<2x32xf32>
    %c10_203 = arith.constant 10 : index
    %c0_204 = arith.constant 0 : index
    %433 = vector.load %arg5[%c10_203, %c0_204] : memref<24x32xf32, #tpu.memory_space<vmem>>, vector<2x32xf32>
    tpu.vector_store %arg5[%c10_203, %c0_204], %432 {strides = array<i32>} : memref<24x32xf32, #tpu.memory_space<vmem>>, vector<2x32xf32>,
    %c12 = arith.constant 12 : index
    %c0_205 = arith.constant 0 : index
    %434 = vector.load %arg4[%c12, %c0_205] : memref<24x128xf32, #tpu.memory_space<vmem>>, vector<2x128xf32>
    %435 = arith.truncf %432 : vector<2x32xf32> to vector<2x32xbf16>
    %cst_206 = arith.constant dense<0.000000e+00> : vector<2x128xf32>
    %436 = tpu.matmul %435, %217, %cst_206 {dimension_numbers = #tpu.dot_dimension_numbers<[1], [0], [0], [1], [0, 0, 1, 1], [], []>} : vector<2x32xbf16>, vector<32x128xbf16>, vector<2x128xf32> -> vector<2x128xf32>
    %437 = arith.addf %434, %436 : vector<2x128xf32>
    %438 = vector.extract_strided_slice %437 {offsets = [0, 0], sizes = [2, 32], strides = [1, 1]} : vector<2x128xf32> to vector<2x32xf32>
    %cst_207 = arith.constant 0.000000e+00 : f32
    %439 = vector.broadcast %cst_207 : f32 to vector<2x32xf32>
    %440 = arith.subf %439, %438 : vector<2x32xf32>
    %441 = math.exp %440 : vector<2x32xf32>
    %cst_208 = arith.constant 1.000000e+00 : f32
    %442 = vector.broadcast %cst_208 : f32 to vector<2x32xf32>
    %443 = arith.addf %442, %441 : vector<2x32xf32>
    %cst_209 = arith.constant 1.000000e+00 : f32
    %444 = vector.broadcast %cst_209 : f32 to vector<2x32xf32>
    %445 = arith.divf %444, %443 : vector<2x32xf32>
    %446 = vector.extract_strided_slice %437 {offsets = [0, 32], sizes = [2, 32], strides = [1, 1]} : vector<2x128xf32> to vector<2x32xf32>
    %cst_210 = arith.constant 0.000000e+00 : f32
    %447 = vector.broadcast %cst_210 : f32 to vector<2x32xf32>
    %448 = arith.subf %447, %446 : vector<2x32xf32>
    %449 = math.exp %448 : vector<2x32xf32>
    %cst_211 = arith.constant 1.000000e+00 : f32
    %450 = vector.broadcast %cst_211 : f32 to vector<2x32xf32>
    %451 = arith.addf %450, %449 : vector<2x32xf32>
    %cst_212 = arith.constant 1.000000e+00 : f32
    %452 = vector.broadcast %cst_212 : f32 to vector<2x32xf32>
    %453 = arith.divf %452, %451 : vector<2x32xf32>
    %454 = vector.extract_strided_slice %437 {offsets = [0, 64], sizes = [2, 32], strides = [1, 1]} : vector<2x128xf32> to vector<2x32xf32>
    %455 = math.tanh %454 : vector<2x32xf32>
    %456 = vector.extract_strided_slice %437 {offsets = [0, 96], sizes = [2, 32], strides = [1, 1]} : vector<2x128xf32> to vector<2x32xf32>
    %cst_213 = arith.constant 0.000000e+00 : f32
    %457 = vector.broadcast %cst_213 : f32 to vector<2x32xf32>
    %458 = arith.subf %457, %456 : vector<2x32xf32>
    %459 = math.exp %458 : vector<2x32xf32>
    %cst_214 = arith.constant 1.000000e+00 : f32
    %460 = vector.broadcast %cst_214 : f32 to vector<2x32xf32>
    %461 = arith.addf %460, %459 : vector<2x32xf32>
    %cst_215 = arith.constant 1.000000e+00 : f32
    %462 = vector.broadcast %cst_215 : f32 to vector<2x32xf32>
    %463 = arith.divf %462, %461 : vector<2x32xf32>
    %464 = arith.mulf %453, %430 : vector<2x32xf32>
    %465 = arith.mulf %445, %455 : vector<2x32xf32>
    %466 = arith.addf %464, %465 : vector<2x32xf32>
    %467 = math.tanh %466 : vector<2x32xf32>
    %468 = arith.mulf %463, %467 : vector<2x32xf32>
    %c12_216 = arith.constant 12 : index
    %c0_217 = arith.constant 0 : index
    %469 = vector.load %arg5[%c12_216, %c0_217] : memref<24x32xf32, #tpu.memory_space<vmem>>, vector<2x32xf32>
    tpu.vector_store %arg5[%c12_216, %c0_217], %468 {strides = array<i32>} : memref<24x32xf32, #tpu.memory_space<vmem>>, vector<2x32xf32>,
    %c14 = arith.constant 14 : index
    %c0_218 = arith.constant 0 : index
    %470 = vector.load %arg4[%c14, %c0_218] : memref<24x128xf32, #tpu.memory_space<vmem>>, vector<2x128xf32>
    %471 = arith.truncf %468 : vector<2x32xf32> to vector<2x32xbf16>
    %cst_219 = arith.constant dense<0.000000e+00> : vector<2x128xf32>
    %472 = tpu.matmul %471, %217, %cst_219 {dimension_numbers = #tpu.dot_dimension_numbers<[1], [0], [0], [1], [0, 0, 1, 1], [], []>} : vector<2x32xbf16>, vector<32x128xbf16>, vector<2x128xf32> -> vector<2x128xf32>
    %473 = arith.addf %470, %472 : vector<2x128xf32>
    %474 = vector.extract_strided_slice %473 {offsets = [0, 0], sizes = [2, 32], strides = [1, 1]} : vector<2x128xf32> to vector<2x32xf32>
    %cst_220 = arith.constant 0.000000e+00 : f32
    %475 = vector.broadcast %cst_220 : f32 to vector<2x32xf32>
    %476 = arith.subf %475, %474 : vector<2x32xf32>
    %477 = math.exp %476 : vector<2x32xf32>
    %cst_221 = arith.constant 1.000000e+00 : f32
    %478 = vector.broadcast %cst_221 : f32 to vector<2x32xf32>
    %479 = arith.addf %478, %477 : vector<2x32xf32>
    %cst_222 = arith.constant 1.000000e+00 : f32
    %480 = vector.broadcast %cst_222 : f32 to vector<2x32xf32>
    %481 = arith.divf %480, %479 : vector<2x32xf32>
    %482 = vector.extract_strided_slice %473 {offsets = [0, 32], sizes = [2, 32], strides = [1, 1]} : vector<2x128xf32> to vector<2x32xf32>
    %cst_223 = arith.constant 0.000000e+00 : f32
    %483 = vector.broadcast %cst_223 : f32 to vector<2x32xf32>
    %484 = arith.subf %483, %482 : vector<2x32xf32>
    %485 = math.exp %484 : vector<2x32xf32>
    %cst_224 = arith.constant 1.000000e+00 : f32
    %486 = vector.broadcast %cst_224 : f32 to vector<2x32xf32>
    %487 = arith.addf %486, %485 : vector<2x32xf32>
    %cst_225 = arith.constant 1.000000e+00 : f32
    %488 = vector.broadcast %cst_225 : f32 to vector<2x32xf32>
    %489 = arith.divf %488, %487 : vector<2x32xf32>
    %490 = vector.extract_strided_slice %473 {offsets = [0, 64], sizes = [2, 32], strides = [1, 1]} : vector<2x128xf32> to vector<2x32xf32>
    %491 = math.tanh %490 : vector<2x32xf32>
    %492 = vector.extract_strided_slice %473 {offsets = [0, 96], sizes = [2, 32], strides = [1, 1]} : vector<2x128xf32> to vector<2x32xf32>
    %cst_226 = arith.constant 0.000000e+00 : f32
    %493 = vector.broadcast %cst_226 : f32 to vector<2x32xf32>
    %494 = arith.subf %493, %492 : vector<2x32xf32>
    %495 = math.exp %494 : vector<2x32xf32>
    %cst_227 = arith.constant 1.000000e+00 : f32
    %496 = vector.broadcast %cst_227 : f32 to vector<2x32xf32>
    %497 = arith.addf %496, %495 : vector<2x32xf32>
    %cst_228 = arith.constant 1.000000e+00 : f32
    %498 = vector.broadcast %cst_228 : f32 to vector<2x32xf32>
    %499 = arith.divf %498, %497 : vector<2x32xf32>
    %500 = arith.mulf %489, %466 : vector<2x32xf32>
    %501 = arith.mulf %481, %491 : vector<2x32xf32>
    %502 = arith.addf %500, %501 : vector<2x32xf32>
    %503 = math.tanh %502 : vector<2x32xf32>
    %504 = arith.mulf %499, %503 : vector<2x32xf32>
    %c14_229 = arith.constant 14 : index
    %c0_230 = arith.constant 0 : index
    %505 = vector.load %arg5[%c14_229, %c0_230] : memref<24x32xf32, #tpu.memory_space<vmem>>, vector<2x32xf32>
    tpu.vector_store %arg5[%c14_229, %c0_230], %504 {strides = array<i32>} : memref<24x32xf32, #tpu.memory_space<vmem>>, vector<2x32xf32>,
    %c16 = arith.constant 16 : index
    %c0_231 = arith.constant 0 : index
    %506 = vector.load %arg4[%c16, %c0_231] : memref<24x128xf32, #tpu.memory_space<vmem>>, vector<2x128xf32>
    %507 = arith.truncf %504 : vector<2x32xf32> to vector<2x32xbf16>
    %cst_232 = arith.constant dense<0.000000e+00> : vector<2x128xf32>
    %508 = tpu.matmul %507, %217, %cst_232 {dimension_numbers = #tpu.dot_dimension_numbers<[1], [0], [0], [1], [0, 0, 1, 1], [], []>} : vector<2x32xbf16>, vector<32x128xbf16>, vector<2x128xf32> -> vector<2x128xf32>
    %509 = arith.addf %506, %508 : vector<2x128xf32>
    %510 = vector.extract_strided_slice %509 {offsets = [0, 0], sizes = [2, 32], strides = [1, 1]} : vector<2x128xf32> to vector<2x32xf32>
    %cst_233 = arith.constant 0.000000e+00 : f32
    %511 = vector.broadcast %cst_233 : f32 to vector<2x32xf32>
    %512 = arith.subf %511, %510 : vector<2x32xf32>
    %513 = math.exp %512 : vector<2x32xf32>
    %cst_234 = arith.constant 1.000000e+00 : f32
    %514 = vector.broadcast %cst_234 : f32 to vector<2x32xf32>
    %515 = arith.addf %514, %513 : vector<2x32xf32>
    %cst_235 = arith.constant 1.000000e+00 : f32
    %516 = vector.broadcast %cst_235 : f32 to vector<2x32xf32>
    %517 = arith.divf %516, %515 : vector<2x32xf32>
    %518 = vector.extract_strided_slice %509 {offsets = [0, 32], sizes = [2, 32], strides = [1, 1]} : vector<2x128xf32> to vector<2x32xf32>
    %cst_236 = arith.constant 0.000000e+00 : f32
    %519 = vector.broadcast %cst_236 : f32 to vector<2x32xf32>
    %520 = arith.subf %519, %518 : vector<2x32xf32>
    %521 = math.exp %520 : vector<2x32xf32>
    %cst_237 = arith.constant 1.000000e+00 : f32
    %522 = vector.broadcast %cst_237 : f32 to vector<2x32xf32>
    %523 = arith.addf %522, %521 : vector<2x32xf32>
    %cst_238 = arith.constant 1.000000e+00 : f32
    %524 = vector.broadcast %cst_238 : f32 to vector<2x32xf32>
    %525 = arith.divf %524, %523 : vector<2x32xf32>
    %526 = vector.extract_strided_slice %509 {offsets = [0, 64], sizes = [2, 32], strides = [1, 1]} : vector<2x128xf32> to vector<2x32xf32>
    %527 = math.tanh %526 : vector<2x32xf32>
    %528 = vector.extract_strided_slice %509 {offsets = [0, 96], sizes = [2, 32], strides = [1, 1]} : vector<2x128xf32> to vector<2x32xf32>
    %cst_239 = arith.constant 0.000000e+00 : f32
    %529 = vector.broadcast %cst_239 : f32 to vector<2x32xf32>
    %530 = arith.subf %529, %528 : vector<2x32xf32>
    %531 = math.exp %530 : vector<2x32xf32>
    %cst_240 = arith.constant 1.000000e+00 : f32
    %532 = vector.broadcast %cst_240 : f32 to vector<2x32xf32>
    %533 = arith.addf %532, %531 : vector<2x32xf32>
    %cst_241 = arith.constant 1.000000e+00 : f32
    %534 = vector.broadcast %cst_241 : f32 to vector<2x32xf32>
    %535 = arith.divf %534, %533 : vector<2x32xf32>
    %536 = arith.mulf %525, %502 : vector<2x32xf32>
    %537 = arith.mulf %517, %527 : vector<2x32xf32>
    %538 = arith.addf %536, %537 : vector<2x32xf32>
    %539 = math.tanh %538 : vector<2x32xf32>
    %540 = arith.mulf %535, %539 : vector<2x32xf32>
    %c16_242 = arith.constant 16 : index
    %c0_243 = arith.constant 0 : index
    %541 = vector.load %arg5[%c16_242, %c0_243] : memref<24x32xf32, #tpu.memory_space<vmem>>, vector<2x32xf32>
    tpu.vector_store %arg5[%c16_242, %c0_243], %540 {strides = array<i32>} : memref<24x32xf32, #tpu.memory_space<vmem>>, vector<2x32xf32>,
    %c0_244 = arith.constant 0 : index
    %c0_245 = arith.constant 0 : index
    %542 = vector.load %arg5[%c0_244, %c0_245] : memref<24x32xf32, #tpu.memory_space<vmem>>, vector<24x32xf32>
    %c1296 = arith.constant 1296 : index
    %c0_246 = arith.constant 0 : index
    %543 = vector.load %arg2[%c1296, %c0_246] : memref<1336x128xf32, #tpu.memory_space<vmem>>, vector<32x128xf32>
    %cst_247 = arith.constant dense<0.000000e+00> : vector<24x128xf32>
    %544 = tpu.matmul %542, %543, %cst_247 {dimension_numbers = #tpu.dot_dimension_numbers<[1], [0], [0], [1], [0, 0, 1, 1], [], []>} : vector<24x32xf32>, vector<32x128xf32>, vector<24x128xf32> -> vector<24x128xf32>
    %c1328 = arith.constant 1328 : index
    %c0_248 = arith.constant 0 : index
    %545 = vector.load %arg2[%c1328, %c0_248] : memref<1336x128xf32, #tpu.memory_space<vmem>>, vector<1x128xf32>
    %546 = vector.broadcast %545 : vector<1x128xf32> to vector<24x128xf32>
    %547 = arith.addf %544, %546 : vector<24x128xf32>
    %548 = tpu.iota {dimensions = array<i32: 1>} : vector<24x128xi32>
    %c16_i32 = arith.constant 16 : i32
    %549 = vector.broadcast %c16_i32 : i32 to vector<24x128xi32>
    %550 = arith.cmpi sge, %548, %549 : vector<24x128xi32>
    %c48_i32 = arith.constant 48 : i32
    %551 = vector.broadcast %c48_i32 : i32 to vector<24x128xi32>
    %552 = arith.cmpi slt, %548, %551 : vector<24x128xi32>
    %553 = arith.andi %550, %552 : vector<24x128xi1>
    %c48_i32_249 = arith.constant 48 : i32
    %554 = vector.broadcast %c48_i32_249 : i32 to vector<24x128xi32>
    %555 = arith.cmpi sge, %548, %554 : vector<24x128xi32>
    %c80_i32 = arith.constant 80 : i32
    %556 = vector.broadcast %c80_i32 : i32 to vector<24x128xi32>
    %557 = arith.cmpi slt, %548, %556 : vector<24x128xi32>
    %558 = arith.andi %555, %557 : vector<24x128xi1>
    %c80_i32_250 = arith.constant 80 : i32
    %559 = vector.broadcast %c80_i32_250 : i32 to vector<24x128xi32>
    %560 = arith.cmpi sge, %548, %559 : vector<24x128xi32>
    %c96_i32 = arith.constant 96 : i32
    %561 = vector.broadcast %c96_i32 : i32 to vector<24x128xi32>
    %562 = arith.cmpi slt, %548, %561 : vector<24x128xi32>
    %563 = arith.andi %560, %562 : vector<24x128xi1>
    %c0_i32 = arith.constant 0 : i32
    %564 = vector.broadcast %c0_i32 : i32 to vector<24x128xi32>
    %565 = arith.cmpi sge, %548, %564 : vector<24x128xi32>
    %c16_i32_251 = arith.constant 16 : i32
    %566 = vector.broadcast %c16_i32_251 : i32 to vector<24x128xi32>
    %567 = arith.cmpi slt, %548, %566 : vector<24x128xi32>
    %568 = arith.andi %565, %567 : vector<24x128xi1>
    %cst_252 = arith.constant -1.000000e+30 : f32
    %569 = vector.broadcast %cst_252 : f32 to vector<24x128xf32>
    %570 = arith.select %568, %547, %569 : vector<24x128xi1>, vector<24x128xf32>
    %cst_253 = arith.constant dense<0xFF800000> : vector<24xf32>
    %571 = vector.multi_reduction <maximumf>, %570, %cst_253 [1] : vector<24x128xf32> to vector<24xf32>
    %572 = vector.shape_cast %571 : vector<24xf32> to vector<24x1xf32>
    %573 = vector.broadcast %572 : vector<24x1xf32> to vector<24x128xf32>
    %574 = arith.subf %570, %573 : vector<24x128xf32>
    %575 = math.exp %574 : vector<24x128xf32>
    %cst_254 = arith.constant 0.000000e+00 : f32
    %576 = vector.broadcast %cst_254 : f32 to vector<24x128xf32>
    %577 = arith.select %568, %575, %576 : vector<24x128xi1>, vector<24x128xf32>
    %cst_255 = arith.constant dense<0.000000e+00> : vector<24xf32>
    %578 = vector.multi_reduction <add>, %577, %cst_255 [1] : vector<24x128xf32> to vector<24xf32>
    %579 = vector.shape_cast %578 : vector<24xf32> to vector<24x1xf32>
    %580 = vector.broadcast %579 : vector<24x1xf32> to vector<24x128xf32>
    %581 = arith.divf %577, %580 : vector<24x128xf32>
    %c96_i32_256 = arith.constant 96 : i32
    %582 = vector.broadcast %c96_i32_256 : i32 to vector<24x128xi32>
    %583 = arith.cmpi sge, %548, %582 : vector<24x128xi32>
    %c99_i32 = arith.constant 99 : i32
    %584 = vector.broadcast %c99_i32 : i32 to vector<24x128xi32>
    %585 = arith.cmpi slt, %548, %584 : vector<24x128xi32>
    %586 = arith.andi %583, %585 : vector<24x128xi1>
    %cst_257 = arith.constant -1.000000e+30 : f32
    %587 = vector.broadcast %cst_257 : f32 to vector<24x128xf32>
    %588 = arith.select %586, %547, %587 : vector<24x128xi1>, vector<24x128xf32>
    %cst_258 = arith.constant dense<0xFF800000> : vector<24xf32>
    %589 = vector.multi_reduction <maximumf>, %588, %cst_258 [1] : vector<24x128xf32> to vector<24xf32>
    %590 = vector.shape_cast %589 : vector<24xf32> to vector<24x1xf32>
    %591 = vector.broadcast %590 : vector<24x1xf32> to vector<24x128xf32>
    %592 = arith.subf %588, %591 : vector<24x128xf32>
    %593 = math.exp %592 : vector<24x128xf32>
    %cst_259 = arith.constant 0.000000e+00 : f32
    %594 = vector.broadcast %cst_259 : f32 to vector<24x128xf32>
    %595 = arith.select %586, %593, %594 : vector<24x128xi1>, vector<24x128xf32>
    %cst_260 = arith.constant dense<0.000000e+00> : vector<24xf32>
    %596 = vector.multi_reduction <add>, %595, %cst_260 [1] : vector<24x128xf32> to vector<24xf32>
    %597 = vector.shape_cast %596 : vector<24xf32> to vector<24x1xf32>
    %598 = vector.broadcast %597 : vector<24x1xf32> to vector<24x128xf32>
    %599 = arith.divf %595, %598 : vector<24x128xf32>
    %600 = arith.addf %581, %599 : vector<24x128xf32>
    %cst_261 = arith.constant 0.000000e+00 : f32
    %601 = vector.broadcast %cst_261 : f32 to vector<24x128xf32>
    %602 = arith.select %553, %547, %601 : vector<24x128xi1>, vector<24x128xf32>
    %603 = arith.addf %600, %602 : vector<24x128xf32>
    %604 = math.exp %547 : vector<24x128xf32>
    %cst_262 = arith.constant 0.000000e+00 : f32
    %605 = vector.broadcast %cst_262 : f32 to vector<24x128xf32>
    %606 = arith.select %558, %604, %605 : vector<24x128xi1>, vector<24x128xf32>
    %607 = arith.addf %603, %606 : vector<24x128xf32>
    %608 = math.tanh %547 : vector<24x128xf32>
    %cst_263 = arith.constant 0.000000e+00 : f32
    %609 = vector.broadcast %cst_263 : f32 to vector<24x128xf32>
    %610 = arith.select %563, %608, %609 : vector<24x128xi1>, vector<24x128xf32>
    %611 = arith.addf %607, %610 : vector<24x128xf32>
    %c0_264 = arith.constant 0 : index
    %c0_265 = arith.constant 0 : index
    %612 = vector.load %arg3[%c0_264, %c0_265] : memref<24x128xf32, #tpu.memory_space<vmem>>, vector<24x128xf32>
    tpu.vector_store %arg3[%c0_264, %c0_265], %611 {strides = array<i32>} : memref<24x128xf32, #tpu.memory_space<vmem>>, vector<24x128xf32>,
    return
  }
}

</mosaic_0001>

<bundles_post_ra>
// kernel: stroke_model_forward.1
= control target key start
LH: loop header
LB: loop body
LE: loop exit
PB: predicated region body
PF: predicated region fallthrough
CT: control target
= control target key end

     0   :  { %8 = vsyncpa [#allocation5], 0  ;;  %s6016_s12 = smov [#allocation4]   ;;  %s6644_s0 = inlined_call_operand.vmem [shape: f32[64,32], index: 0, kind: input, shape index: {}]   ;;  %s6645_s1 = inlined_call_operand.vmem [shape: f32[24,5], index: 1, kind: input, shape index: {}]   ;;  %s6646_s2 = inlined_call_operand.hbm [shape: f32[1336,128], index: 2, kind: input, shape index: {}]   ;;  %s6647_s3 = inlined_call_operand.vmem [shape: f32[24,128], index: 3, kind: output, shape index: {}]  }
   0x1   :  { %s18_s13 = sshll.u32 %s6016_s12, 4  ;;  %s19_s13 = int_to_ptr.vmem [resolvable:$true] %s18_s13 }
   0x2   :  { %s6002_s14 = scalar_lea.vmem %s19_s13, 21376  ;;  %p6007_p1 = scmp.lt.s32.totalorder %s19_s13, %s19_s13 }
   0x3   :  { %p6003_p0 = scmp.ne.s32.totalorder %s19_s13, %s6002_s14  ;;  %p6008_p2 = scmp.lt.s32.totalorder %s6002_s14, %s6002_s14 }
   0x5   :  { %p6009_p3 = por %p6008_p2, %p6007_p1 }
   0x7   :  { %p6010_p4 = pnand %p6009_p3, %p6003_p0 }
   0x9   :  { %6013 = shalt.err (!%p6010_p4)
}
   0xa   :  { %s6017_s15 = smov 128   ;;  %s6018_s16 = smov 8  }
   0xb   :  { %24 = dma.hbm_to_vmem [thread:$0]  %s6646_s2, 21376, %s19_s13, [#allocation5], %s6017_s15, %s6017_s15, %s6018_s16  }
   0xc   :  { %6014 = dma.done.wait [#allocation5], 21376  }
   0xd   :  { %6015 = vsyncadd [#allocation5], 4294945920  ;;  %v36_v0 = vld [vmem:[%s6644_s0 + $0x38] sm:$0xff]  ;;  %v35_v1 = vld [vmem:[%s6644_s0 + $0x30] sm:$0xff]  ;;  %vm41_vm0 = vcmask 523264   ;;  %vm248_vm1 = vcmask 261120  }
   0xe   :  { %5236 = vmatprep.subr.mxu0 %v36_v0  ;;  %5258 = vmatprep.subr.mxu1 %v36_v0  ;;  %v34_v2 = vld [vmem:[%s6644_s0 + $0x28] sm:$0xff]  ;;  %v33_v3 = vld [vmem:[%s6644_s0 + $0x20] sm:$0xff]  ;;  %v32_v4 = vld [vmem:[%s6644_s0 + $0x18] sm:$0xff]  ;;  %v6019_v32 = vmov 0.0   ;;  %vm6020_vm2 = vmmov 0   ;;  %vm1097_vm3 = vcmask 1043456  }
   0xf   :  { %5237 = vmatpush3.msra.mxu0 %v36_v0  ;;  %5259 = vmatpush3.msra.mxu1 %v36_v0  ;;  %v31_v5 = vld [vmem:[%s6644_s0 + $0x10] sm:$0xff]  ;;  %v30_v6 = vld [vmem:[%s6644_s0 + $0x8] sm:$0xff]  ;;  %v29_v7 = vld [vmem:[%s6644_s0] sm:$0xff]  ;;  %3889 = vst.msk [vmem:[#allocation3] sm:$0xff] %vm248_vm1, %v6019_v32  ;;  %vm1079_vm4 = vcmask 490496   ;;  %vm1085_vm5 = vcmask 488448  }
  0x10   :  { %5238 = vmatprep.subr.mxu0 %v35_v1  ;;  %5260 = vmatprep.subr.mxu1 %v35_v1  ;;  %v37_v8 = vld [vmem:[#allocation4] sm:$0xff]  ;;  %v38_v10 = vld [vmem:[#allocation4 + $0x8] sm:$0xff]  ;;  %v39_v12 = vld [vmem:[#allocation4 + $0x10] sm:$0xff]  ;;  %3890 = vst.msk [vmem:[#allocation3 + $0x8] sm:$0xff] %vm248_vm1, %v6019_v32  ;;  %vm1295_vm6 = vcmask 244736   ;;  %vm1302_vm7 = vcmask 1045504  }
  0x11   :  { %5239 = vmatpush3.msra.mxu0 %v35_v1  ;;  %5261 = vmatpush3.msra.mxu1 %v35_v1  ;;  %v139_v9 = vld [vmem:[#allocation4 + $0x20] sm:$0xff]  ;;  %v140_v11 = vld [vmem:[#allocation4 + $0x28] sm:$0xff]  ;;  %v141_v13 = vld [vmem:[#allocation4 + $0x30] sm:$0xff]  ;;  %3891 = vst.msk [vmem:[#allocation3 + $0x10] sm:$0xff] %vm248_vm1, %v6019_v32  ;;  %vm1657_vm8 = vcmask 455680   ;;  %vm1655_vm9 = vcmask 457728  }
  0x12   :  { %5240 = vmatprep.subr.mxu0 %v34_v2  ;;  %5262 = vmatprep.subr.mxu1 %v34_v2  ;;  %v247_v14 = vld [vmem:[#allocation4 + $0x78] sm:$0xff]  ;;  %v246_v18 = vld [vmem:[#allocation4 + $0x70] sm:$0xff]  ;;  %v245_v20 = vld [vmem:[#allocation4 + $0x68] sm:$0xff]  ;;  %vm1849_vm10 = vcmask 113664   ;;  %vm2201_vm11 = vcmask 388096   ;;  %vm2199_vm12 = vcmask 392192  }
  0x13   :  { %5241 = vmatpush3.msra.mxu0 %v34_v2  ;;  %5263 = vmatpush3.msra.mxu1 %v34_v2  ;;  %v243_v15 = vld [vmem:[#allocation4 + $0x58] sm:$0xff]  ;;  %v242_v19 = vld [vmem:[#allocation4 + $0x50] sm:$0xff]  ;;  %v241_v21 = vld [vmem:[#allocation4 + $0x48] sm:$0xff]  ;;  %v537_v2 = vlaneseq  ;;  %vm2392_vm13 = vcmask 97280   ;;  %vm2704_vm14 = vcmask 193536   ;;  %vm2712_vm15 = vcmask 195584  }
  0x14   :  { %5242 = vmatprep.subr.mxu0 %v33_v3  ;;  %5264 = vmatprep.subr.mxu1 %v33_v3  ;;  %v40_v16 = vld [vmem:[#allocation4 + $0x18] sm:$0xff]  ;;  %v244_v22 = vld [vmem:[#allocation4 + $0x60] sm:$0xff]  ;;  %v449_v34 = vld [vmem:[#allocation4 + $0xb0] sm:$0xff]  ;;  %s6022_s12 = smov 32  }
  0x15   :  { %5243 = vmatpush3.msra.mxu0 %v33_v3  ;;  %5265 = vmatpush3.msra.mxu1 %v33_v3  ;;  %v142_v17 = vld [vmem:[#allocation4 + $0x38] sm:$0xff]  ;;  %v240_v23 = vld [vmem:[#allocation4 + $0x40] sm:$0xff]  ;;  %v448_v35 = vld [vmem:[#allocation4 + $0xa8] sm:$0xff]  ;;  %v538_v3 = vshrl.u32 %v537_v2, 7 }
  0x16   :  { %5244 = vmatprep.subr.mxu0 %v32_v4  ;;  %5266 = vmatprep.subr.mxu1 %v32_v4  ;;  %v450_v33 = vld [vmem:[#allocation4 + $0xb8] sm:$0xff]  ;;  %v447_v36 = vld [vmem:[#allocation4 + $0xa0] sm:$0xff]  ;;  %v445_v38 = vld [vmem:[#allocation4 + $0x90] sm:$0xff] }
  0x17   :  { %5245 = vmatpush3.msra.mxu0 %v32_v4  ;;  %5267 = vmatpush3.msra.mxu1 %v32_v4  ;;  %v446_v37 = vld [vmem:[#allocation4 + $0x98] sm:$0xff]  ;;  %v444_v39 = vld [vmem:[#allocation4 + $0x88] sm:$0xff]  ;;  %v443_v40 = vld [vmem:[#allocation4 + $0x80] sm:$0xff]  ;;  %v6118_v4 = vsub.s32 0, %v538_v3 }
  0x18   :  { %5246 = vmatprep.subr.mxu0 %v31_v5  ;;  %5268 = vmatprep.subr.mxu1 %v31_v5  ;;  %v872_v3 = vld [vmem:[#allocation4 + $0x168] sm:$0xff] }
  0x19   :  { %5247 = vmatpush3.msra.mxu0 %v31_v5  ;;  %5269 = vmatpush3.msra.mxu1 %v31_v5 }
  0x1a   :  { %5248 = vmatprep.subr.mxu0 %v30_v6  ;;  %5270 = vmatprep.subr.mxu1 %v30_v6 }
  0x1b   :  { %5249 = vmatpush3.msra.mxu0 %v30_v6  ;;  %5271 = vmatpush3.msra.mxu1 %v30_v6 }
  0x1c   :  { %5250 = vmatprep.subr.mxu0 %v29_v7  ;;  %5272 = vmatprep.subr.mxu1 %v29_v7 }
  0x1d   :  { %5251 = vmatpush3.msra.mxu0 %v29_v7  ;;  %5252 = vmatprep.mubr.msk.f32.mxu0 %vm41_vm0, %v37_v8 }
  0x1e   :  { %5273 = vmatpush3.msra.mxu1 %v29_v7  ;;  %5274 = vmatprep.mubr.msk.f32.mxu1 %vm41_vm0, %v139_v9 }
  0x1f   :  { %5253 = vmatmul.mubr.msk.f32.vlgmr.msra.gmra.mxu0 %vm41_vm0, %v38_v10  ;;  %5275 = vmatmul.mubr.msk.f32.vlgmr.msra.gmra.mxu1 %vm41_vm0, %v140_v11 }
  0x20   :  { %5255 = vmatprep.mubr.msk.f32.mxu0 %vm41_vm0, %v39_v12  ;;  %5277 = vmatprep.mubr.msk.f32.mxu1 %vm41_vm0, %v141_v13 }
  0x21   :  { %5280 = vmatprep.subr.mxu0 %v247_v14  ;;  %5294 = vmatprep.subr.mxu1 %v243_v15 }
  0x22   :  { %5281 = vmatpush3.msra.mxu0 %v247_v14  ;;  %5295 = vmatpush3.msra.mxu1 %v243_v15 }
  0x23   :  { %5256 = vmatmul.mubr.msk.f32.gmra.mxu0 %vm41_vm0, %v40_v16  ;;  %5278 = vmatmul.mubr.msk.f32.gmra.mxu1 %vm41_vm0, %v142_v17 }
  0x24   :  { %5282 = vmatprep.subr.mxu0 %v246_v18  ;;  %5296 = vmatprep.subr.mxu1 %v242_v19 }
  0x25   :  { %5283 = vmatpush3.msra.mxu0 %v246_v18  ;;  %5297 = vmatpush3.msra.mxu1 %v242_v19 }
  0x26   :  { %5284 = vmatprep.subr.mxu0 %v245_v20  ;;  %5298 = vmatprep.subr.mxu1 %v241_v21 }
  0x27   :  { %5285 = vmatpush3.msra.mxu0 %v245_v20  ;;  %5299 = vmatpush3.msra.mxu1 %v241_v21 }
  0x28   :  { %5286 = vmatprep.subr.mxu0 %v244_v22  ;;  %5300 = vmatprep.subr.mxu1 %v240_v23 }
  0x29   :  { %5287 = vmatpush3.msra.mxu0 %v244_v22  ;;  %5301 = vmatpush3.msra.mxu1 %v240_v23 }
  0x2a   :  { %5308 = vmatprep.subr.mxu0 %v6019_v32  ;;  %5327 = vmatprep.subr.mxu1 %v6019_v32 }
  0xdf   :  { %v5254_v24 = vpop.f32.mrf.mxu0  ;;  %v5276_v25 = vpop.f32.mrf.mxu1 }
  0xe1   :  { %v120_v26 = vpop.f32.mrf.mxu0  ;;  %v221_v27 = vpop.f32.mrf.mxu1 }
  0xe2   :  { %5288 = vmatprep.mubr.msk.f32.mxu0 %vm248_vm1, %v221_v27  ;;  %5302 = vmatprep.mubr.msk.f32.mxu1 %vm248_vm1, %v120_v26 }
  0xe3   :  { %v5257_v28 = vpop.f32.mrf.mxu0  ;;  %v5279_v29 = vpop.f32.mrf.mxu1  ;;  %5289 = vmatmul.mubr.msk.f32.vlgmr.msra.gmra.mxu0 %vm248_vm1, %v5276_v25  ;;  %5303 = vmatmul.mubr.msk.f32.vlgmr.msra.gmra.mxu1 %vm248_vm1, %v5254_v24 }
  0xe4   :  { %5309 = vmatpush3.msra.mxu0 %v450_v33  ;;  %5328 = vmatpush3.msra.mxu1 %v450_v33 }
  0xe5   :  { %v130_v30 = vpop.f32.mrf.mxu0  ;;  %v231_v31 = vpop.f32.mrf.mxu1  ;;  %5310 = vmatprep.subr.mxu0 %v6019_v32  ;;  %5329 = vmatprep.subr.mxu1 %v6019_v32 }
  0xe6   :  { %5291 = vmatprep.mubr.msk.f32.mxu0 %vm248_vm1, %v231_v31  ;;  %5305 = vmatprep.mubr.msk.f32.mxu1 %vm248_vm1, %v130_v30  ;;  %v760_v30 = vld [vmem:[#allocation4 + $0xf0] sm:$0xff] }
  0xe7   :  { %5292 = vmatmul.mubr.msk.f32.gmra.mxu0 %vm248_vm1, %v5279_v29  ;;  %5306 = vmatmul.mubr.msk.f32.gmra.mxu1 %vm248_vm1, %v5257_v28  ;;  %v659_v29 = vld [vmem:[#allocation4 + $0xd0] sm:$0xff] }
  0xe8   :  { %5311 = vmatpush3.msra.mxu0 %v449_v34  ;;  %5330 = vmatpush3.msra.mxu1 %v449_v34 }
  0xe9   :  { %5312 = vmatprep.subr.mxu0 %v6019_v32  ;;  %5331 = vmatprep.subr.mxu1 %v6019_v32 }
  0xea   :  { %5313 = vmatpush3.msra.mxu0 %v448_v35  ;;  %5332 = vmatpush3.msra.mxu1 %v448_v35  ;;  %v636_v35 = vld [vmem:[#allocation4 + $0xc0] sm:$0x1] }
  0xeb   :  { %5314 = vmatprep.subr.mxu0 %v6019_v32  ;;  %5333 = vmatprep.subr.mxu1 %v6019_v32 }
  0xec   :  { %5315 = vmatpush3.msra.mxu0 %v447_v36  ;;  %5334 = vmatpush3.msra.mxu1 %v447_v36 }
  0xed   :  { %5316 = vmatprep.subr.mxu0 %v6019_v32  ;;  %5335 = vmatprep.subr.mxu1 %v6019_v32 }
  0xee   :  { %5317 = vmatpush3.msra.mxu0 %v446_v37  ;;  %5336 = vmatpush3.msra.mxu1 %v446_v37 }
  0xef   :  { %5318 = vmatprep.subr.mxu0 %v6019_v32  ;;  %5337 = vmatprep.subr.mxu1 %v6019_v32 }
  0xf0   :  { %5319 = vmatpush3.msra.mxu0 %v445_v38  ;;  %5338 = vmatpush3.msra.mxu1 %v445_v38 }
  0xf1   :  { %5320 = vmatprep.subr.mxu0 %v6019_v32  ;;  %5339 = vmatprep.subr.mxu1 %v6019_v32 }
  0xf2   :  { %5321 = vmatpush3.msra.mxu0 %v444_v39  ;;  %5340 = vmatpush3.msra.mxu1 %v444_v39  ;;  %v4838_v39 = vld [vmem:[#allocation4 + $0xc8] ss:$0 sm:$0xff] }
  0xf3   :  { %5322 = vmatprep.subr.mxu0 %v6019_v32  ;;  %5341 = vmatprep.subr.mxu1 %v6019_v32 }
  0xf4   :  { %5323 = vmatpush3.msra.mxu0 %v443_v40  ;;  %5324 = vmatprep.mubr.msk.f32.mxu0 %vm6020_vm2, %v6019_v32 }
  0xf5   :  { %5342 = vmatpush3.msra.mxu1 %v443_v40  ;;  %5343 = vmatprep.mubr.msk.f32.mxu1 %vm6020_vm2, %v6019_v32 }
 0x1a3   :  { %v5290_v41 = vpop.f32.mrf.mxu0  ;;  %v5304_v42 = vpop.f32.mrf.mxu1 }
 0x1a4   :  { %v430_v45 = vadd.f32 %v5304_v42, %v5290_v41 }
 0x1a5   :  { %v327_v43 = vpop.f32.mrf.mxu0  ;;  %v424_v44 = vpop.f32.mrf.mxu1 }
 0x1a6   :  { %v425_v46 = vadd.f32 %v424_v44, %v327_v43  ;;  %v452_v52 = vsel %vm41_vm0, %v430_v45, 0.0 }
 0x1a7   :  { %v5293_v47 = vpop.f32.mrf.mxu0  ;;  %v5307_v48 = vpop.f32.mrf.mxu1 }
 0x1a8   :  { %v451_v49 = vsel %vm41_vm0, %v425_v46, 0.0  ;;  %v440_v53 = vadd.f32 %v5307_v48, %v5293_v47 }
 0x1a9   :  { %v337_v50 = vpop.f32.mrf.mxu0  ;;  %v434_v51 = vpop.f32.mrf.mxu1  ;;  %v453_v55 = vadd.f32 %v452_v52, %v451_v49  ;;  %v660_v52 = vld [vmem:[#allocation4 + $0xd8] sm:$0xff] }
 0x1aa   :  { %v435_v54 = vadd.f32 %v434_v51, %v337_v50  ;;  %v456_v58 = vsel %vm41_vm0, %v440_v53, 0.0 }
 0x1ac   :  { %v454_v56 = vsel %vm41_vm0, %v435_v54, 0.0 }
 0x1ad   :  { %v455_v57 = vadd.f32 %v454_v56, %v453_v55  ;;  %v762_v55 = vld [vmem:[#allocation4 + $0x100] sm:$0xff]  ;;  %v876_v56 = vld [vmem:[#allocation4 + $0x188] sm:$0xff] }
 0x1af   :  { %v457_v59 = vadd.f32 %v456_v58, %v455_v57  ;;  %v868_v57 = vld [vmem:[#allocation4 + $0x148] sm:$0xff] }
 0x1b0   :  { %v662_v58 = vld [vmem:[#allocation4 + $0xe8] sm:$0x3f] }
 0x1b1   :  { %v458_v60 = vrot.slane %v457_v59, 4 }
 0x1b3   :  { %v459_v61 = vadd.f32 %v458_v60, %v457_v59  ;;  %v763_v59 = vld [vmem:[#allocation4 + $0x108] sm:$0x3f]  ;;  %v875_v60 = vld [vmem:[#allocation4 + $0x180] sm:$0xff] }
 0x1b5   :  { %v460_v62 = vrot.slane %v459_v61, 2 }
 0x1b7   :  { %v461_v63 = vadd.f32 %v460_v62, %v459_v61  ;;  %v867_v61 = vld [vmem:[#allocation4 + $0x140] sm:$0xff]  ;;  %v874_v62 = vld [vmem:[#allocation4 + $0x178] sm:$0xff] }
 0x1b9   :  { %v462_v0 = vrot.slane %v461_v63, 1 }
 0x1bb   :  { %v463_v1 = vadd.f32 %v462_v0, %v461_v63  ;;  %v866_v63 = vld [vmem:[#allocation4 + $0x138] sm:$0xff]  ;;  %v873_v0 = vld [vmem:[#allocation4 + $0x170] sm:$0xff] }
 0x1bd   :  { %5325 = vmatmul.mubr.msk.f32.vlgmr.msra.gmra.mxu0 %vm41_vm0, %v463_v1  ;;  %v865_v1 = vld [vmem:[#allocation4 + $0x130] sm:$0xff] }
 0x1be   :  { %5354 = vmatprep.mubr.msk.f32.mxu0 %vm248_vm1, %v659_v29 }
 0x27d   :  { %v533_v5 = vpop.f32.mrf.mxu0 }
 0x27e   :  { %v540_v6 = vrot.slane %v533_v5, %v6118_v4  ;;  %v864_v5 = vld [vmem:[#allocation4 + $0x128] sm:$0xff] }
 0x27f   :  { %v5326_v7 = vpop.f32.mrf.mxu0 }
 0x280   :  { %v541_v8 = vsub.f32 %v425_v46, %v540_v6  ;;  %v542_v9 = vsub.f32 %v430_v45, %v540_v6  ;;  %v543_v10 = vsub.f32 %v435_v54, %v540_v6  ;;  %v544_v11 = vsub.f32 %v440_v53, %v540_v6  ;;  %v761_v53 = vld [vmem:[#allocation4 + $0xf8] sm:$0xff]  ;;  %v661_v54 = vld [vmem:[#allocation4 + $0xe0] sm:$0xff] }
 0x281   :  { %v871_v6 = vld [vmem:[#allocation4 + $0x160] sm:$0xff] }
 0x282   :  { %v545_v12 = vmul.f32 %v541_v8, %v541_v8  ;;  %v546_v13 = vmul.f32 %v542_v9, %v542_v9  ;;  %v547_v14 = vmul.f32 %v543_v10, %v543_v10  ;;  %v548_v15 = vmul.f32 %v544_v11, %v544_v11  ;;  %v863_v7 = vld [vmem:[#allocation4 + $0x120] sm:$0xff] }
 0x284   :  { %v549_v16 = vsel %vm41_vm0, %v545_v12, 0.0  ;;  %v550_v17 = vsel %vm41_vm0, %v546_v13, 0.0  ;;  %v552_v19 = vsel %vm41_vm0, %v547_v14, 0.0  ;;  %v554_v21 = vsel %vm41_vm0, %v548_v15, 0.0 }
 0x285   :  { %v551_v18 = vadd.f32 %v550_v17, %v549_v16 }
 0x287   :  { %v553_v20 = vadd.f32 %v552_v19, %v551_v18 }
 0x289   :  { %v555_v22 = vadd.f32 %v554_v21, %v553_v20  ;;  %v1078_v20 = vld [vmem:[#allocation4 + $0x1c8] sm:$0xf]  ;;  %v1077_v21 = vld [vmem:[#allocation4 + $0x1c0] sm:$0xff] }
 0x28b   :  { %v556_v23 = vrot.slane %v555_v22, 4 }
 0x28d   :  { %v557_v24 = vadd.f32 %v556_v23, %v555_v22  ;;  %v1076_v22 = vld [vmem:[#allocation4 + $0x1b8] sm:$0xff]  ;;  %v1075_v23 = vld [vmem:[#allocation4 + $0x1b0] sm:$0xff] }
 0x28f   :  { %v558_v25 = vrot.slane %v557_v24, 2 }
 0x291   :  { %v559_v26 = vadd.f32 %v558_v25, %v557_v24  ;;  %v1074_v24 = vld [vmem:[#allocation4 + $0x1a8] sm:$0xff]  ;;  %v1073_v25 = vld [vmem:[#allocation4 + $0x1a0] sm:$0xff] }
 0x293   :  { %v560_v27 = vrot.slane %v559_v26, 1 }
 0x295   :  { %v561_v28 = vadd.f32 %v560_v27, %v559_v26  ;;  %v1072_v26 = vld [vmem:[#allocation4 + $0x198] sm:$0xff]  ;;  %v1071_v27 = vld [vmem:[#allocation4 + $0x190] sm:$0xff] }
 0x297   :  { %5344 = vmatmul.mubr.msk.f32.vlgmr.msra.gmra.mxu1 %vm41_vm0, %v561_v28 }
 0x298   :  { %5368 = vmatprep.mubr.msk.f32.mxu1 %vm248_vm1, %v760_v30 }
 0x357   :  { %v631_v31 = vpop.f32.mrf.mxu1 }
 0x358   :  { %v632_v33 = vadd.f32 1e-05, %v631_v31 }
 0x359   :  { %v5345_v34 = vpop.f32.mrf.mxu1 }
 0x35a   :  { %5872 = vrsqrt.f32 %v632_v33 }
 0x367   :  { %v5873_v36 = vpop.eup %5872 }
 0x368   :  { %v637_v37 = vmul.f32 %v5873_v36, %v636_v35 }
 0x36a   :  { %v641_v38 = vrot.slane %v637_v37, %v6118_v4 }
 0x36c   :  { %v645_v40 = vmul.f32 %v641_v38, %v544_v11  ;;  %v644_v41 = vmul.f32 %v641_v38, %v543_v10  ;;  %v643_v42 = vmul.f32 %v641_v38, %v542_v9  ;;  %v642_v45 = vmul.f32 %v641_v38, %v541_v8  ;;  %v870_v8 = vld [vmem:[#allocation4 + $0x158] sm:$0xff]  ;;  %v869_v10 = vld [vmem:[#allocation4 + $0x150] sm:$0xff] }
 0x36d   :  { %v862_v9 = vld [vmem:[#allocation4 + $0x118] sm:$0xff]  ;;  %v861_v11 = vld [vmem:[#allocation4 + $0x110] sm:$0xff] }
 0x36e   :  { %v654_v43 = vadd.f32 %v4838_v39, %v645_v40  ;;  %v653_v44 = vadd.f32 %v4838_v39, %v644_v41  ;;  %v652_v47 = vadd.f32 %v4838_v39, %v643_v42  ;;  %v651_v49 = vadd.f32 %v4838_v39, %v642_v45 }
 0x370   :  { %v658_v46 = vmax.f32 %v654_v43, 0.0  ;;  %v657_v48 = vmax.f32 %v653_v44, 0.0  ;;  %v656_v50 = vmax.f32 %v652_v47, 0.0  ;;  %v655_v51 = vmax.f32 %v651_v49, 0.0 }
 0x372   :  { %5346 = vmatprep.subr.mxu0 %v658_v46  ;;  %5360 = vmatprep.subr.mxu1 %v658_v46 }
 0x373   :  { %5347 = vmatpush3.msra.mxu0 %v658_v46  ;;  %5361 = vmatpush3.msra.mxu1 %v658_v46 }
 0x374   :  { %5348 = vmatprep.subr.mxu0 %v657_v48  ;;  %5362 = vmatprep.subr.mxu1 %v657_v48 }
 0x375   :  { %5349 = vmatpush3.msra.mxu0 %v657_v48  ;;  %5363 = vmatpush3.msra.mxu1 %v657_v48 }
 0x376   :  { %5350 = vmatprep.subr.mxu0 %v656_v50  ;;  %5364 = vmatprep.subr.mxu1 %v656_v50 }
 0x377   :  { %5351 = vmatpush3.msra.mxu0 %v656_v50  ;;  %5365 = vmatpush3.msra.mxu1 %v656_v50 }
 0x378   :  { %5352 = vmatprep.subr.mxu0 %v655_v51  ;;  %5366 = vmatprep.subr.mxu1 %v655_v51 }
 0x379   :  { %5353 = vmatpush3.msra.mxu0 %v655_v51  ;;  %5367 = vmatpush3.msra.mxu1 %v655_v51 }
 0x37a   :  { %5355 = vmatmul.mubr.msk.f32.vlgmr.msra.gmra.mxu0 %vm248_vm1, %v660_v52  ;;  %5369 = vmatmul.mubr.msk.f32.vlgmr.msra.gmra.mxu1 %vm248_vm1, %v761_v53 }
 0x37b   :  { %5357 = vmatprep.mubr.msk.f32.mxu0 %vm248_vm1, %v661_v54  ;;  %5371 = vmatprep.mubr.msk.f32.mxu1 %vm248_vm1, %v762_v55 }
 0x37c   :  { %5374 = vmatprep.subr.mxu0 %v876_v56  ;;  %5396 = vmatprep.subr.mxu1 %v868_v57 }
 0x37d   :  { %5375 = vmatpush3.msra.mxu0 %v876_v56  ;;  %5397 = vmatpush3.msra.mxu1 %v868_v57 }
 0x37e   :  { %5358 = vmatmul.mubr.msk.f32.gmra.mxu0 %vm248_vm1, %v662_v58  ;;  %5372 = vmatmul.mubr.msk.f32.gmra.mxu1 %vm248_vm1, %v763_v59 }
 0x37f   :  { %5376 = vmatprep.subr.mxu0 %v875_v60  ;;  %5398 = vmatprep.subr.mxu1 %v867_v61 }
 0x380   :  { %5377 = vmatpush3.msra.mxu0 %v875_v60  ;;  %5399 = vmatpush3.msra.mxu1 %v867_v61 }
 0x381   :  { %5378 = vmatprep.subr.mxu0 %v874_v62  ;;  %5400 = vmatprep.subr.mxu1 %v866_v63 }
 0x382   :  { %5379 = vmatpush3.msra.mxu0 %v874_v62  ;;  %5401 = vmatpush3.msra.mxu1 %v866_v63 }
 0x383   :  { %5380 = vmatprep.subr.mxu0 %v873_v0  ;;  %5402 = vmatprep.subr.mxu1 %v865_v1 }
 0x384   :  { %5381 = vmatpush3.msra.mxu0 %v873_v0  ;;  %5403 = vmatpush3.msra.mxu1 %v865_v1 }
 0x385   :  { %5382 = vmatprep.subr.mxu0 %v872_v3  ;;  %5404 = vmatprep.subr.mxu1 %v864_v5 }
 0x386   :  { %5383 = vmatpush3.msra.mxu0 %v872_v3  ;;  %5405 = vmatpush3.msra.mxu1 %v864_v5 }
 0x387   :  { %5384 = vmatprep.subr.mxu0 %v871_v6  ;;  %5406 = vmatprep.subr.mxu1 %v863_v7 }
 0x388   :  { %5385 = vmatpush3.msra.mxu0 %v871_v6  ;;  %5407 = vmatpush3.msra.mxu1 %v863_v7 }
 0x389   :  { %5386 = vmatprep.subr.mxu0 %v870_v8  ;;  %5408 = vmatprep.subr.mxu1 %v862_v9 }
 0x38a   :  { %5387 = vmatpush3.msra.mxu0 %v870_v8  ;;  %5409 = vmatpush3.msra.mxu1 %v862_v9 }
 0x38b   :  { %5388 = vmatprep.subr.mxu0 %v869_v10  ;;  %5410 = vmatprep.subr.mxu1 %v861_v11 }
 0x38c   :  { %5389 = vmatpush3.msra.mxu0 %v869_v10  ;;  %5411 = vmatpush3.msra.mxu1 %v861_v11 }
 0x38d   :  { %5418 = vmatprep.subr.mxu0 %v6019_v32  ;;  %5437 = vmatprep.subr.mxu1 %v6019_v32 }
 0x43a   :  { %v5356_v12 = vpop.f32.mrf.mxu0  ;;  %v5370_v13 = vpop.f32.mrf.mxu1 }
 0x43c   :  { %v741_v14 = vpop.f32.mrf.mxu0  ;;  %v842_v15 = vpop.f32.mrf.mxu1 }
 0x43d   :  { %5390 = vmatprep.mubr.msk.f32.mxu0 %vm41_vm0, %v842_v15  ;;  %5412 = vmatprep.mubr.msk.f32.mxu1 %vm41_vm0, %v741_v14 }
 0x43e   :  { %v5359_v16 = vpop.f32.mrf.mxu0  ;;  %v5373_v17 = vpop.f32.mrf.mxu1  ;;  %5391 = vmatmul.mubr.msk.f32.vlgmr.msra.gmra.mxu0 %vm41_vm0, %v5370_v13  ;;  %5413 = vmatmul.mubr.msk.f32.vlgmr.msra.gmra.mxu1 %vm41_vm0, %v5356_v12 }
 0x43f   :  { %5419 = vmatpush3.msk.msra.mxu0 %vm1097_vm3, %v1078_v20  ;;  %5438 = vmatpush3.msk.msra.mxu1 %vm1097_vm3, %v1078_v20 }
 0x440   :  { %v751_v18 = vpop.f32.mrf.mxu0  ;;  %v852_v19 = vpop.f32.mrf.mxu1  ;;  %5420 = vmatprep.subr.mxu0 %v6019_v32  ;;  %5439 = vmatprep.subr.mxu1 %v6019_v32 }
 0x441   :  { %5393 = vmatprep.mubr.msk.f32.mxu0 %vm41_vm0, %v852_v19  ;;  %5415 = vmatprep.mubr.msk.f32.mxu1 %vm41_vm0, %v751_v18 }
 0x442   :  { %5394 = vmatmul.mubr.msk.f32.gmra.mxu0 %vm41_vm0, %v5373_v17  ;;  %5416 = vmatmul.mubr.msk.f32.gmra.mxu1 %vm41_vm0, %v5359_v16  ;;  %v1293_v16 = vld [vmem:[#allocation4 + $0x1e0] sm:$0xff]  ;;  %v1381_v17 = vld [vmem:[#allocation4 + $0x1f0] sm:$0xff]  ;;  %vm2888_vm0 = vcmask 48128  }
 0x443   :  { %5434 = vmatprep.mubr.msk.f32.mxu0 %vm6020_vm2, %v6019_v32  ;;  %5453 = vmatprep.mubr.msk.f32.mxu1 %vm6020_vm2, %v6019_v32 }
 0x444   :  { %5421 = vmatpush3.msra.mxu0 %v1077_v21  ;;  %5440 = vmatpush3.msra.mxu1 %v1077_v21  ;;  %v1270_v21 = vld [vmem:[#allocation4 + $0x1d0] sm:$0x1] }
 0x445   :  { %5422 = vmatprep.subr.mxu0 %v6019_v32  ;;  %5441 = vmatprep.subr.mxu1 %v6019_v32 }
 0x446   :  { %5423 = vmatpush3.msra.mxu0 %v1076_v22  ;;  %5442 = vmatpush3.msra.mxu1 %v1076_v22 }
 0x447   :  { %5424 = vmatprep.subr.mxu0 %v6019_v32  ;;  %5443 = vmatprep.subr.mxu1 %v6019_v32 }
 0x448   :  { %5425 = vmatpush3.msra.mxu0 %v1075_v23  ;;  %5444 = vmatpush3.msra.mxu1 %v1075_v23 }
 0x449   :  { %5426 = vmatprep.subr.mxu0 %v6019_v32  ;;  %5445 = vmatprep.subr.mxu1 %v6019_v32 }
 0x44a   :  { %5427 = vmatpush3.msra.mxu0 %v1074_v24  ;;  %5446 = vmatpush3.msra.mxu1 %v1074_v24 }
 0x44b   :  { %5428 = vmatprep.subr.mxu0 %v6019_v32  ;;  %5447 = vmatprep.subr.mxu1 %v6019_v32 }
 0x44c   :  { %5429 = vmatpush3.msra.mxu0 %v1073_v25  ;;  %5448 = vmatpush3.msra.mxu1 %v1073_v25  ;;  %v4859_v25 = vld [vmem:[#allocation4 + $0x1d8] ss:$0 sm:$0xff] }
 0x44d   :  { %5430 = vmatprep.subr.mxu0 %v6019_v32  ;;  %5449 = vmatprep.subr.mxu1 %v6019_v32 }
 0x44e   :  { %5431 = vmatpush3.msra.mxu0 %v1072_v26  ;;  %5450 = vmatpush3.msra.mxu1 %v1072_v26 }
 0x44f   :  { %5432 = vmatprep.subr.mxu0 %v6019_v32  ;;  %5451 = vmatprep.subr.mxu1 %v6019_v32 }
 0x450   :  { %5433 = vmatpush3.msra.mxu0 %v1071_v27  ;;  %5452 = vmatpush3.msra.mxu1 %v1071_v27 }
 0x4fe   :  { %v5392_v28 = vpop.f32.mrf.mxu0  ;;  %v5414_v29 = vpop.f32.mrf.mxu1 }
 0x4ff   :  { %v1058_v33 = vadd.f32 %v5414_v29, %v5392_v28 }
 0x500   :  { %v955_v30 = vpop.f32.mrf.mxu0  ;;  %v1052_v31 = vpop.f32.mrf.mxu1 }
 0x501   :  { %v1053_v34 = vadd.f32 %v1052_v31, %v955_v30  ;;  %v1081_v40 = vsel %vm1079_vm4, %v1058_v33, 0.0 }
 0x502   :  { %v5395_v35 = vpop.f32.mrf.mxu0  ;;  %v5417_v36 = vpop.f32.mrf.mxu1 }
 0x503   :  { %v1080_v37 = vsel %vm1079_vm4, %v1053_v34, 0.0  ;;  %v1068_v41 = vadd.f32 %v5417_v36, %v5395_v35 }
 0x504   :  { %v965_v38 = vpop.f32.mrf.mxu0  ;;  %v1062_v39 = vpop.f32.mrf.mxu1  ;;  %v1082_v43 = vadd.f32 %v1081_v40, %v1080_v37  ;;  %v1382_v40 = vld [vmem:[#allocation4 + $0x1f8] sm:$0x3f] }
 0x505   :  { %v1063_v42 = vadd.f32 %v1062_v39, %v965_v38  ;;  %v1086_v46 = vsel %vm1085_vm5, %v1068_v41, 0.0  ;;  %v1294_v39 = vld [vmem:[#allocation4 + $0x1e8] sm:$0x3f] }
 0x507   :  { %v1083_v44 = vsel %vm1079_vm4, %v1063_v42, 0.0 }
 0x508   :  { %v1084_v45 = vadd.f32 %v1083_v44, %v1082_v43  ;;  %v1478_v43 = vld [vmem:[#allocation4 + $0x270] sm:$0xff] }
 0x509   :  { %v1470_v44 = vld [vmem:[#allocation4 + $0x230] sm:$0xff] }
 0x50a   :  { %v1087_v47 = vadd.f32 %v1086_v46, %v1084_v45  ;;  %v1477_v45 = vld [vmem:[#allocation4 + $0x268] sm:$0xff] }
 0x50b   :  { %v1469_v46 = vld [vmem:[#allocation4 + $0x228] sm:$0xff] }
 0x50c   :  { %v1088_v48 = vrot.slane %v1087_v47, 4 }
 0x50e   :  { %v1089_v49 = vadd.f32 %v1088_v48, %v1087_v47  ;;  %v1476_v47 = vld [vmem:[#allocation4 + $0x260] sm:$0xff] }
 0x50f   :  { %v1468_v48 = vld [vmem:[#allocation4 + $0x220] sm:$0xff] }
 0x510   :  { %v1090_v50 = vrot.slane %v1089_v49, 2 }
 0x512   :  { %v1091_v51 = vadd.f32 %v1090_v50, %v1089_v49  ;;  %v1475_v49 = vld [vmem:[#allocation4 + $0x258] sm:$0xff] }
 0x513   :  { %v1467_v50 = vld [vmem:[#allocation4 + $0x218] sm:$0xff] }
 0x514   :  { %v1092_v52 = vrot.slane %v1091_v51, 1 }
 0x516   :  { %v1093_v53 = vadd.f32 %v1092_v52, %v1091_v51  ;;  %v1474_v51 = vld [vmem:[#allocation4 + $0x250] sm:$0xff] }
 0x517   :  { %v1466_v52 = vld [vmem:[#allocation4 + $0x210] sm:$0xff] }
 0x518   :  { %5435 = vmatmul.mubr.msk.f32.vlgmr.msra.gmra.mxu0 %vm1079_vm4, %v1093_v53  ;;  %v1473_v53 = vld [vmem:[#allocation4 + $0x248] sm:$0xff] }
 0x519   :  { %5464 = vmatprep.mubr.msk.f32.mxu0 %vm1295_vm6, %v1293_v16 }
 0x5d8   :  { %v1167_v54 = vpop.f32.mrf.mxu0 }
 0x5d9   :  { %v1174_v55 = vrot.slane %v1167_v54, %v6118_v4  ;;  %v1465_v54 = vld [vmem:[#allocation4 + $0x208] sm:$0xff] }
 0x5da   :  { %v5436_v56 = vpop.f32.mrf.mxu0 }
 0x5db   :  { %v1175_v57 = vsub.f32 %v1053_v34, %v1174_v55  ;;  %v1176_v58 = vsub.f32 %v1058_v33, %v1174_v55  ;;  %v1177_v59 = vsub.f32 %v1063_v42, %v1174_v55  ;;  %v1178_v60 = vsub.f32 %v1068_v41, %v1174_v55  ;;  %v1479_v41 = vld [vmem:[#allocation4 + $0x278] sm:$0xf]  ;;  %v1472_v55 = vld [vmem:[#allocation4 + $0x240] sm:$0xff] }
 0x5dc   :  { %v1471_v42 = vld [vmem:[#allocation4 + $0x238] sm:$0xf]  ;;  %v1464_v56 = vld [vmem:[#allocation4 + $0x200] sm:$0xff] }
 0x5dd   :  { %v1179_v61 = vmul.f32 %v1175_v57, %v1175_v57  ;;  %v1180_v62 = vmul.f32 %v1176_v58, %v1176_v58  ;;  %v1181_v63 = vmul.f32 %v1177_v59, %v1177_v59  ;;  %v1182_v0 = vmul.f32 %v1178_v60, %v1178_v60 }
 0x5df   :  { %v1183_v1 = vsel %vm1079_vm4, %v1179_v61, 0.0  ;;  %v1184_v3 = vsel %vm1079_vm4, %v1180_v62, 0.0  ;;  %v1186_v6 = vsel %vm1079_vm4, %v1181_v63, 0.0  ;;  %v1188_v8 = vsel %vm1085_vm5, %v1182_v0, 0.0  ;;  %v1654_v61 = vld [vmem:[#allocation4 + $0x2b0] sm:$0xff]  ;;  %v1653_v62 = vld [vmem:[#allocation4 + $0x2a8] sm:$0xff] }
 0x5e0   :  { %v1185_v5 = vadd.f32 %v1184_v3, %v1183_v1  ;;  %v1652_v63 = vld [vmem:[#allocation4 + $0x2a0] sm:$0xff]  ;;  %v1651_v0 = vld [vmem:[#allocation4 + $0x298] sm:$0xff]  ;;  %v1650_v1 = vld [vmem:[#allocation4 + $0x290] sm:$0xff]  ;;  %vm3201_vm5 = vcmask 130048  }
 0x5e1   :  { %v1649_v3 = vld [vmem:[#allocation4 + $0x288] sm:$0xff] }
 0x5e2   :  { %v1187_v7 = vadd.f32 %v1186_v6, %v1185_v5  ;;  %v1648_v5 = vld [vmem:[#allocation4 + $0x280] sm:$0xff] }
 0x5e4   :  { %v1189_v9 = vadd.f32 %v1188_v8, %v1187_v7 }
 0x5e6   :  { %v1190_v10 = vrot.slane %v1189_v9, 4 }
 0x5e8   :  { %v1191_v11 = vadd.f32 %v1190_v10, %v1189_v9 }
 0x5ea   :  { %v1192_v12 = vrot.slane %v1191_v11, 2 }
 0x5ec   :  { %v1193_v13 = vadd.f32 %v1192_v12, %v1191_v11 }
 0x5ee   :  { %v1194_v14 = vrot.slane %v1193_v13, 1 }
 0x5f0   :  { %v1195_v15 = vadd.f32 %v1194_v14, %v1193_v13 }
 0x5f2   :  { %5454 = vmatmul.mubr.msk.f32.vlgmr.msra.gmra.mxu1 %vm1079_vm4, %v1195_v15 }
 0x5f3   :  { %5475 = vmatprep.mubr.msk.f32.mxu1 %vm1295_vm6, %v1381_v17 }
 0x6b2   :  { %v1265_v18 = vpop.f32.mrf.mxu1 }
 0x6b3   :  { %v1266_v19 = vadd.f32 1e-05, %v1265_v18 }
 0x6b4   :  { %v5455_v20 = vpop.f32.mrf.mxu1 }
 0x6b5   :  { %5874 = vrsqrt.f32 %v1266_v19 }
 0x6c2   :  { %v5875_v22 = vpop.eup %5874 }
 0x6c3   :  { %v1271_v23 = vmul.f32 %v5875_v22, %v1270_v21 }
 0x6c5   :  { %v1275_v24 = vrot.slane %v1271_v23, %v6118_v4 }
 0x6c7   :  { %v1279_v26 = vmul.f32 %v1275_v24, %v1178_v60  ;;  %v1278_v27 = vmul.f32 %v1275_v24, %v1177_v59  ;;  %v1277_v28 = vmul.f32 %v1275_v24, %v1176_v58  ;;  %v1276_v31 = vmul.f32 %v1275_v24, %v1175_v57 }
 0x6c9   :  { %v1288_v29 = vadd.f32 %v4859_v25, %v1279_v26  ;;  %v1287_v30 = vadd.f32 %v4859_v25, %v1278_v27  ;;  %v1286_v34 = vadd.f32 %v4859_v25, %v1277_v28  ;;  %v1285_v36 = vadd.f32 %v4859_v25, %v1276_v31 }
 0x6cb   :  { %v1292_v33 = vmax.f32 %v1288_v29, 0.0  ;;  %v1291_v35 = vmax.f32 %v1287_v30, 0.0  ;;  %v1290_v37 = vmax.f32 %v1286_v34, 0.0  ;;  %v1289_v38 = vmax.f32 %v1285_v36, 0.0 }
 0x6cd   :  { %5456 = vmatprep.subr.msk.mxu0 %vm1302_vm7, %v1292_v33  ;;  %5467 = vmatprep.subr.msk.mxu1 %vm1302_vm7, %v1292_v33 }
 0x6ce   :  { %5457 = vmatpush3.msk.msra.mxu0 %vm1302_vm7, %v1292_v33  ;;  %5468 = vmatpush3.msk.msra.mxu1 %vm1302_vm7, %v1292_v33 }
 0x6cf   :  { %5458 = vmatprep.subr.mxu0 %v1291_v35  ;;  %5469 = vmatprep.subr.mxu1 %v1291_v35 }
 0x6d0   :  { %5459 = vmatpush3.msra.mxu0 %v1291_v35  ;;  %5470 = vmatpush3.msra.mxu1 %v1291_v35 }
 0x6d1   :  { %5460 = vmatprep.subr.mxu0 %v1290_v37  ;;  %5471 = vmatprep.subr.mxu1 %v1290_v37 }
 0x6d2   :  { %5461 = vmatpush3.msra.mxu0 %v1290_v37  ;;  %5472 = vmatpush3.msra.mxu1 %v1290_v37 }
 0x6d3   :  { %5462 = vmatprep.subr.mxu0 %v1289_v38  ;;  %5473 = vmatprep.subr.mxu1 %v1289_v38 }
 0x6d4   :  { %5463 = vmatpush3.msra.mxu0 %v1289_v38  ;;  %5474 = vmatpush3.msra.mxu1 %v1289_v38  ;;  %v1847_v38 = vld [vmem:[#allocation4 + $0x2c8] sm:$0xff] }
 0x6d5   :  { %5465 = vmatmul.mubr.msk.f32.vlgmr.msra.gmra.mxu0 %vm1295_vm6, %v1294_v39  ;;  %5476 = vmatmul.mubr.msk.f32.vlgmr.msra.gmra.mxu1 %vm1295_vm6, %v1382_v40  ;;  %v1934_v39 = vld [vmem:[#allocation4 + $0x2d8] sm:$0xff]  ;;  %vm3377_vm6 = vcmask 31744  }
 0x6d6   :  { %5478 = vmatprep.subr.msk.mxu0 %vm1097_vm3, %v1479_v41  ;;  %5497 = vmatprep.subr.msk.mxu1 %vm1097_vm3, %v1471_v42 }
 0x6d7   :  { %5479 = vmatpush3.msk.msra.mxu0 %vm1097_vm3, %v1479_v41  ;;  %5498 = vmatpush3.msk.msra.mxu1 %vm1097_vm3, %v1471_v42 }
 0x6d8   :  { %5480 = vmatprep.subr.mxu0 %v1478_v43  ;;  %5499 = vmatprep.subr.mxu1 %v1470_v44 }
 0x6d9   :  { %5481 = vmatpush3.msra.mxu0 %v1478_v43  ;;  %5500 = vmatpush3.msra.mxu1 %v1470_v44  ;;  %v1830_v43 = vld [vmem:[#allocation4 + $0x2b8] sm:$0x1] }
 0x6da   :  { %5482 = vmatprep.subr.mxu0 %v1477_v45  ;;  %5501 = vmatprep.subr.mxu1 %v1469_v46 }
 0x6db   :  { %5483 = vmatpush3.msra.mxu0 %v1477_v45  ;;  %5502 = vmatpush3.msra.mxu1 %v1469_v46 }
 0x6dc   :  { %5484 = vmatprep.subr.mxu0 %v1476_v47  ;;  %5503 = vmatprep.subr.mxu1 %v1468_v48 }
 0x6dd   :  { %5485 = vmatpush3.msra.mxu0 %v1476_v47  ;;  %5504 = vmatpush3.msra.mxu1 %v1468_v48  ;;  %v4874_v47 = vld [vmem:[#allocation4 + $0x2c0] ss:$0 sm:$0xff] }
 0x6de   :  { %5486 = vmatprep.subr.mxu0 %v1475_v49  ;;  %5505 = vmatprep.subr.mxu1 %v1467_v50 }
 0x6df   :  { %5487 = vmatpush3.msra.mxu0 %v1475_v49  ;;  %5506 = vmatpush3.msra.mxu1 %v1467_v50 }
 0x6e0   :  { %5488 = vmatprep.subr.mxu0 %v1474_v51  ;;  %5507 = vmatprep.subr.mxu1 %v1466_v52 }
 0x6e1   :  { %5489 = vmatpush3.msra.mxu0 %v1474_v51  ;;  %5508 = vmatpush3.msra.mxu1 %v1466_v52 }
 0x6e2   :  { %5490 = vmatprep.subr.mxu0 %v1473_v53  ;;  %5509 = vmatprep.subr.mxu1 %v1465_v54 }
 0x6e3   :  { %5491 = vmatpush3.msra.mxu0 %v1473_v53  ;;  %5510 = vmatpush3.msra.mxu1 %v1465_v54  ;;  %v1848_v54 = vld [vmem:[#allocation4 + $0x2d0] sm:$0xf] }
 0x6e4   :  { %5492 = vmatprep.subr.mxu0 %v1472_v55  ;;  %5511 = vmatprep.subr.mxu1 %v1464_v56 }
 0x6e5   :  { %5493 = vmatpush3.msra.mxu0 %v1472_v55  ;;  %5512 = vmatpush3.msra.mxu1 %v1464_v56  ;;  %v1935_v55 = vld [vmem:[#allocation4 + $0x2e0] sm:$0xf]  ;;  %v2030_v56 = vld [vmem:[#allocation4 + $0x350] sm:$0xff] }
 0x6e6   :  { %5516 = vmatprep.subr.mxu0 %v6019_v32  ;;  %5533 = vmatprep.subr.mxu1 %v6019_v32 }
 0x795   :  { %v5466_v57 = vpop.f32.mrf.mxu0  ;;  %v5477_v58 = vpop.f32.mrf.mxu1 }
 0x797   :  { %v1372_v59 = vpop.f32.mrf.mxu0  ;;  %v1455_v60 = vpop.f32.mrf.mxu1 }
 0x798   :  { %5494 = vmatprep.mubr.msk.f32.mxu0 %vm1079_vm4, %v1455_v60  ;;  %5513 = vmatprep.mubr.msk.f32.mxu1 %vm1079_vm4, %v1372_v59  ;;  %v2022_v59 = vld [vmem:[#allocation4 + $0x310] sm:$0xff]  ;;  %v2028_v60 = vld [vmem:[#allocation4 + $0x340] sm:$0xff] }
 0x799   :  { %5495 = vmatmul.mubr.msk.f32.vlgmr.msra.gmra.mxu0 %vm1079_vm4, %v5477_v58  ;;  %5514 = vmatmul.mubr.msk.f32.vlgmr.msra.gmra.mxu1 %vm1079_vm4, %v5466_v57  ;;  %v2023_v57 = vld [vmem:[#allocation4 + $0x318] sm:$0xff]  ;;  %v2029_v58 = vld [vmem:[#allocation4 + $0x348] sm:$0xff]  ;;  %vm3193_vm4 = vcmask 125952  }
 0x79a   :  { %5530 = vmatprep.mubr.msk.f32.mxu0 %vm6020_vm2, %v6019_v32  ;;  %5547 = vmatprep.mubr.msk.f32.mxu1 %vm6020_vm2, %v6019_v32 }
 0x79b   :  { %5517 = vmatpush3.msra.mxu0 %v1654_v61  ;;  %5534 = vmatpush3.msra.mxu1 %v1654_v61  ;;  %v2021_v61 = vld [vmem:[#allocation4 + $0x308] sm:$0xff] }
 0x79c   :  { %5518 = vmatprep.subr.mxu0 %v6019_v32  ;;  %5535 = vmatprep.subr.mxu1 %v6019_v32 }
 0x79d   :  { %5519 = vmatpush3.msra.mxu0 %v1653_v62  ;;  %5536 = vmatpush3.msra.mxu1 %v1653_v62  ;;  %v2027_v62 = vld [vmem:[#allocation4 + $0x338] sm:$0xff] }
 0x79e   :  { %5520 = vmatprep.subr.mxu0 %v6019_v32  ;;  %5537 = vmatprep.subr.mxu1 %v6019_v32 }
 0x79f   :  { %5521 = vmatpush3.msra.mxu0 %v1652_v63  ;;  %5538 = vmatpush3.msra.mxu1 %v1652_v63  ;;  %v2020_v63 = vld [vmem:[#allocation4 + $0x300] sm:$0xff] }
 0x7a0   :  { %5522 = vmatprep.subr.mxu0 %v6019_v32  ;;  %5539 = vmatprep.subr.mxu1 %v6019_v32 }
 0x7a1   :  { %5523 = vmatpush3.msra.mxu0 %v1651_v0  ;;  %5540 = vmatpush3.msra.mxu1 %v1651_v0  ;;  %v2026_v0 = vld [vmem:[#allocation4 + $0x330] sm:$0xff] }
 0x7a2   :  { %5524 = vmatprep.subr.mxu0 %v6019_v32  ;;  %5541 = vmatprep.subr.mxu1 %v6019_v32 }
 0x7a3   :  { %5525 = vmatpush3.msra.mxu0 %v1650_v1  ;;  %5542 = vmatpush3.msra.mxu1 %v1650_v1  ;;  %v2019_v1 = vld [vmem:[#allocation4 + $0x2f8] sm:$0xff] }
 0x7a4   :  { %5526 = vmatprep.subr.mxu0 %v6019_v32  ;;  %5543 = vmatprep.subr.mxu1 %v6019_v32 }
 0x7a5   :  { %5527 = vmatpush3.msra.mxu0 %v1649_v3  ;;  %5544 = vmatpush3.msra.mxu1 %v1649_v3  ;;  %v2025_v3 = vld [vmem:[#allocation4 + $0x328] sm:$0xff] }
 0x7a6   :  { %5528 = vmatprep.subr.mxu0 %v6019_v32  ;;  %5545 = vmatprep.subr.mxu1 %v6019_v32 }
 0x7a7   :  { %5529 = vmatpush3.msra.mxu0 %v1648_v5  ;;  %5546 = vmatpush3.msra.mxu1 %v1648_v5  ;;  %v2018_v5 = vld [vmem:[#allocation4 + $0x2f0] sm:$0xff] }
 0x859   :  { %v5496_v6 = vpop.f32.mrf.mxu0  ;;  %v5515_v7 = vpop.f32.mrf.mxu1 }
 0x85a   :  { %v1645_v8 = vadd.f32 %v5515_v7, %v5496_v6  ;;  %v2024_v6 = vld [vmem:[#allocation4 + $0x320] sm:$0xff]  ;;  %v2017_v7 = vld [vmem:[#allocation4 + $0x2e8] sm:$0xff] }
 0x85b   :  { %v1555_v9 = vpop.f32.mrf.mxu0  ;;  %v1639_v10 = vpop.f32.mrf.mxu1 }
 0x85c   :  { %v1640_v11 = vadd.f32 %v1639_v10, %v1555_v9  ;;  %v1658_v12 = vsel %vm1657_vm8, %v1645_v8, 0.0 }
 0x85e   :  { %v1656_v13 = vsel %vm1655_vm9, %v1640_v11, 0.0 }
 0x85f   :  { %v1659_v14 = vadd.f32 %v1658_v12, %v1656_v13  ;;  %v2198_v12 = vld [vmem:[#allocation4 + $0x380] sm:$0xff]  ;;  %v2197_v13 = vld [vmem:[#allocation4 + $0x378] sm:$0xff] }
 0x861   :  { %v1660_v15 = vrot.slane %v1659_v14, 4 }
 0x863   :  { %v1661_v16 = vadd.f32 %v1660_v15, %v1659_v14  ;;  %v2196_v14 = vld [vmem:[#allocation4 + $0x370] sm:$0xff]  ;;  %v2195_v15 = vld [vmem:[#allocation4 + $0x368] sm:$0xff] }
 0x865   :  { %v1662_v17 = vrot.slane %v1661_v16, 2 }
 0x867   :  { %v1663_v18 = vadd.f32 %v1662_v17, %v1661_v16  ;;  %v2194_v16 = vld [vmem:[#allocation4 + $0x360] sm:$0xff]  ;;  %v2193_v17 = vld [vmem:[#allocation4 + $0x358] sm:$0xff] }
 0x869   :  { %v1664_v19 = vrot.slane %v1663_v18, 1 }
 0x86b   :  { %v1665_v20 = vadd.f32 %v1664_v19, %v1663_v18 }
 0x86d   :  { %5531 = vmatmul.mubr.msk.f32.vlgmr.msra.gmra.mxu0 %vm1655_vm9, %v1665_v20 }
 0x86e   :  { %5554 = vmatprep.mubr.msk.f32.mxu0 %vm1849_vm10, %v1847_v38 }
 0x92d   :  { %v1735_v21 = vpop.f32.mrf.mxu0 }
 0x92e   :  { %v1742_v22 = vrot.slane %v1735_v21, %v6118_v4 }
 0x92f   :  { %v5532_v23 = vpop.f32.mrf.mxu0 }
 0x930   :  { %v1743_v24 = vsub.f32 %v1640_v11, %v1742_v22  ;;  %v1744_v25 = vsub.f32 %v1645_v8, %v1742_v22 }
 0x932   :  { %v1745_v26 = vmul.f32 %v1743_v24, %v1743_v24  ;;  %v1746_v27 = vmul.f32 %v1744_v25, %v1744_v25 }
 0x934   :  { %v1747_v28 = vsel %vm1655_vm9, %v1745_v26, 0.0  ;;  %v1748_v29 = vsel %vm1657_vm8, %v1746_v27, 0.0  ;;  %vm3792_vm8 = vcmask 39936  }
 0x935   :  { %v1749_v30 = vadd.f32 %v1748_v29, %v1747_v28 }
 0x937   :  { %v1750_v31 = vrot.slane %v1749_v30, 4 }
 0x939   :  { %v1751_v33 = vadd.f32 %v1750_v31, %v1749_v30 }
 0x93b   :  { %v1752_v34 = vrot.slane %v1751_v33, 2 }
 0x93d   :  { %v1753_v35 = vadd.f32 %v1752_v34, %v1751_v33 }
 0x93f   :  { %v1754_v36 = vrot.slane %v1753_v35, 1 }
 0x941   :  { %v1755_v37 = vadd.f32 %v1754_v36, %v1753_v35 }
 0x943   :  { %5548 = vmatmul.mubr.msk.f32.vlgmr.msra.gmra.mxu1 %vm1655_vm9, %v1755_v37 }
 0x944   :  { %5561 = vmatprep.mubr.msk.f32.mxu1 %vm1849_vm10, %v1934_v39 }
 0xa03   :  { %v1825_v40 = vpop.f32.mrf.mxu1 }
 0xa04   :  { %v1826_v41 = vadd.f32 1e-05, %v1825_v40 }
 0xa05   :  { %v5549_v42 = vpop.f32.mrf.mxu1 }
 0xa06   :  { %5876 = vrsqrt.f32 %v1826_v41 }
 0xa13   :  { %v5877_v44 = vpop.eup %5876 }
 0xa14   :  { %v1831_v45 = vmul.f32 %v5877_v44, %v1830_v43 }
 0xa16   :  { %v1835_v46 = vrot.slane %v1831_v45, %v6118_v4 }
 0xa18   :  { %v1837_v48 = vmul.f32 %v1835_v46, %v1744_v25  ;;  %v1836_v49 = vmul.f32 %v1835_v46, %v1743_v24 }
 0xa1a   :  { %v1844_v50 = vadd.f32 %v4874_v47, %v1837_v48  ;;  %v1843_v51 = vadd.f32 %v4874_v47, %v1836_v49 }
 0xa1c   :  { %v1846_v52 = vmax.f32 %v1844_v50, 0.0  ;;  %v1845_v53 = vmax.f32 %v1843_v51, 0.0 }
 0xa1e   :  { %5550 = vmatprep.subr.msk.mxu0 %vm1302_vm7, %v1846_v52  ;;  %5557 = vmatprep.subr.msk.mxu1 %vm1302_vm7, %v1846_v52 }
 0xa1f   :  { %5551 = vmatpush3.msk.msra.mxu0 %vm1302_vm7, %v1846_v52  ;;  %5558 = vmatpush3.msk.msra.mxu1 %vm1302_vm7, %v1846_v52 }
 0xa20   :  { %5552 = vmatprep.subr.mxu0 %v1845_v53  ;;  %5559 = vmatprep.subr.mxu1 %v1845_v53 }
 0xa21   :  { %5553 = vmatpush3.msra.mxu0 %v1845_v53  ;;  %5560 = vmatpush3.msra.mxu1 %v1845_v53  ;;  %v2374_v53 = vld [vmem:[#allocation4 + $0x388] sm:$0x1] }
 0xa22   :  { %5555 = vmatmul.mubr.msk.f32.vlgmr.msra.gmra.mxu0 %vm1849_vm10, %v1848_v54  ;;  %5562 = vmatmul.mubr.msk.f32.vlgmr.msra.gmra.mxu1 %vm1849_vm10, %v1935_v55  ;;  %vm3698_vm10 = vcmask 15360  }
 0xa23   :  { %5564 = vmatprep.subr.mxu0 %v2030_v56  ;;  %5581 = vmatprep.subr.mxu1 %v2023_v57 }
 0xa24   :  { %5565 = vmatpush3.msra.mxu0 %v2030_v56  ;;  %5582 = vmatpush3.msra.mxu1 %v2023_v57  ;;  %v4887_v57 = vld [vmem:[#allocation4 + $0x390] ss:$0 sm:$0xff] }
 0xa25   :  { %5566 = vmatprep.subr.mxu0 %v2029_v58  ;;  %5583 = vmatprep.subr.mxu1 %v2022_v59 }
 0xa26   :  { %5567 = vmatpush3.msra.mxu0 %v2029_v58  ;;  %5584 = vmatpush3.msra.mxu1 %v2022_v59 }
 0xa27   :  { %5568 = vmatprep.subr.mxu0 %v2028_v60  ;;  %5585 = vmatprep.subr.mxu1 %v2021_v61 }
 0xa28   :  { %5569 = vmatpush3.msra.mxu0 %v2028_v60  ;;  %5586 = vmatpush3.msra.mxu1 %v2021_v61 }
 0xa29   :  { %5570 = vmatprep.subr.mxu0 %v2027_v62  ;;  %5587 = vmatprep.subr.mxu1 %v2020_v63 }
 0xa2a   :  { %5571 = vmatpush3.msra.mxu0 %v2027_v62  ;;  %5588 = vmatpush3.msra.mxu1 %v2020_v63 }
 0xa2b   :  { %5572 = vmatprep.subr.mxu0 %v2026_v0  ;;  %5589 = vmatprep.subr.mxu1 %v2019_v1 }
 0xa2c   :  { %5573 = vmatpush3.msra.mxu0 %v2026_v0  ;;  %5590 = vmatpush3.msra.mxu1 %v2019_v1  ;;  %v2391_v0 = vld [vmem:[#allocation4 + $0x398] sm:$0x3f]  ;;  %v2469_v1 = vld [vmem:[#allocation4 + $0x3a0] sm:$0x3f] }
 0xa2d   :  { %5574 = vmatprep.subr.mxu0 %v2025_v3  ;;  %5591 = vmatprep.subr.mxu1 %v2018_v5 }
 0xa2e   :  { %5575 = vmatpush3.msra.mxu0 %v2025_v3  ;;  %5592 = vmatpush3.msra.mxu1 %v2018_v5  ;;  %v2554_v3 = vld [vmem:[#allocation4 + $0x400] sm:$0xff]  ;;  %v2548_v5 = vld [vmem:[#allocation4 + $0x3d0] sm:$0xff] }
 0xa2f   :  { %5576 = vmatprep.subr.mxu0 %v2024_v6  ;;  %5593 = vmatprep.subr.mxu1 %v2017_v7 }
 0xa30   :  { %5577 = vmatpush3.msra.mxu0 %v2024_v6  ;;  %5594 = vmatpush3.msra.mxu1 %v2017_v7  ;;  %v2553_v6 = vld [vmem:[#allocation4 + $0x3f8] sm:$0xff]  ;;  %v2547_v7 = vld [vmem:[#allocation4 + $0x3c8] sm:$0xff] }
 0xa31   :  { %5598 = vmatprep.subr.mxu0 %v6019_v32  ;;  %5613 = vmatprep.subr.mxu1 %v6019_v32 }
 0xae2   :  { %v5556_v8 = vpop.f32.mrf.mxu0  ;;  %v5563_v9 = vpop.f32.mrf.mxu1 }
 0xae4   :  { %v1925_v10 = vpop.f32.mrf.mxu0  ;;  %v2008_v11 = vpop.f32.mrf.mxu1 }
 0xae5   :  { %5578 = vmatprep.mubr.msk.f32.mxu0 %vm1655_vm9, %v2008_v11  ;;  %5595 = vmatprep.mubr.msk.f32.mxu1 %vm1655_vm9, %v1925_v10  ;;  %v2551_v10 = vld [vmem:[#allocation4 + $0x3e8] sm:$0xff]  ;;  %v2545_v11 = vld [vmem:[#allocation4 + $0x3b8] sm:$0xff] }
 0xae6   :  { %5579 = vmatmul.mubr.msk.f32.vlgmr.msra.gmra.mxu0 %vm1655_vm9, %v5563_v9  ;;  %5596 = vmatmul.mubr.msk.f32.vlgmr.msra.gmra.mxu1 %vm1655_vm9, %v5556_v8  ;;  %v2552_v8 = vld [vmem:[#allocation4 + $0x3f0] sm:$0xff]  ;;  %v2546_v9 = vld [vmem:[#allocation4 + $0x3c0] sm:$0xff]  ;;  %vm3708_vm9 = vcmask 1041408  }
 0xae7   :  { %5610 = vmatprep.mubr.msk.f32.mxu0 %vm6020_vm2, %v6019_v32  ;;  %5625 = vmatprep.mubr.msk.f32.mxu1 %vm6020_vm2, %v6019_v32 }
 0xae8   :  { %5599 = vmatpush3.msra.mxu0 %v2198_v12  ;;  %5614 = vmatpush3.msra.mxu1 %v2198_v12  ;;  %v2550_v12 = vld [vmem:[#allocation4 + $0x3e0] sm:$0xff] }
 0xae9   :  { %5600 = vmatprep.subr.mxu0 %v6019_v32  ;;  %5615 = vmatprep.subr.mxu1 %v6019_v32 }
 0xaea   :  { %5601 = vmatpush3.msra.mxu0 %v2197_v13  ;;  %5616 = vmatpush3.msra.mxu1 %v2197_v13  ;;  %v2544_v13 = vld [vmem:[#allocation4 + $0x3b0] sm:$0xff] }
 0xaeb   :  { %5602 = vmatprep.subr.mxu0 %v6019_v32  ;;  %5617 = vmatprep.subr.mxu1 %v6019_v32 }
 0xaec   :  { %5603 = vmatpush3.msra.mxu0 %v2196_v14  ;;  %5618 = vmatpush3.msra.mxu1 %v2196_v14  ;;  %v2549_v14 = vld [vmem:[#allocation4 + $0x3d8] sm:$0xff] }
 0xaed   :  { %5604 = vmatprep.subr.mxu0 %v6019_v32  ;;  %5619 = vmatprep.subr.mxu1 %v6019_v32 }
 0xaee   :  { %5605 = vmatpush3.msra.mxu0 %v2195_v15  ;;  %5620 = vmatpush3.msra.mxu1 %v2195_v15  ;;  %v2543_v15 = vld [vmem:[#allocation4 + $0x3a8] sm:$0xff] }
 0xaef   :  { %5606 = vmatprep.subr.mxu0 %v6019_v32  ;;  %5621 = vmatprep.subr.mxu1 %v6019_v32 }
 0xaf0   :  { %5607 = vmatpush3.msra.mxu0 %v2194_v16  ;;  %5622 = vmatpush3.msra.mxu1 %v2194_v16 }
 0xaf1   :  { %5608 = vmatprep.subr.mxu0 %v6019_v32  ;;  %5623 = vmatprep.subr.mxu1 %v6019_v32 }
 0xaf2   :  { %5609 = vmatpush3.msra.mxu0 %v2193_v17  ;;  %5624 = vmatpush3.msra.mxu1 %v2193_v17 }
 0xaf3   :  { %5628 = vmatprep.subr.mxu0 %v6019_v32  ;;  %5635 = vmatprep.subr.mxu1 %v6019_v32 }
 0xba6   :  { %v5580_v18 = vpop.f32.mrf.mxu0  ;;  %v5597_v19 = vpop.f32.mrf.mxu1 }
 0xba7   :  { %v2190_v20 = vadd.f32 %v5597_v19, %v5580_v18 }
 0xba8   :  { %v2103_v21 = vpop.f32.mrf.mxu0  ;;  %v2184_v22 = vpop.f32.mrf.mxu1 }
 0xba9   :  { %v2185_v23 = vadd.f32 %v2184_v22, %v2103_v21  ;;  %v2202_v24 = vsel %vm2201_vm11, %v2190_v20, 0.0  ;;  %v2702_v21 = vld [vmem:[#allocation4 + $0x410] sm:$0xff]  ;;  %v2701_v22 = vld [vmem:[#allocation4 + $0x408] sm:$0xff] }
 0xbab   :  { %v2200_v25 = vsel %vm2199_vm12, %v2185_v23, 0.0 }
 0xbac   :  { %v2203_v26 = vadd.f32 %v2202_v24, %v2200_v25 }
 0xbae   :  { %v2204_v27 = vrot.slane %v2203_v26, 4 }
 0xbb0   :  { %v2205_v28 = vadd.f32 %v2204_v27, %v2203_v26 }
 0xbb2   :  { %v2206_v29 = vrot.slane %v2205_v28, 2 }
 0xbb4   :  { %v2207_v30 = vadd.f32 %v2206_v29, %v2205_v28 }
 0xbb6   :  { %v2208_v31 = vrot.slane %v2207_v30, 1 }
 0xbb8   :  { %v2209_v33 = vadd.f32 %v2208_v31, %v2207_v30 }
 0xbba   :  { %5611 = vmatmul.mubr.msk.f32.vlgmr.msra.gmra.mxu0 %vm2199_vm12, %v2209_v33 }
 0xbbb   :  { %5632 = vmatprep.mubr.msk.f32.mxu0 %vm6020_vm2, %v6019_v32 }
 0xc7a   :  { %v2279_v34 = vpop.f32.mrf.mxu0 }
 0xc7b   :  { %v2286_v35 = vrot.slane %v2279_v34, %v6118_v4 }
 0xc7c   :  { %v5612_v36 = vpop.f32.mrf.mxu0 }
 0xc7d   :  { %v2287_v37 = vsub.f32 %v2185_v23, %v2286_v35  ;;  %v2288_v38 = vsub.f32 %v2190_v20, %v2286_v35  ;;  %v2703_v20 = vld [vmem:[#allocation4 + $0x418] sm:$0xff] }
 0xc7f   :  { %v2289_v39 = vmul.f32 %v2287_v37, %v2287_v37  ;;  %v2290_v40 = vmul.f32 %v2288_v38, %v2288_v38 }
 0xc81   :  { %v2291_v41 = vsel %vm2199_vm12, %v2289_v39, 0.0  ;;  %v2292_v42 = vsel %vm2201_vm11, %v2290_v40, 0.0  ;;  %vm3972_vm11 = vcmask 254976  }
 0xc82   :  { %v2293_v43 = vadd.f32 %v2292_v42, %v2291_v41 }
 0xc84   :  { %v2294_v44 = vrot.slane %v2293_v43, 4 }
 0xc86   :  { %v2295_v45 = vadd.f32 %v2294_v44, %v2293_v43 }
 0xc88   :  { %v2296_v46 = vrot.slane %v2295_v45, 2 }
 0xc8a   :  { %v2297_v47 = vadd.f32 %v2296_v46, %v2295_v45 }
 0xc8c   :  { %v2298_v48 = vrot.slane %v2297_v47, 1 }
 0xc8e   :  { %v2299_v49 = vadd.f32 %v2298_v48, %v2297_v47 }
 0xc90   :  { %5626 = vmatmul.mubr.msk.f32.vlgmr.msra.gmra.mxu1 %vm2199_vm12, %v2299_v49 }
 0xc91   :  { %5639 = vmatprep.mubr.msk.f32.mxu1 %vm6020_vm2, %v6019_v32 }
 0xd50   :  { %v2369_v50 = vpop.f32.mrf.mxu1 }
 0xd51   :  { %v2370_v51 = vadd.f32 1e-05, %v2369_v50 }
 0xd52   :  { %v5627_v52 = vpop.f32.mrf.mxu1 }
 0xd53   :  { %5878 = vrsqrt.f32 %v2370_v51  ;;  %v2873_v51 = vld [vmem:[#allocation4 + $0x420] sm:$0x1] }
 0xd60   :  { %v5879_v54 = vpop.eup %5878 }
 0xd61   :  { %v2375_v55 = vmul.f32 %v5879_v54, %v2374_v53 }
 0xd63   :  { %v2379_v56 = vrot.slane %v2375_v55, %v6118_v4  ;;  %v4896_v55 = vld [vmem:[#allocation4 + $0x428] ss:$0 sm:$0xff] }
 0xd65   :  { %v2381_v58 = vmul.f32 %v2379_v56, %v2288_v38  ;;  %v2380_v59 = vmul.f32 %v2379_v56, %v2287_v37 }
 0xd67   :  { %v2388_v60 = vadd.f32 %v4887_v57, %v2381_v58  ;;  %v2387_v61 = vadd.f32 %v4887_v57, %v2380_v59  ;;  %v2887_v59 = vld [vmem:[#allocation4 + $0x430] sm:$0xf] }
 0xd69   :  { %v2390_v62 = vmax.f32 %v2388_v60, 0.0  ;;  %v2389_v63 = vmax.f32 %v2387_v61, 0.0  ;;  %v2965_v60 = vld [vmem:[#allocation4 + $0x438] sm:$0xf]  ;;  %v3044_v61 = vld [vmem:[#allocation4 + $0x468] sm:$0xff] }
 0xd6b   :  { %5629 = vmatpush3.msk.msra.mxu0 %vm1097_vm3, %v2390_v62  ;;  %5636 = vmatpush3.msk.msra.mxu1 %vm1097_vm3, %v2390_v62  ;;  %v3041_v62 = vld [vmem:[#allocation4 + $0x450] sm:$0xff] }
 0xd6c   :  { %5630 = vmatprep.subr.mxu0 %v6019_v32  ;;  %5637 = vmatprep.subr.mxu1 %v6019_v32 }
 0xd6d   :  { %5631 = vmatpush3.msra.mxu0 %v2389_v63  ;;  %5638 = vmatpush3.msra.mxu1 %v2389_v63  ;;  %v3043_v63 = vld [vmem:[#allocation4 + $0x460] sm:$0xff] }
 0xd6e   :  { %5633 = vmatmul.mubr.msk.f32.vlgmr.msra.gmra.mxu0 %vm2392_vm13, %v2391_v0  ;;  %5640 = vmatmul.mubr.msk.f32.vlgmr.msra.gmra.mxu1 %vm2392_vm13, %v2469_v1  ;;  %v3040_v0 = vld [vmem:[#allocation4 + $0x448] sm:$0xff]  ;;  %v3042_v1 = vld [vmem:[#allocation4 + $0x458] sm:$0xff] }
 0xd6f   :  { %5642 = vmatprep.subr.mxu0 %v6019_v32  ;;  %5657 = vmatprep.subr.mxu1 %v6019_v32 }
 0xd70   :  { %5643 = vmatpush3.msra.mxu0 %v2554_v3  ;;  %5658 = vmatpush3.msra.mxu1 %v2548_v5  ;;  %v3039_v3 = vld [vmem:[#allocation4 + $0x440] sm:$0xff] }
 0xd71   :  { %5644 = vmatprep.subr.mxu0 %v6019_v32  ;;  %5659 = vmatprep.subr.mxu1 %v6019_v32 }
 0xd72   :  { %5645 = vmatpush3.msra.mxu0 %v2553_v6  ;;  %5660 = vmatpush3.msra.mxu1 %v2547_v7 }
 0xd73   :  { %5646 = vmatprep.subr.mxu0 %v6019_v32  ;;  %5661 = vmatprep.subr.mxu1 %v6019_v32 }
 0xd74   :  { %5647 = vmatpush3.msra.mxu0 %v2552_v8  ;;  %5662 = vmatpush3.msra.mxu1 %v2546_v9  ;;  %v3192_v9 = vld [vmem:[#allocation4 + $0x478] sm:$0xff] }
 0xd75   :  { %5648 = vmatprep.subr.mxu0 %v6019_v32  ;;  %5663 = vmatprep.subr.mxu1 %v6019_v32 }
 0xd76   :  { %5649 = vmatpush3.msra.mxu0 %v2551_v10  ;;  %5664 = vmatpush3.msra.mxu1 %v2545_v11  ;;  %v3191_v10 = vld [vmem:[#allocation4 + $0x470] sm:$0xff] }
 0xd77   :  { %5650 = vmatprep.subr.mxu0 %v6019_v32  ;;  %5665 = vmatprep.subr.mxu1 %v6019_v32 }
 0xd78   :  { %5651 = vmatpush3.msra.mxu0 %v2550_v12  ;;  %5666 = vmatpush3.msra.mxu1 %v2544_v13 }
 0xd79   :  { %5652 = vmatprep.subr.mxu0 %v6019_v32  ;;  %5667 = vmatprep.subr.mxu1 %v6019_v32 }
 0xd7a   :  { %5654 = vmatprep.mubr.msk.f32.mxu0 %vm6020_vm2, %v6019_v32  ;;  %5669 = vmatprep.mubr.msk.f32.mxu1 %vm6020_vm2, %v6019_v32 }
 0xd7b   :  { %5653 = vmatpush3.msra.mxu0 %v2549_v14  ;;  %5668 = vmatpush3.msra.mxu1 %v2543_v15 }
 0xd7c   :  { %5672 = vmatprep.subr.mxu0 %v6019_v32  ;;  %5681 = vmatprep.subr.mxu1 %v6019_v32 }
 0xe2e   :  { %v2465_v16 = vpop.f32.mrf.mxu0  ;;  %v2539_v17 = vpop.f32.mrf.mxu1 }
 0xe2f   :  { %5655 = vmatmul.mubr.msk.f32.vlgmr.msra.gmra.mxu0 %vm2199_vm12, %v2539_v17  ;;  %5670 = vmatmul.mubr.msk.f32.vlgmr.msra.gmra.mxu1 %vm2199_vm12, %v2465_v16 }
 0xe30   :  { %v5634_v18 = vpop.f32.mrf.mxu0  ;;  %v5641_v19 = vpop.f32.mrf.mxu1  ;;  %5678 = vmatprep.mubr.msk.f32.mxu0 %vm6020_vm2, %v6019_v32  ;;  %5687 = vmatprep.mubr.msk.f32.mxu1 %vm6020_vm2, %v6019_v32 }
 0xe31   :  { %5673 = vmatpush3.msra.mxu0 %v2703_v20  ;;  %5682 = vmatpush3.msra.mxu1 %v2703_v20 }
 0xe32   :  { %5674 = vmatprep.subr.mxu0 %v6019_v32  ;;  %5683 = vmatprep.subr.mxu1 %v6019_v32 }
 0xe33   :  { %5675 = vmatpush3.msra.mxu0 %v2702_v21  ;;  %5684 = vmatpush3.msra.mxu1 %v2702_v21 }
 0xe34   :  { %5676 = vmatprep.subr.mxu0 %v6019_v32  ;;  %5685 = vmatprep.subr.mxu1 %v6019_v32 }
 0xe35   :  { %5677 = vmatpush3.msra.mxu0 %v2701_v22  ;;  %5686 = vmatpush3.msra.mxu1 %v2701_v22 }
 0xe36   :  { %5690 = vmatprep.subr.mxu0 %v6019_v32  ;;  %5695 = vmatprep.subr.mxu1 %v6019_v32 }
 0xeef   :  { %v2624_v23 = vpop.f32.mrf.mxu0  ;;  %v2697_v24 = vpop.f32.mrf.mxu1 }
 0xef0   :  { %v2698_v25 = vadd.f32 %v2697_v24, %v2624_v23 }
 0xef1   :  { %v5656_v26 = vpop.f32.mrf.mxu0  ;;  %v5671_v27 = vpop.f32.mrf.mxu1 }
 0xef2   :  { %v2705_v28 = vsel %vm2704_vm14, %v2698_v25, 0.0 }
 0xef3   :  { %v2706_v29 = vrot.slane %v2705_v28, 4 }
 0xef5   :  { %v2707_v30 = vadd.f32 %v2706_v29, %v2705_v28 }
 0xef7   :  { %v2708_v31 = vrot.slane %v2707_v30, 2 }
 0xef9   :  { %v2709_v33 = vadd.f32 %v2708_v31, %v2707_v30 }
 0xefb   :  { %v2710_v34 = vrot.slane %v2709_v33, 1 }
 0xefd   :  { %v2711_v35 = vadd.f32 %v2710_v34, %v2709_v33 }
 0xeff   :  { %5679 = vmatmul.mubr.msk.f32.vlgmr.msra.gmra.mxu0 %vm2712_vm15, %v2711_v35 }
 0xf00   :  { %5692 = vmatprep.mubr.msk.f32.mxu0 %vm6020_vm2, %v6019_v32 }
 0xfbf   :  { %v2782_v36 = vpop.f32.mrf.mxu0 }
 0xfc0   :  { %v2789_v37 = vrot.slane %v2782_v36, %v6118_v4  ;;  %v3455_v36 = vld [vmem:[#allocation4 + $0x4a0] sm:$0xff] }
 0xfc1   :  { %v5680_v38 = vpop.f32.mrf.mxu0 }
 0xfc2   :  { %v2790_v39 = vsub.f32 %v2698_v25, %v2789_v37 }
 0xfc4   :  { %v2791_v40 = vmul.f32 %v2790_v39, %v2790_v39 }
 0xfc6   :  { %v2792_v41 = vsel %vm2704_vm14, %v2791_v40, 0.0  ;;  %v3362_v40 = vld [vmem:[#allocation4 + $0x480] sm:$0x1] }
 0xfc7   :  { %v2793_v42 = vrot.slane %v2792_v41, 4 }
 0xfc9   :  { %v2794_v43 = vadd.f32 %v2793_v42, %v2792_v41 }
 0xfcb   :  { %v2795_v44 = vrot.slane %v2794_v43, 2 }
 0xfcd   :  { %v2796_v45 = vadd.f32 %v2795_v44, %v2794_v43  ;;  %v4905_v44 = vld [vmem:[#allocation4 + $0x488] ss:$0 sm:$0xff] }
 0xfcf   :  { %v2797_v46 = vrot.slane %v2796_v45, 1 }
 0xfd1   :  { %v2798_v47 = vadd.f32 %v2797_v46, %v2796_v45 }
 0xfd3   :  { %5688 = vmatmul.mubr.msk.f32.vlgmr.msra.gmra.mxu1 %vm2712_vm15, %v2798_v47 }
 0xfd4   :  { %5697 = vmatprep.mubr.msk.f32.mxu1 %vm6020_vm2, %v6019_v32 }
0x1093   :  { %v2868_v48 = vpop.f32.mrf.mxu1 }
0x1094   :  { %v2869_v49 = vadd.f32 1e-05, %v2868_v48  ;;  %v3376_v48 = vld [vmem:[#allocation4 + $0x490] sm:$0x3] }
0x1095   :  { %v5689_v50 = vpop.f32.mrf.mxu1 }
0x1096   :  { %5880 = vrsqrt.f32 %v2869_v49  ;;  %v3454_v49 = vld [vmem:[#allocation4 + $0x498] sm:$0xff] }
0x10a3   :  { %v5881_v52 = vpop.eup %5880 }
0x10a4   :  { %v2874_v53 = vmul.f32 %v5881_v52, %v2873_v51  ;;  %v3534_v51 = vld [vmem:[#allocation4 + $0x4b0] sm:$0xff]  ;;  %v3615_v52 = vld [vmem:[#allocation4 + $0x4c8] sm:$0xff] }
0x10a6   :  { %v2878_v54 = vrot.slane %v2874_v53, %v6118_v4  ;;  %v4908_v53 = vld [vmem:[#allocation4 + $0x4a8] ss:$0 sm:$0xff] }
0x10a8   :  { %v2879_v56 = vmul.f32 %v2878_v54, %v2790_v39 }
0x10aa   :  { %v2885_v57 = vadd.f32 %v4896_v55, %v2879_v56 }
0x10ac   :  { %v2886_v58 = vmax.f32 %v2885_v57, 0.0  ;;  %v3694_v57 = vld [vmem:[#allocation4 + $0x4c0] sm:$0x1f] }
0x10ae   :  { %5691 = vmatpush3.msk.msra.mxu0 %vm1302_vm7, %v2886_v58  ;;  %5696 = vmatpush3.msk.msra.mxu1 %vm1302_vm7, %v2886_v58  ;;  %vm3802_vm7 = vcmask 1044480   ;;  %v3691_v58 = vld [vmem:[%s6645_s1] sm:$0xff] }
0x10af   :  { %5693 = vmatmul.mubr.msk.f32.vlgmr.msra.gmra.mxu0 %vm2888_vm0, %v2887_v59  ;;  %5698 = vmatmul.mubr.msk.f32.vlgmr.msra.gmra.mxu1 %vm2888_vm0, %v2965_v60  ;;  %v3894_v59 = vld [vmem:[#allocation4 + $0x4e0] sm:$0xff]  ;;  %v3895_v60 = vld [vmem:[#allocation4 + $0x4e8] sm:$0xff] }
0x10b0   :  { %5700 = vmatprep.subr.mxu0 %v6019_v32  ;;  %5709 = vmatprep.subr.mxu1 %v6019_v32 }
0x10b1   :  { %5701 = vmatpush3.msra.mxu0 %v3044_v61  ;;  %5710 = vmatpush3.msra.mxu1 %v3041_v62  ;;  %v6361_v61 = vpack.c.bf16 %v3895_v60, %v3894_v59  ;;  %v3692_v62 = vld [vmem:[%s6645_s1 + $0x8] sm:$0xff] }
0x10b2   :  { %5702 = vmatprep.subr.mxu0 %v6019_v32  ;;  %5711 = vmatprep.subr.mxu1 %v6019_v32 }
0x10b3   :  { %5703 = vmatpush3.msra.mxu0 %v3043_v63  ;;  %5712 = vmatpush3.msra.mxu1 %v3040_v0  ;;  %v3892_v63 = vld [vmem:[#allocation4 + $0x4d0] sm:$0xff]  ;;  %v3893_v0 = vld [vmem:[#allocation4 + $0x4d8] sm:$0xff] }
0x10b4   :  { %5704 = vmatprep.subr.mxu0 %v6019_v32  ;;  %5713 = vmatprep.subr.mxu1 %v6019_v32 }
0x10b5   :  { %5706 = vmatprep.mubr.msk.f32.mxu0 %vm6020_vm2, %v6019_v32  ;;  %5715 = vmatprep.mubr.msk.f32.mxu1 %vm6020_vm2, %v6019_v32 }
0x10b6   :  { %5705 = vmatpush3.msra.mxu0 %v3042_v1  ;;  %5714 = vmatpush3.msra.mxu1 %v3039_v3  ;;  %v6371_v1 = vpack.c.bf16 %v3893_v0, %v3892_v63  ;;  %v3693_v3 = vld [vmem:[%s6645_s1 + $0x10] sm:$0xff]  ;;  %s6021_s1 = smov 64  }
0x10b7   :  { %5718 = vmatprep.subr.mxu0 %v6019_v32  ;;  %5725 = vmatprep.subr.mxu1 %v6019_v32 }
0x116f   :  { %v2961_v5 = vpop.f32.mrf.mxu0  ;;  %v3035_v6 = vpop.f32.mrf.mxu1 }
0x1170   :  { %5707 = vmatmul.mubr.msk.f32.vlgmr.msra.gmra.mxu0 %vm2712_vm15, %v3035_v6  ;;  %5716 = vmatmul.mubr.msk.f32.vlgmr.msra.gmra.mxu1 %vm2712_vm15, %v2961_v5  ;;  %v4910_v5 = vld [vmem:[#allocation4 + $0x4b8] ss:$0 sm:$0xff]  ;;  %v4912_v6 = vld [vmem:[#allocation4 + $0x4f0] ss:$0 sm:$0xff] }
0x1171   :  { %v5694_v7 = vpop.f32.mrf.mxu0  ;;  %v5699_v8 = vpop.f32.mrf.mxu1  ;;  %5722 = vmatprep.mubr.msk.f32.mxu0 %vm6020_vm2, %v6019_v32  ;;  %5729 = vmatprep.mubr.msk.f32.mxu1 %vm6020_vm2, %v6019_v32 }
0x1172   :  { %5719 = vmatpush3.msra.mxu0 %v3192_v9  ;;  %5726 = vmatpush3.msra.mxu1 %v3192_v9 }
0x1173   :  { %5720 = vmatprep.subr.mxu0 %v6019_v32  ;;  %5727 = vmatprep.subr.mxu1 %v6019_v32 }
0x1174   :  { %5721 = vmatpush3.msra.mxu0 %v3191_v10  ;;  %5728 = vmatpush3.msra.mxu1 %v3191_v10 }
0x1175   :  { %5732 = vmatprep.subr.mxu0 %v6019_v32  ;;  %5737 = vmatprep.subr.mxu1 %v6019_v32 }
0x1230   :  { %v3114_v11 = vpop.f32.mrf.mxu0  ;;  %v3187_v12 = vpop.f32.mrf.mxu1 }
0x1231   :  { %v3188_v13 = vadd.f32 %v3187_v12, %v3114_v11  ;;  %v3695_v11 = vld [vmem:[#allocation4 + $0x4f8] sm:$0xff] }
0x1232   :  { %v5708_v14 = vpop.f32.mrf.mxu0  ;;  %v5717_v15 = vpop.f32.mrf.mxu1 }
0x1233   :  { %v3194_v16 = vsel %vm3193_vm4, %v3188_v13, 0.0  ;;  %v3696_v14 = vld [vmem:[#allocation4 + $0x500] sm:$0xff]  ;;  %v3697_v15 = vld [vmem:[#allocation4 + $0x508] sm:$0xff] }
0x1234   :  { %v3195_v17 = vrot.slane %v3194_v16, 4 }
0x1236   :  { %v3196_v18 = vadd.f32 %v3195_v17, %v3194_v16 }
0x1238   :  { %v3197_v19 = vrot.slane %v3196_v18, 2 }
0x123a   :  { %v3198_v20 = vadd.f32 %v3197_v19, %v3196_v18 }
0x123c   :  { %v3199_v21 = vrot.slane %v3198_v20, 1 }
0x123e   :  { %v3200_v22 = vadd.f32 %v3199_v21, %v3198_v20 }
0x1240   :  { %5723 = vmatmul.mubr.msk.f32.vlgmr.msra.gmra.mxu0 %vm3201_vm5, %v3200_v22 }
0x1241   :  { %5734 = vmatprep.mubr.msk.f32.mxu0 %vm6020_vm2, %v6019_v32 }
0x1300   :  { %v3271_v23 = vpop.f32.mrf.mxu0 }
0x1301   :  { %v3278_v24 = vrot.slane %v3271_v23, %v6118_v4 }
0x1302   :  { %v5724_v25 = vpop.f32.mrf.mxu0 }
0x1303   :  { %v3279_v26 = vsub.f32 %v3188_v13, %v3278_v24 }
0x1305   :  { %v3280_v27 = vmul.f32 %v3279_v26, %v3279_v26 }
0x1307   :  { %v3281_v28 = vsel %vm3193_vm4, %v3280_v27, 0.0 }
0x1308   :  { %v3282_v29 = vrot.slane %v3281_v28, 4 }
0x130a   :  { %v3283_v30 = vadd.f32 %v3282_v29, %v3281_v28 }
0x130c   :  { %v3284_v31 = vrot.slane %v3283_v30, 2 }
0x130e   :  { %v3285_v33 = vadd.f32 %v3284_v31, %v3283_v30 }
0x1310   :  { %v3286_v34 = vrot.slane %v3285_v33, 1 }
0x1312   :  { %v3287_v35 = vadd.f32 %v3286_v34, %v3285_v33 }
0x1314   :  { %5730 = vmatmul.mubr.msk.f32.vlgmr.msra.gmra.mxu1 %vm3201_vm5, %v3287_v35 }
0x1315   :  { %5741 = vmatprep.mubr.msk.f32.mxu1 %vm6020_vm2, %v6019_v32  ;;  %5738 = vmatpush3.msra.mxu1 %v3455_v36 }
0x1316   :  { %5739 = vmatprep.subr.mxu1 %v6019_v32 }
0x1317   :  { %5740 = vmatpush3.msra.mxu1 %v3454_v49 }
0x1318   :  { %5749 = vmatprep.subr.mxu1 %v6019_v32 }
0x13d4   :  { %v3357_v37 = vpop.f32.mrf.mxu1 }
0x13d5   :  { %v3358_v38 = vadd.f32 1e-05, %v3357_v37 }
0x13d6   :  { %v5731_v39 = vpop.f32.mrf.mxu1 }
0x13d7   :  { %5882 = vrsqrt.f32 %v3358_v38 }
0x13e4   :  { %v5883_v41 = vpop.eup %5882 }
0x13e5   :  { %v3363_v42 = vmul.f32 %v5883_v41, %v3362_v40 }
0x13e7   :  { %v3367_v43 = vrot.slane %v3363_v42, %v6118_v4 }
0x13e9   :  { %v3368_v45 = vmul.f32 %v3367_v43, %v3279_v26 }
0x13eb   :  { %v3374_v46 = vadd.f32 %v4905_v44, %v3368_v45 }
0x13ed   :  { %v3375_v47 = vmax.f32 %v3374_v46, 0.0 }
0x13ef   :  { %5733 = vmatpush3.msk.msra.mxu0 %vm1097_vm3, %v3375_v47  ;;  %vm3540_vm3 = vcmask 64512  }
0x13f0   :  { %5735 = vmatmul.mubr.msk.f32.vlgmr.msra.gmra.mxu0 %vm3377_vm6, %v3376_v48  ;;  %5744 = vmatprep.subr.mxu0 %v6019_v32 }
0x13f1   :  { %5746 = vmatprep.mubr.msk.f32.mxu0 %vm6020_vm2, %v6019_v32  ;;  %5745 = vmatpush3.msra.mxu0 %v3534_v51 }
0x13f2   :  { %5754 = vmatprep.subr.mxu0 %v6019_v32 }
0x14b0   :  { %v3450_v50 = vpop.f32.mrf.mxu0 }
0x14b1   :  { %5742 = vmatmul.mubr.msk.f32.vlgmr.msra.gmra.mxu1 %vm3201_vm5, %v3450_v50 }
0x14b2   :  { %v5736_v4 = vpop.f32.mrf.mxu0  ;;  %5751 = vmatprep.mubr.msk.f32.mxu1 %vm6020_vm2, %v6019_v32  ;;  %5750 = vmatpush3.msra.mxu1 %v3615_v52 }
0x14b3   :  { %5765 = vmatprep.subr.mxu1 %v6019_v32 }
0x1571   :  { %v3530_v54 = vpop.f32.mrf.mxu1 }
0x1572   :  { %v3531_v55 = vadd.f32 %v4908_v53, %v3530_v54 }
0x1573   :  { %v5743_v56 = vpop.f32.mrf.mxu1 }
0x1574   :  { %5747 = vmatmul.mubr.msk.f32.vlgmr.msra.gmra.mxu0 %vm3540_vm3, %v3531_v55  ;;  %5752 = vmatmul.mubr.msk.f32.vlgmr.msra.gmra.mxu1 %vm3540_vm3, %v3531_v55 }
0x1575   :  { %5756 = vmatprep.mubr.msk.f32.mxu0 %vm6020_vm2, %v6019_v32  ;;  %5767 = vmatprep.mubr.msk.f32.mxu1 %vm6020_vm2, %v6019_v32 }
0x1576   :  { %5766 = vmatpush3.msk.msra.mxu1 %vm3802_vm7, %v3694_v57 }
0x1577   :  { %5784 = vmatprep.subr.bf16.mxu1 %v6019_v32 }
0x1578   :  { %5768 = vmatmul.mubr.msk.f32.vlgmr.msra.gmra.mxu1 %vm3792_vm8, %v3691_v58 }
0x1579   :  { %5770 = vmatprep.mubr.msk.f32.mxu1 %vm6020_vm2, %v6019_v32  ;;  %5785 = vmatpush3.bf16.msra.mxu1 %v6361_v61 }
0x157a   :  { %5786 = vmatprep.subr.bf16.mxu1 %v6019_v32 }
0x157c   :  { %5771 = vmatmul.mubr.msk.f32.gmra.mxu1 %vm3792_vm8, %v3692_v62 }
0x157d   :  { %5773 = vmatprep.mubr.msk.f32.mxu1 %vm6020_vm2, %v6019_v32  ;;  %5787 = vmatpush3.bf16.msra.mxu1 %v6371_v1 }
0x157e   :  { %5800 = vmatprep.subr.bf16.mxu1 %v6019_v32 }
0x1580   :  { %5774 = vmatmul.mubr.msk.f32.gmra.mxu1 %vm3792_vm8, %v3693_v3 }
0x1581   :  { %5788 = vmatprep.mubr.msk.bf16.mxu1 %vm6020_vm2, %v6019_v32 }
0x1634   :  { %v3610_v7 = vpop.f32.mrf.mxu0  ;;  %v3687_v8 = vpop.f32.mrf.mxu1 }
0x1635   :  { %v3611_v9 = vadd.f32 %v4910_v5, %v3610_v7  ;;  %v3688_v10 = vadd.f32 %v4912_v6, %v3687_v8 }
0x1636   :  { %v5748_v12 = vpop.f32.mrf.mxu0  ;;  %v5753_v13 = vpop.f32.mrf.mxu1 }
0x1637   :  { %5884 = vtanh.f32 %v3611_v9  ;;  %5755 = vmatpush3.msk.msra.mxu0 %vm3708_vm9, %v3688_v10 }
0x1638   :  { %5757 = vmatmul.mubr.msk.f32.vlgmr.msra.gmra.mxu0 %vm3698_vm10, %v3695_v11  ;;  %5776 = vmatprep.subr.bf16.mxu0 %v6019_v32  ;;  %v3872_v18 = vpop.f32.mrf.mxu1 }
0x1639   :  { %5759 = vmatprep.mubr.msk.f32.mxu0 %vm6020_vm2, %v6019_v32  ;;  %5777 = vmatpush3.bf16.msra.mxu0 %v6361_v61 }
0x163a   :  { %5778 = vmatprep.subr.bf16.mxu0 %v6019_v32  ;;  %v5769_v19 = vpop.f32.mrf.mxu1 }
0x163c   :  { %5760 = vmatmul.mubr.msk.f32.gmra.mxu0 %vm3698_vm10, %v3696_v14  ;;  %v3877_v20 = vpop.f32.mrf.mxu1 }
0x163d   :  { %5762 = vmatprep.mubr.msk.f32.mxu0 %vm6020_vm2, %v6019_v32  ;;  %5779 = vmatpush3.bf16.msra.mxu0 %v6371_v1 }
0x163e   :  { %5792 = vmatprep.subr.bf16.mxu0 %v6019_v32  ;;  %v5772_v21 = vpop.f32.mrf.mxu1 }
0x1640   :  { %5763 = vmatmul.mubr.msk.f32.gmra.mxu0 %vm3698_vm10, %v3697_v15  ;;  %v3882_v22 = vpop.f32.mrf.mxu1 }
0x1641   :  { %5780 = vmatprep.mubr.msk.bf16.mxu0 %vm6020_vm2, %v6019_v32 }
0x1642   :  { %v5775_v23 = vpop.f32.mrf.mxu1 }
0x1644   :  { %v5885_v16 = vpop.eup %5884 }
0x1645   :  { %v3899_v17 = vpack.c.bf16 %v5885_v16, %v5885_v16 }
0x1647   :  { %5781 = vmatmul.mubr.msk.bf16.vlgmr.msra.gmra.mxu0 %vm248_vm1, %v3899_v17 }
0x1648   :  { %5793 = vmatpush3.bf16.msra.mxu0 %v6361_v61  ;;  %5796 = vmatprep.mubr.msk.bf16.mxu0 %vm6020_vm2, %v6019_v32 }
0x1649   :  { %5794 = vmatprep.subr.bf16.mxu0 %v6019_v32 }
0x164c   :  { %5795 = vmatpush3.bf16.msra.mxu0 %v6371_v1 }
0x164d   :  { %5808 = vmatprep.subr.bf16.mxu0 %v6019_v32 }
0x16f8   :  { %v3778_v24 = vpop.f32.mrf.mxu0 }
0x16f9   :  { %v3873_v25 = vadd.f32 %v3872_v18, %v3778_v24 }
0x16fa   :  { %v5758_v26 = vpop.f32.mrf.mxu0 }
0x16fb   :  { %3886 = vst [vmem:[#allocation2] sm:$0xff] %v3873_v25 }
0x16fc   :  { %v3783_v27 = vpop.f32.mrf.mxu0 }
0x16fd   :  { %v3878_v28 = vadd.f32 %v3877_v20, %v3783_v27 }
0x16fe   :  { %v5761_v29 = vpop.f32.mrf.mxu0 }
0x16ff   :  { %3887 = vst [vmem:[#allocation2 + $0x8] sm:$0xff] %v3878_v28 }
0x1700   :  { %v3788_v30 = vpop.f32.mrf.mxu0 }
0x1701   :  { %v3883_v31 = vadd.f32 %v3882_v22, %v3788_v30 }
0x1702   :  { %v5764_v33 = vpop.f32.mrf.mxu0  ;;  %v3898_v34 = vld [vmem:[#allocation2] sm:$0x3]  ;;  %v3974_v55 = vld [vmem:[#allocation2 + $0x2] sm:$0x3]  ;;  %v4052_v17 = vld [vmem:[#allocation2 + $0x4] sm:$0x3] }
0x1703   :  { %3888 = vst [vmem:[#allocation2 + $0x10] sm:$0xff] %v3883_v31 }
0x1707   :  { %v3937_v35 = vpop.f32.mrf.mxu0 }
0x1708   :  { %v3943_v36 = vadd.f32 %v3937_v35, %v3898_v34 }
0x1709   :  { %v5782_v37 = vpop.f32.mrf.mxu0 }
0x170a   :  { %5886 = vtanh.f32 %v3943_v36  ;;  %v3944_v41 = vsub.f32 0.0, %v3943_v36 }
0x170b   :  { %v3940_v38 = vpop.f32.mrf.mxu0 }
0x170c   :  { %v3945_v42 = vmul.f32 1.442695, %v3944_v41 }
0x170d   :  { %v5783_v39 = vpop.f32.mrf.mxu0 }
0x170e   :  { %5888 = vpow2.f32 %v3945_v42 }
0x1717   :  { %v5887_v40 = vpop.eup %5886 }
0x1718   :  { %3953 = vrot.lane.b32.xlu0 %v5887_v40, %s6021_s1  ;;  %v4130_v40 = vld [vmem:[#allocation2 + $0x6] sm:$0x3] }
0x171b   :  { %v5889_v43 = vpop.eup %5888 }
0x171c   :  { %v3947_v44 = vadd.f32 1.0, %v5889_v43 }
0x171e   :  { %5890 = vrcp.f32 %v3947_v44 }
0x172b   :  { %v5891_v45 = vpop.eup %5890 }
0x172c   :  { %v3951_v48 = vmul.f32 %v5891_v45, %v5885_v16 }
0x178a   :  { %v3954_v46 = vpop.permute.xlu0 %3953 }
0x178b   :  { %v3956_v47 = vmul.f32 %v5891_v45, %v3954_v46 }
0x178d   :  { %3958 = vrot.lane.b32.xlu0 %v3956_v47, %s6022_s12 }
0x17ff   :  { %v3959_v49 = vpop.permute.xlu0 %3958 }
0x1800   :  { %v3961_v50 = vadd.f32 %v3959_v49, %v3951_v48 }
0x1802   :  { %5892 = vtanh.f32 %v3961_v50 }
0x180f   :  { %v5893_v4 = vpop.eup %5892 }
0x1810   :  { %3964 = vrot.lane.b32.xlu1 %v5893_v4, %s6021_s1 }
0x1882   :  { %v3965_v51 = vpop.permute.xlu1 %3964 }
0x1883   :  { %v6405_v52 = vmul.f32 %v5891_v45, %v3965_v51 }
0x1885   :  { %v3975_v53 = vpack.c.bf16 %v6405_v52, %v6405_v52 }
0x1887   :  { %3977 = vrot.lane.b32.xlu1 %v3975_v53, %s6022_s12 }
0x18f9   :  { %v3978_v54 = vpop.permute.xlu1 %3977 }
0x18fa   :  { %5789 = vmatmul.mubr.msk.bf16.vlgmr.msra.gmra.mxu1 %vm248_vm1, %v3978_v54 }
0x18fb   :  { %5801 = vmatpush3.bf16.msra.mxu1 %v6361_v61  ;;  %5804 = vmatprep.mubr.msk.bf16.mxu1 %vm6020_vm2, %v6019_v32 }
0x18fc   :  { %5802 = vmatprep.subr.bf16.mxu1 %v6019_v32 }
0x18ff   :  { %5803 = vmatpush3.bf16.msra.mxu1 %v6371_v1 }
0x1900   :  { %5816 = vmatprep.subr.bf16.mxu1 %v6019_v32 }
0x19ba   :  { %v4016_v56 = vpop.f32.mrf.mxu1 }
0x19bb   :  { %v4022_v57 = vadd.f32 %v4016_v56, %v3974_v55 }
0x19bc   :  { %v5790_v58 = vpop.f32.mrf.mxu1 }
0x19bd   :  { %5894 = vtanh.f32 %v4022_v57  ;;  %v4023_v63 = vsub.f32 0.0, %v4022_v57 }
0x19be   :  { %v4019_v59 = vpop.f32.mrf.mxu1 }
0x19bf   :  { %v4024_v0 = vmul.f32 1.442695, %v4023_v63  ;;  %v4208_v63 = vld [vmem:[#allocation2 + $0x8] sm:$0x3] }
0x19c0   :  { %v5791_v60 = vpop.f32.mrf.mxu1 }
0x19c1   :  { %5896 = vpow2.f32 %v4024_v0 }
0x19ca   :  { %v5895_v62 = vpop.eup %5894 }
0x19cb   :  { %4032 = vrot.lane.b32.xlu0 %v5895_v62, %s6021_s1 }
0x19ce   :  { %v5897_v3 = vpop.eup %5896 }
0x19cf   :  { %v4026_v5 = vadd.f32 1.0, %v5897_v3 }
0x19d1   :  { %5898 = vrcp.f32 %v4026_v5 }
0x19de   :  { %v5899_v6 = vpop.eup %5898 }
0x19df   :  { %v4030_v9 = vmul.f32 %v5899_v6, %v3961_v50 }
0x1a3d   :  { %v4033_v7 = vpop.permute.xlu0 %4032 }
0x1a3e   :  { %v4035_v8 = vmul.f32 %v5899_v6, %v4033_v7 }
0x1a40   :  { %4037 = vrot.lane.b32.xlu1 %v4035_v8, %s6022_s12 }
0x1ab2   :  { %v4038_v10 = vpop.permute.xlu1 %4037 }
0x1ab3   :  { %v4040_v11 = vadd.f32 %v4038_v10, %v4030_v9 }
0x1ab5   :  { %5900 = vtanh.f32 %v4040_v11 }
0x1ac2   :  { %v5901_v12 = vpop.eup %5900 }
0x1ac3   :  { %4043 = vrot.lane.b32.xlu0 %v5901_v12, %s6021_s1 }
0x1b35   :  { %v4044_v13 = vpop.permute.xlu0 %4043 }
0x1b36   :  { %v6420_v14 = vmul.f32 %v5899_v6, %v4044_v13 }
0x1b38   :  { %v4053_v15 = vpack.c.bf16 %v6420_v14, %v6420_v14 }
0x1b3a   :  { %4055 = vrot.lane.b32.xlu1 %v4053_v15, %s6022_s12 }
0x1bac   :  { %v4056_v16 = vpop.permute.xlu1 %4055 }
0x1bad   :  { %5797 = vmatmul.mubr.msk.bf16.vlgmr.msra.gmra.mxu0 %vm248_vm1, %v4056_v16 }
0x1bae   :  { %5809 = vmatpush3.bf16.msra.mxu0 %v6361_v61  ;;  %5812 = vmatprep.mubr.msk.bf16.mxu0 %vm6020_vm2, %v6019_v32 }
0x1baf   :  { %5810 = vmatprep.subr.bf16.mxu0 %v6019_v32 }
0x1bb2   :  { %5811 = vmatpush3.bf16.msra.mxu0 %v6371_v1 }
0x1bb3   :  { %5824 = vmatprep.subr.bf16.mxu0 %v6019_v32 }
0x1c6d   :  { %v4094_v18 = vpop.f32.mrf.mxu0 }
0x1c6e   :  { %v4100_v19 = vadd.f32 %v4094_v18, %v4052_v17 }
0x1c6f   :  { %v5798_v20 = vpop.f32.mrf.mxu0 }
0x1c70   :  { %5902 = vtanh.f32 %v4100_v19  ;;  %v4101_v24 = vsub.f32 0.0, %v4100_v19 }
0x1c71   :  { %v4097_v21 = vpop.f32.mrf.mxu0 }
0x1c72   :  { %v4102_v25 = vmul.f32 1.442695, %v4101_v24 }
0x1c73   :  { %v5799_v22 = vpop.f32.mrf.mxu0 }
0x1c74   :  { %5904 = vpow2.f32 %v4102_v25  ;;  %v4286_v25 = vld [vmem:[#allocation2 + $0xa] sm:$0x3] }
0x1c7d   :  { %v5903_v23 = vpop.eup %5902 }
0x1c7e   :  { %4110 = vrot.lane.b32.xlu0 %v5903_v23, %s6021_s1 }
0x1c81   :  { %v5905_v26 = vpop.eup %5904 }
0x1c82   :  { %v4104_v27 = vadd.f32 1.0, %v5905_v26 }
0x1c84   :  { %5906 = vrcp.f32 %v4104_v27 }
0x1c91   :  { %v5907_v28 = vpop.eup %5906 }
0x1c92   :  { %v4108_v31 = vmul.f32 %v5907_v28, %v4040_v11 }
0x1cf0   :  { %v4111_v29 = vpop.permute.xlu0 %4110 }
0x1cf1   :  { %v4113_v30 = vmul.f32 %v5907_v28, %v4111_v29 }
0x1cf3   :  { %4115 = vrot.lane.b32.xlu1 %v4113_v30, %s6022_s12 }
0x1d65   :  { %v4116_v33 = vpop.permute.xlu1 %4115 }
0x1d66   :  { %v4118_v34 = vadd.f32 %v4116_v33, %v4108_v31 }
0x1d68   :  { %5908 = vtanh.f32 %v4118_v34 }
0x1d75   :  { %v5909_v35 = vpop.eup %5908 }
0x1d76   :  { %4121 = vrot.lane.b32.xlu0 %v5909_v35, %s6021_s1 }
0x1de8   :  { %v4122_v36 = vpop.permute.xlu0 %4121 }
0x1de9   :  { %v6435_v37 = vmul.f32 %v5907_v28, %v4122_v36 }
0x1deb   :  { %v4131_v38 = vpack.c.bf16 %v6435_v37, %v6435_v37 }
0x1ded   :  { %4133 = vrot.lane.b32.xlu1 %v4131_v38, %s6022_s12 }
0x1e5f   :  { %v4134_v39 = vpop.permute.xlu1 %4133 }
0x1e60   :  { %5805 = vmatmul.mubr.msk.bf16.vlgmr.msra.gmra.mxu1 %vm248_vm1, %v4134_v39 }
0x1e61   :  { %5817 = vmatpush3.bf16.msra.mxu1 %v6361_v61  ;;  %5820 = vmatprep.mubr.msk.bf16.mxu1 %vm6020_vm2, %v6019_v32 }
0x1e62   :  { %5818 = vmatprep.subr.bf16.mxu1 %v6019_v32 }
0x1e65   :  { %5819 = vmatpush3.bf16.msra.mxu1 %v6371_v1 }
0x1e66   :  { %5832 = vmatprep.subr.bf16.mxu1 %v6019_v32 }
0x1f20   :  { %v4172_v41 = vpop.f32.mrf.mxu1 }
0x1f21   :  { %v4178_v42 = vadd.f32 %v4172_v41, %v4130_v40 }
0x1f22   :  { %v5806_v43 = vpop.f32.mrf.mxu1 }
0x1f23   :  { %5910 = vtanh.f32 %v4178_v42  ;;  %v4179_v47 = vsub.f32 0.0, %v4178_v42 }
0x1f24   :  { %v4175_v44 = vpop.f32.mrf.mxu1 }
0x1f25   :  { %v4180_v48 = vmul.f32 1.442695, %v4179_v47 }
0x1f26   :  { %v5807_v45 = vpop.f32.mrf.mxu1 }
0x1f27   :  { %5912 = vpow2.f32 %v4180_v48 }
0x1f30   :  { %v5911_v46 = vpop.eup %5910 }
0x1f31   :  { %4188 = vrot.lane.b32.xlu0 %v5911_v46, %s6021_s1 }
0x1f34   :  { %v5913_v49 = vpop.eup %5912 }
0x1f35   :  { %v4182_v50 = vadd.f32 1.0, %v5913_v49  ;;  %v4364_v49 = vld [vmem:[#allocation2 + $0xc] sm:$0x3] }
0x1f37   :  { %5914 = vrcp.f32 %v4182_v50 }
0x1f44   :  { %v5915_v4 = vpop.eup %5914 }
0x1f45   :  { %v4186_v54 = vmul.f32 %v5915_v4, %v4118_v34 }
0x1fa3   :  { %v4189_v51 = vpop.permute.xlu0 %4188 }
0x1fa4   :  { %v4191_v53 = vmul.f32 %v5915_v4, %v4189_v51 }
0x1fa6   :  { %4193 = vrot.lane.b32.xlu1 %v4191_v53, %s6022_s12 }
0x2018   :  { %v4194_v55 = vpop.permute.xlu1 %4193 }
0x2019   :  { %v4196_v56 = vadd.f32 %v4194_v55, %v4186_v54 }
0x201b   :  { %5916 = vtanh.f32 %v4196_v56 }
0x2028   :  { %v5917_v57 = vpop.eup %5916 }
0x2029   :  { %4199 = vrot.lane.b32.xlu0 %v5917_v57, %s6021_s1 }
0x209b   :  { %v4200_v58 = vpop.permute.xlu0 %4199 }
0x209c   :  { %v6450_v59 = vmul.f32 %v5915_v4, %v4200_v58 }
0x209e   :  { %v4209_v60 = vpack.c.bf16 %v6450_v59, %v6450_v59 }
0x20a0   :  { %4211 = vrot.lane.b32.xlu1 %v4209_v60, %s6022_s12 }
0x2112   :  { %v4212_v62 = vpop.permute.xlu1 %4211 }
0x2113   :  { %5813 = vmatmul.mubr.msk.bf16.vlgmr.msra.gmra.mxu0 %vm248_vm1, %v4212_v62 }
0x2114   :  { %5825 = vmatpush3.bf16.msra.mxu0 %v6361_v61  ;;  %5828 = vmatprep.mubr.msk.bf16.mxu0 %vm6020_vm2, %v6019_v32 }
0x2115   :  { %5826 = vmatprep.subr.bf16.mxu0 %v6019_v32 }
0x2118   :  { %5827 = vmatpush3.bf16.msra.mxu0 %v6371_v1 }
0x2119   :  { %5840 = vmatprep.subr.bf16.mxu0 %v6019_v32 }
0x21d3   :  { %v4250_v0 = vpop.f32.mrf.mxu0 }
0x21d4   :  { %v4256_v3 = vadd.f32 %v4250_v0, %v4208_v63 }
0x21d5   :  { %v5814_v5 = vpop.f32.mrf.mxu0 }
0x21d6   :  { %5918 = vtanh.f32 %v4256_v3  ;;  %v4257_v9 = vsub.f32 0.0, %v4256_v3 }
0x21d7   :  { %v4253_v6 = vpop.f32.mrf.mxu0 }
0x21d8   :  { %v4258_v10 = vmul.f32 1.442695, %v4257_v9 }
0x21d9   :  { %v5815_v7 = vpop.f32.mrf.mxu0 }
0x21da   :  { %5920 = vpow2.f32 %v4258_v10  ;;  %v4442_v10 = vld [vmem:[#allocation2 + $0xe] sm:$0x3] }
0x21e3   :  { %v5919_v8 = vpop.eup %5918 }
0x21e4   :  { %4266 = vrot.lane.b32.xlu0 %v5919_v8, %s6021_s1 }
0x21e7   :  { %v5921_v11 = vpop.eup %5920 }
0x21e8   :  { %v4260_v12 = vadd.f32 1.0, %v5921_v11 }
0x21ea   :  { %5922 = vrcp.f32 %v4260_v12 }
0x21f7   :  { %v5923_v13 = vpop.eup %5922 }
0x21f8   :  { %v4264_v17 = vmul.f32 %v5923_v13, %v4196_v56 }
0x2256   :  { %v4267_v15 = vpop.permute.xlu0 %4266 }
0x2257   :  { %v4269_v16 = vmul.f32 %v5923_v13, %v4267_v15 }
0x2259   :  { %4271 = vrot.lane.b32.xlu1 %v4269_v16, %s6022_s12 }
0x22cb   :  { %v4272_v18 = vpop.permute.xlu1 %4271 }
0x22cc   :  { %v4274_v19 = vadd.f32 %v4272_v18, %v4264_v17 }
0x22ce   :  { %5924 = vtanh.f32 %v4274_v19 }
0x22db   :  { %v5925_v20 = vpop.eup %5924 }
0x22dc   :  { %4277 = vrot.lane.b32.xlu0 %v5925_v20, %s6021_s1 }
0x234e   :  { %v4278_v21 = vpop.permute.xlu0 %4277 }
0x234f   :  { %v6465_v22 = vmul.f32 %v5923_v13, %v4278_v21 }
0x2351   :  { %v4287_v23 = vpack.c.bf16 %v6465_v22, %v6465_v22 }
0x2353   :  { %4289 = vrot.lane.b32.xlu1 %v4287_v23, %s6022_s12 }
0x23c5   :  { %v4290_v24 = vpop.permute.xlu1 %4289 }
0x23c6   :  { %5821 = vmatmul.mubr.msk.bf16.vlgmr.msra.gmra.mxu1 %vm248_vm1, %v4290_v24 }
0x23c7   :  { %5833 = vmatpush3.bf16.msra.mxu1 %v6361_v61  ;;  %5836 = vmatprep.mubr.msk.bf16.mxu1 %vm6020_vm2, %v6019_v32 }
0x23c8   :  { %5834 = vmatprep.subr.bf16.mxu1 %v6019_v32 }
0x23cb   :  { %5835 = vmatpush3.bf16.msra.mxu1 %v6371_v1 }
0x23cc   :  { %5848 = vmatprep.subr.mxu1 %v6019_v32 }
0x2486   :  { %v4328_v26 = vpop.f32.mrf.mxu1 }
0x2487   :  { %v4334_v27 = vadd.f32 %v4328_v26, %v4286_v25 }
0x2488   :  { %v5822_v28 = vpop.f32.mrf.mxu1 }
0x2489   :  { %5926 = vtanh.f32 %v4334_v27  ;;  %v4335_v33 = vsub.f32 0.0, %v4334_v27 }
0x248a   :  { %v4331_v29 = vpop.f32.mrf.mxu1 }
0x248b   :  { %v4336_v34 = vmul.f32 1.442695, %v4335_v33 }
0x248c   :  { %v5823_v30 = vpop.f32.mrf.mxu1 }
0x248d   :  { %5928 = vpow2.f32 %v4336_v34 }
0x2496   :  { %v5927_v31 = vpop.eup %5926 }
0x2497   :  { %4344 = vrot.lane.b32.xlu0 %v5927_v31, %s6021_s1 }
0x249a   :  { %v5929_v35 = vpop.eup %5928 }
0x249b   :  { %v4338_v36 = vadd.f32 1.0, %v5929_v35  ;;  %v4520_v35 = vld [vmem:[#allocation2 + $0x10] sm:$0x3] }
0x249d   :  { %5930 = vrcp.f32 %v4338_v36 }
0x24aa   :  { %v5931_v38 = vpop.eup %5930 }
0x24ab   :  { %v4342_v41 = vmul.f32 %v5931_v38, %v4274_v19 }
0x2509   :  { %v4345_v39 = vpop.permute.xlu0 %4344 }
0x250a   :  { %v4347_v40 = vmul.f32 %v5931_v38, %v4345_v39 }
0x250c   :  { %4349 = vrot.lane.b32.xlu1 %v4347_v40, %s6022_s12 }
0x257e   :  { %v4350_v42 = vpop.permute.xlu1 %4349 }
0x257f   :  { %v4352_v43 = vadd.f32 %v4350_v42, %v4342_v41 }
0x2581   :  { %5932 = vtanh.f32 %v4352_v43 }
0x258e   :  { %v5933_v44 = vpop.eup %5932 }
0x258f   :  { %4355 = vrot.lane.b32.xlu0 %v5933_v44, %s6021_s1 }
0x2601   :  { %v4356_v45 = vpop.permute.xlu0 %4355 }
0x2602   :  { %v6480_v46 = vmul.f32 %v5931_v38, %v4356_v45 }
0x2604   :  { %v4365_v47 = vpack.c.bf16 %v6480_v46, %v6480_v46 }
0x2606   :  { %4367 = vrot.lane.b32.xlu1 %v4365_v47, %s6022_s12 }
0x2678   :  { %v4368_v48 = vpop.permute.xlu1 %4367 }
0x2679   :  { %5829 = vmatmul.mubr.msk.bf16.vlgmr.msra.gmra.mxu0 %vm248_vm1, %v4368_v48 }
0x267a   :  { %5841 = vmatpush3.bf16.msra.mxu0 %v6361_v61  ;;  %5844 = vmatprep.mubr.msk.bf16.mxu0 %vm6020_vm2, %v6019_v32 }
0x267b   :  { %5842 = vmatprep.subr.bf16.mxu0 %v6019_v32 }
0x267e   :  { %5843 = vmatpush3.bf16.msra.mxu0 %v6371_v1 }
0x2739   :  { %v4406_v50 = vpop.f32.mrf.mxu0 }
0x273a   :  { %v4412_v4 = vadd.f32 %v4406_v50, %v4364_v49 }
0x273b   :  { %v5830_v51 = vpop.f32.mrf.mxu0 }
0x273c   :  { %5934 = vtanh.f32 %v4412_v4  ;;  %v4413_v56 = vsub.f32 0.0, %v4412_v4 }
0x273d   :  { %v4409_v53 = vpop.f32.mrf.mxu0 }
0x273e   :  { %v4414_v57 = vmul.f32 1.442695, %v4413_v56  ;;  %v4604_v56 = vld [vmem:[#allocation4 + $0x528] sm:$0xff] }
0x273f   :  { %v5831_v54 = vpop.f32.mrf.mxu0 }
0x2740   :  { %5936 = vpow2.f32 %v4414_v57  ;;  %v4603_v57 = vld [vmem:[#allocation4 + $0x520] sm:$0xff] }
0x2749   :  { %v5935_v55 = vpop.eup %5934 }
0x274a   :  { %4422 = vrot.lane.b32.xlu0 %v5935_v55, %s6021_s1 }
0x274d   :  { %v5937_v61 = vpop.eup %5936 }
0x274e   :  { %v4416_v58 = vadd.f32 1.0, %v5937_v61  ;;  %v4602_v61 = vld [vmem:[#allocation4 + $0x518] sm:$0xff] }
0x2750   :  { %5938 = vrcp.f32 %v4416_v58  ;;  %v4601_v58 = vld [vmem:[#allocation4 + $0x510] sm:$0xff] }
0x275d   :  { %v5939_v60 = vpop.eup %5938 }
0x275e   :  { %v4420_v1 = vmul.f32 %v5939_v60, %v4352_v43 }
0x27bc   :  { %v4423_v62 = vpop.permute.xlu0 %4422 }
0x27bd   :  { %v4425_v63 = vmul.f32 %v5939_v60, %v4423_v62 }
0x27bf   :  { %4427 = vrot.lane.b32.xlu1 %v4425_v63, %s6022_s12 }
0x2831   :  { %v4428_v0 = vpop.permute.xlu1 %4427 }
0x2832   :  { %v4430_v3 = vadd.f32 %v4428_v0, %v4420_v1 }
0x2834   :  { %5940 = vtanh.f32 %v4430_v3 }
0x2841   :  { %v5941_v5 = vpop.eup %5940 }
0x2842   :  { %4433 = vrot.lane.b32.xlu0 %v5941_v5, %s6021_s1 }
0x28b4   :  { %v4434_v6 = vpop.permute.xlu0 %4433 }
0x28b5   :  { %v4436_v7 = vmul.f32 %v5939_v60, %v4434_v6  ;;  %v6541_v6 = vand.u32 127, %v537_v2 }
0x28b7   :  { %v4443_v8 = vpack.c.bf16 %v4436_v7, %v4436_v7  ;;  %vm4711_vm12 = vcmp.lt.s32.totalorder %v6541_v6, 16  ;;  %vm4746_vm13 = vcmp.ge.s32.totalorder %v6541_v6, 96  ;;  %vm4747_vm14 = vcmp.lt.s32.totalorder %v6541_v6, 99 }
0x28b8   :  { %vm4702_vm15 = vcmp.lt.s32.totalorder %v6541_v6, 48  ;;  %vm4704_vm0 = vcmp.ge.s32.totalorder %v6541_v6, 48  ;;  %vm4705_vm4 = vcmp.lt.s32.totalorder %v6541_v6, 80  ;;  %vm4707_vm6 = vcmp.ge.s32.totalorder %v6541_v6, 80 }
0x28b9   :  { %4445 = vrot.lane.b32.xlu1 %v4443_v8, %s6022_s12  ;;  %vm4708_vm3 = vcmp.lt.s32.totalorder %v6541_v6, 96  ;;  %vm6601_vm7 = vmand %vm4704_vm0, %vm4705_vm4 }
0x28ba   :  { %vm6608_vm8 = vmand %vm4707_vm6, %vm4708_vm3 }
0x292b   :  { %v4446_v9 = vpop.permute.xlu1 %4445 }
0x292c   :  { %5837 = vmatmul.mubr.msk.bf16.vlgmr.msra.gmra.mxu1 %vm248_vm1, %v4446_v9 }
0x292d   :  { %5856 = vmatprep.mubr.msk.f32.mxu1 %vm6020_vm2, %v6019_v32  ;;  %5849 = vmatpush3.msra.mxu1 %v4604_v56 }
0x292e   :  { %5850 = vmatprep.subr.mxu1 %v6019_v32 }
0x292f   :  { %5851 = vmatpush3.msra.mxu1 %v4603_v57 }
0x2930   :  { %5852 = vmatprep.subr.mxu1 %v6019_v32 }
0x2931   :  { %5853 = vmatpush3.msra.mxu1 %v4602_v61 }
0x2932   :  { %5854 = vmatprep.subr.mxu1 %v6019_v32 }
0x2933   :  { %5855 = vmatpush3.msra.mxu1 %v4601_v58 }
0x29ec   :  { %v4484_v11 = vpop.f32.mrf.mxu1 }
0x29ed   :  { %v4490_v12 = vadd.f32 %v4484_v11, %v4442_v10 }
0x29ee   :  { %v5838_v13 = vpop.f32.mrf.mxu1 }
0x29ef   :  { %5942 = vtanh.f32 %v4490_v12  ;;  %v4491_v18 = vsub.f32 0.0, %v4490_v12 }
0x29f0   :  { %v4487_v15 = vpop.f32.mrf.mxu1 }
0x29f1   :  { %v4492_v19 = vmul.f32 1.442695, %v4491_v18 }
0x29f2   :  { %v5839_v16 = vpop.f32.mrf.mxu1 }
0x29f3   :  { %5944 = vpow2.f32 %v4492_v19 }
0x29fc   :  { %v5943_v17 = vpop.eup %5942 }
0x29fd   :  { %4500 = vrot.lane.b32.xlu0 %v5943_v17, %s6021_s1 }
0x2a00   :  { %v5945_v20 = vpop.eup %5944 }
0x2a01   :  { %v4494_v21 = vadd.f32 1.0, %v5945_v20 }
0x2a03   :  { %5946 = vrcp.f32 %v4494_v21 }
0x2a10   :  { %v5947_v23 = vpop.eup %5946 }
0x2a11   :  { %v4498_v26 = vmul.f32 %v5947_v23, %v4430_v3 }
0x2a6f   :  { %v4501_v24 = vpop.permute.xlu0 %4500 }
0x2a70   :  { %v4503_v25 = vmul.f32 %v5947_v23, %v4501_v24 }
0x2a72   :  { %4505 = vrot.lane.b32.xlu1 %v4503_v25, %s6022_s12 }
0x2ae4   :  { %v4506_v27 = vpop.permute.xlu1 %4505 }
0x2ae5   :  { %v4508_v28 = vadd.f32 %v4506_v27, %v4498_v26 }
0x2ae7   :  { %5948 = vtanh.f32 %v4508_v28 }
0x2af4   :  { %v5949_v29 = vpop.eup %5948 }
0x2af5   :  { %4511 = vrot.lane.b32.xlu0 %v5949_v29, %s6021_s1 }
0x2b67   :  { %v4512_v30 = vpop.permute.xlu0 %4511 }
0x2b68   :  { %v4514_v31 = vmul.f32 %v5947_v23, %v4512_v30 }
0x2b6a   :  { %v4521_v33 = vpack.c.bf16 %v4514_v31, %v4514_v31 }
0x2b6c   :  { %4523 = vrot.lane.b32.xlu1 %v4521_v33, %s6022_s12 }
0x2bde   :  { %v4524_v34 = vpop.permute.xlu1 %4523 }
0x2bdf   :  { %5845 = vmatmul.mubr.msk.bf16.vlgmr.msra.gmra.mxu0 %vm248_vm1, %v4524_v34 }
0x2c9f   :  { %v4562_v36 = vpop.f32.mrf.mxu0 }
0x2ca0   :  { %v4568_v38 = vadd.f32 %v4562_v36, %v4520_v35 }
0x2ca1   :  { %v5846_v39 = vpop.f32.mrf.mxu0 }
0x2ca2   :  { %5950 = vtanh.f32 %v4568_v38  ;;  %v4569_v43 = vsub.f32 0.0, %v4568_v38 }
0x2ca3   :  { %v4565_v40 = vpop.f32.mrf.mxu0 }
0x2ca4   :  { %v4570_v44 = vmul.f32 1.442695, %v4569_v43 }
0x2ca5   :  { %v5847_v41 = vpop.f32.mrf.mxu0 }
0x2ca6   :  { %5952 = vpow2.f32 %v4570_v44 }
0x2caf   :  { %v5951_v42 = vpop.eup %5950 }
0x2cb0   :  { %4578 = vrot.lane.b32.xlu0 %v5951_v42, %s6021_s1 }
0x2cb3   :  { %v5953_v45 = vpop.eup %5952 }
0x2cb4   :  { %v4572_v47 = vadd.f32 1.0, %v5953_v45 }
0x2cb6   :  { %5954 = vrcp.f32 %v4572_v47 }
0x2cc3   :  { %v5955_v48 = vpop.eup %5954 }
0x2cc4   :  { %v4576_v4 = vmul.f32 %v5955_v48, %v4508_v28 }
0x2d22   :  { %v4579_v49 = vpop.permute.xlu0 %4578 }
0x2d23   :  { %v4581_v50 = vmul.f32 %v5955_v48, %v4579_v49 }
0x2d25   :  { %4583 = vrot.lane.b32.xlu1 %v4581_v50, %s6022_s12 }
0x2d29   :  { %3969 = vrot.lane.b32.xlu1 %v6405_v52, %s6022_s12 }
0x2d2d   :  { %4126 = vrot.lane.b32.xlu1 %v6435_v37, %s6022_s12 }
0x2d31   :  { %4282 = vrot.lane.b32.xlu1 %v6465_v22, %s6022_s12 }
0x2d35   :  { %4438 = vrot.lane.b32.xlu1 %v4436_v7, %s6022_s12  ;;  %v4931_v7 = vld [vmem:[#allocation4 + $0x530] ss:$0 sm:$0xff] }
0x2d97   :  { %v4584_v51 = vpop.permute.xlu1 %4583 }
0x2d98   :  { %v4586_v53 = vadd.f32 %v4584_v51, %v4576_v4 }
0x2d9a   :  { %5956 = vtanh.f32 %v4586_v53 }
0x2d9b   :  { %v3970_v54 = vpop.permute.xlu1 %3969 }
0x2d9c   :  { %3973 = vst.msk [vmem:[#allocation3] sm:$0x3] %vm3972_vm11, %v3970_v54 }
0x2d9f   :  { %v4127_v55 = vpop.permute.xlu1 %4126 }
0x2da0   :  { %4129 = vst.msk [vmem:[#allocation3 + $0x4] sm:$0x3] %vm3972_vm11, %v4127_v55 }
0x2da3   :  { %v4283_v52 = vpop.permute.xlu1 %4282 }
0x2da4   :  { %4285 = vst.msk [vmem:[#allocation3 + $0x8] sm:$0x3] %vm3972_vm11, %v4283_v52 }
0x2da7   :  { %v5957_v37 = vpop.eup %5956  ;;  %v4439_v22 = vpop.permute.xlu1 %4438 }
0x2da8   :  { %4441 = vst.msk [vmem:[#allocation3 + $0xc] sm:$0x3] %vm3972_vm11, %v4439_v22  ;;  %4589 = vrot.lane.b32.xlu0 %v5957_v37, %s6021_s1 }
0x2dac   :  { %4048 = vrot.lane.b32.xlu0 %v6420_v14, %s6022_s12 }
0x2db0   :  { %4204 = vrot.lane.b32.xlu0 %v6450_v59, %s6022_s12 }
0x2db4   :  { %4360 = vrot.lane.b32.xlu0 %v6480_v46, %s6022_s12 }
0x2db8   :  { %4516 = vrot.lane.b32.xlu0 %v4514_v31, %s6022_s12 }
0x2e1a   :  { %v4590_v60 = vpop.permute.xlu0 %4589 }
0x2e1b   :  { %v4592_v62 = vmul.f32 %v5955_v48, %v4590_v60 }
0x2e1d   :  { %4594 = vrot.lane.b32.xlu1 %v4592_v62, %s6022_s12 }
0x2e1e   :  { %v4049_v63 = vpop.permute.xlu0 %4048 }
0x2e1f   :  { %4051 = vst.msk [vmem:[#allocation3 + $0x2] sm:$0x3] %vm3972_vm11, %v4049_v63 }
0x2e22   :  { %v4205_v1 = vpop.permute.xlu0 %4204 }
0x2e23   :  { %4207 = vst.msk [vmem:[#allocation3 + $0x6] sm:$0x3] %vm3972_vm11, %v4205_v1 }
0x2e26   :  { %v4361_v0 = vpop.permute.xlu0 %4360 }
0x2e27   :  { %4363 = vst.msk [vmem:[#allocation3 + $0xa] sm:$0x3] %vm3972_vm11, %v4361_v0 }
0x2e2a   :  { %v4517_v14 = vpop.permute.xlu0 %4516  ;;  %v4598_v59 = vld [vmem:[#allocation3] sm:$0xff] }
0x2e2b   :  { %4519 = vst.msk [vmem:[#allocation3 + $0xe] sm:$0x3] %vm3972_vm11, %v4517_v14  ;;  %5857 = vmatmul.mubr.msk.f32.vlgmr.msra.gmra.mxu1 %vm248_vm1, %v4598_v59 }
0x2e2c   :  { %5859 = vmatprep.mubr.msk.f32.mxu1 %vm6020_vm2, %v6019_v32 }
0x2e32   :  { %v4599_v46 = vld [vmem:[#allocation3 + $0x8] sm:$0xff] }
0x2e33   :  { %5860 = vmatmul.mubr.msk.f32.gmra.mxu1 %vm248_vm1, %v4599_v46 }
0x2e34   :  { %5862 = vmatprep.mubr.msk.f32.mxu1 %vm6020_vm2, %v6019_v32  ;;  %vm4701_vm2 = vcmp.ge.s32.totalorder %v6541_v6, 16 }
0x2e35   :  { %vm6595_vm5 = vmand %vm4701_vm2, %vm4702_vm15 }
0x2e8f   :  { %v4595_v3 = vpop.permute.xlu1 %4594 }
0x2e90   :  { %4597 = vst.msk [vmem:[#allocation3 + $0x10] sm:$0x3] %vm3972_vm11, %v4595_v3 }
0x2e97   :  { %v4600_v5 = vld [vmem:[#allocation3 + $0x10] sm:$0xff] }
0x2e98   :  { %5863 = vmatmul.mubr.msk.f32.gmra.mxu1 %vm248_vm1, %v4600_v5  ;;  %vm6551_vm1 = vmand %vm4746_vm13, %vm4747_vm14 }
0x2eeb   :  { %v4685_v8 = vpop.f32.mrf.mxu1 }
0x2eec   :  { %v6544_v9 = vadd.f32 %v4931_v7, %v4685_v8 }
0x2eed   :  { %v5858_v32 = vpop.f32.mrf.mxu1 }
0x2eee   :  { %v4713_v10 = vsel %vm4711_vm12, %v6544_v9, -1e+30  ;;  %v4749_v2 = vsel %vm6551_vm1, %v6544_v9, -1e+30  ;;  %v4791_v37 = vmul.f32 1.442695, %v6544_v9 }
0x2eef   :  { %4716 = vmax.xlane.f32.xlu0 %v4713_v10  ;;  %v4785_v59 = vsel %vm6595_vm5, %v6544_v9, 0.0 }
0x2ef3   :  { %4752 = vmax.xlane.f32.xlu0 %v4749_v2  ;;  %v4690_v12 = vpop.f32.mrf.mxu1 }
0x2ef4   :  { %v6558_v13 = vadd.f32 %v4931_v7, %v4690_v12 }
0x2ef5   :  { %v5861_v15 = vpop.f32.mrf.mxu1 }
0x2ef6   :  { %v4714_v16 = vsel %vm4711_vm12, %v6558_v13, -1e+30  ;;  %v4750_v17 = vsel %vm6551_vm1, %v6558_v13, -1e+30 }
0x2ef7   :  { %4718 = vmax.xlane.f32.xlu1 %v4714_v16 }
0x2efb   :  { %4754 = vmax.xlane.f32.xlu1 %v4750_v17 }
0x2f58   :  { %v4695_v18 = vpop.f32.mrf.mxu1 }
0x2f59   :  { %v6566_v19 = vadd.f32 %v4931_v7, %v4695_v18 }
0x2f5a   :  { %v5864_v20 = vpop.f32.mrf.mxu1 }
0x2f5b   :  { %v4715_v21 = vsel %vm4711_vm12, %v6566_v19, -1e+30  ;;  %v4751_v23 = vsel %vm6551_vm1, %v6566_v19, -1e+30  ;;  %v4795_v12 = vmul.f32 1.442695, %v6566_v19 }
0x2f5c   :  { %4720 = vmax.xlane.f32.xlu0 %v4715_v21 }
0x2f60   :  { %4756 = vmax.xlane.f32.xlu0 %v4751_v23 }
0x2f78   :  { %v4717_v24 = vpop.xlane.xlu0 %4716 }
0x2f79   :  { %v4722_v25 = vsub.f32 %v4713_v10, %v4717_v24 }
0x2f7b   :  { %v4725_v26 = vmul.f32 1.442695, %v4722_v25 }
0x2f7c   :  { %v4753_v27 = vpop.xlane.xlu0 %4752 }
0x2f7d   :  { %5958 = vpow2.f32 %v4725_v26  ;;  %v4758_v28 = vsub.f32 %v4749_v2, %v4753_v27 }
0x2f7f   :  { %v4761_v31 = vmul.f32 1.442695, %v4758_v28  ;;  %v4786_v28 = vsel %vm6595_vm5, %v6558_v13, 0.0 }
0x2f80   :  { %v4719_v29 = vpop.xlane.xlu1 %4718 }
0x2f81   :  { %v4723_v30 = vsub.f32 %v4714_v16, %v4719_v29 }
0x2f83   :  { %v4727_v33 = vmul.f32 1.442695, %v4723_v30 }
0x2f84   :  { %v4755_v41 = vpop.xlane.xlu1 %4754 }
0x2f85   :  { %5960 = vpow2.f32 %v4727_v33  ;;  %v4759_v42 = vsub.f32 %v4750_v17, %v4755_v41 }
0x2f86   :  { %5962 = vpow2.f32 %v4761_v31  ;;  %v4787_v31 = vsel %vm6595_vm5, %v6566_v19, 0.0 }
0x2f87   :  { %v4763_v45 = vmul.f32 1.442695, %v4759_v42 }
0x2f8a   :  { %v5959_v34 = vpop.eup %5958 }
0x2f8b   :  { %v4731_v35 = vsel %vm4711_vm12, %v5959_v34, 0.0 }
0x2f8c   :  { %4734 = vadd.xlane.f32.xlu1 %v4731_v35 }
0x2f92   :  { %v5961_v36 = vpop.eup %5960 }
0x2f93   :  { %v6578_v38 = vsel %vm4711_vm12, %v5961_v36, 0.0  ;;  %v5963_v39 = vpop.eup %5962 }
0x2f94   :  { %4736 = vadd.xlane.f32.xlu0 %v6578_v38  ;;  %v4767_v40 = vsel %vm6551_vm1, %v5963_v39, 0.0 }
0x2f98   :  { %4770 = vadd.xlane.f32.xlu0 %v4767_v40 }
0x2fe5   :  { %v4721_v43 = vpop.xlane.xlu0 %4720 }
0x2fe6   :  { %v4724_v44 = vsub.f32 %v4715_v21, %v4721_v43 }
0x2fe8   :  { %v4729_v47 = vmul.f32 1.442695, %v4724_v44 }
0x2fe9   :  { %v4757_v48 = vpop.xlane.xlu0 %4756 }
0x2fea   :  { %5964 = vpow2.f32 %v4729_v47  ;;  %v4760_v49 = vsub.f32 %v4751_v23, %v4757_v48 }
0x2feb   :  { %5966 = vpow2.f32 %v4763_v45 }
0x2fec   :  { %v4765_v50 = vmul.f32 1.442695, %v4760_v49 }
0x2fee   :  { %5968 = vpow2.f32 %v4765_v50 }
0x2ff7   :  { %v5965_v4 = vpop.eup %5964 }
0x2ff8   :  { %v4733_v51 = vsel %vm4711_vm12, %v5965_v4, 0.0  ;;  %v5967_v53 = vpop.eup %5966 }
0x2ff9   :  { %4738 = vadd.xlane.f32.xlu1 %v4733_v51  ;;  %v4768_v55 = vsel %vm6551_vm1, %v5967_v53, 0.0 }
0x2ffb   :  { %v5969_v54 = vpop.eup %5968 }
0x2ffc   :  { %v4769_v52 = vsel %vm6551_vm1, %v5969_v54, 0.0 }
0x2ffd   :  { %4772 = vadd.xlane.f32.xlu1 %v4768_v55  ;;  %4774 = vadd.xlane.f32.xlu0 %v4769_v52 }
0x3015   :  { %v4735_v56 = vpop.xlane.xlu1 %4734 }
0x3016   :  { %5970 = vrcp.f32 %v4735_v56 }
0x301d   :  { %v4737_v57 = vpop.xlane.xlu0 %4736 }
0x3021   :  { %v4771_v22 = vpop.xlane.xlu0 %4770 }
0x3022   :  { %5972 = vrcp.f32 %v4771_v22 }
0x3023   :  { %5974 = vpow2.f32 %v4791_v37  ;;  %v5971_v61 = vpop.eup %5970 }
0x3024   :  { %5976 = vtanh.f32 %v6544_v9  ;;  %v4741_v62 = vmul.f32 %v5971_v61, %v4731_v35  ;;  %v4793_v9 = vmul.f32 1.442695, %v6558_v13 }
0x3025   :  { %5978 = vrcp.f32 %v4737_v57 }
0x302f   :  { %v5973_v58 = vpop.eup %5972 }
0x3030   :  { %v4777_v63 = vmul.f32 %v5973_v58, %v4767_v40  ;;  %v5975_v1 = vpop.eup %5974 }
0x3031   :  { %v5977_v46 = vpop.eup %5976  ;;  %v4797_v7 = vsel %vm6601_vm7, %v5975_v1, 0.0 }
0x3032   :  { %v4782_v14 = vadd.f32 %v4777_v63, %v4741_v62  ;;  %v4806_v8 = vsel %vm6608_vm8, %v5977_v46, 0.0  ;;  %v5979_v15 = vpop.eup %5978 }
0x3033   :  { %v4743_v20 = vmul.f32 %v5979_v15, %v6578_v38 }
0x3034   :  { %v4788_v5 = vadd.f32 %v4785_v59, %v4782_v14 }
0x3036   :  { %v4800_v6 = vadd.f32 %v4797_v7, %v4788_v5 }
0x3038   :  { %v4809_v32 = vadd.f32 %v4806_v8, %v4800_v6 }
0x303a   :  { %4812 = vst [vmem:[%s6647_s3] sm:$0xff] %v4809_v32 }
0x3082   :  { %v4739_v10 = vpop.xlane.xlu1 %4738 }
0x3083   :  { %5980 = vrcp.f32 %v4739_v10 }
0x3086   :  { %v4773_v11 = vpop.xlane.xlu1 %4772  ;;  %v4775_v2 = vpop.xlane.xlu0 %4774 }
0x3087   :  { %5982 = vrcp.f32 %v4773_v11 }
0x3088   :  { %5984 = vrcp.f32 %v4775_v2 }
0x3089   :  { %5986 = vpow2.f32 %v4793_v9 }
0x308a   :  { %5988 = vpow2.f32 %v4795_v12 }
0x308b   :  { %5990 = vtanh.f32 %v6558_v13 }
0x308c   :  { %5992 = vtanh.f32 %v6566_v19 }
0x3090   :  { %v5981_v16 = vpop.eup %5980 }
0x3091   :  { %v4745_v23 = vmul.f32 %v5981_v16, %v4733_v51 }
0x3094   :  { %v5983_v17 = vpop.eup %5982 }
0x3095   :  { %v5985_v18 = vpop.eup %5984  ;;  %v4779_v21 = vmul.f32 %v5983_v17, %v4768_v55 }
0x3096   :  { %v4781_v24 = vmul.f32 %v5985_v18, %v4769_v52  ;;  %v5987_v25 = vpop.eup %5986 }
0x3097   :  { %v4783_v26 = vadd.f32 %v4779_v21, %v4743_v20  ;;  %v5989_v27 = vpop.eup %5988  ;;  %v4798_v35 = vsel %vm6601_vm7, %v5987_v25, 0.0 }
0x3098   :  { %v4784_v29 = vadd.f32 %v4781_v24, %v4745_v23  ;;  %v5991_v30 = vpop.eup %5990  ;;  %v4799_v39 = vsel %vm6601_vm7, %v5989_v27, 0.0 }
0x3099   :  { %v4789_v33 = vadd.f32 %v4786_v28, %v4783_v26  ;;  %v5993_v34 = vpop.eup %5992  ;;  %v4807_v40 = vsel %vm6608_vm8, %v5991_v30, 0.0 }
0x309a   :  { %v4790_v36 = vadd.f32 %v4787_v31, %v4784_v29  ;;  %v4808_v42 = vsel %vm6608_vm8, %v5993_v34, 0.0 }
0x309b   :  { %v4801_v38 = vadd.f32 %v4798_v35, %v4789_v33 }
0x309c   :  { %v4802_v13 = vadd.f32 %v4799_v39, %v4790_v36 }
0x309d   :  { %v4810_v41 = vadd.f32 %v4807_v40, %v4801_v38 }
0x309e   :  { %v4811_v43 = vadd.f32 %v4808_v42, %v4802_v13 }
0x309f   :  { %4813 = vst [vmem:[%s6647_s3 + $0x8] sm:$0xff] %v4810_v41 }
0x30a0   :  { %4814 = vst [vmem:[%s6647_s3 + $0x10] sm:$0xff] %v4811_v43 }
0x30a1   :  { %4819 = vsyncpa [#allocation5], 1 }

</bundles_post_ra>
